<compile_context>
chip_gen: v7x
topology: tpu7x:2x2x1
jax: 0.10.0
libtpu: 0.0.40
codegen_flags: <defaults>
</compile_context>

<pallas_src>
import functools

import jax
import jax.numpy as jnp
from jax.experimental import pallas as pl
from jax.experimental.pallas import tpu as pltpu


# ----------------------------------------------------------------------------
# Fused kernel: conv1 + bn1 + relu + conv2 + bn2 + residual add + relu
# ----------------------------------------------------------------------------
def _fused_basic_block_kernel(x_ref, w1_ref, s1_ref, b1_ref,
                              w2_ref, s2_ref, b2_ref,
                              o_ref, xpad_ref, mid_ref,
                              *, H, W, cin_p, cmid_p, cout_p):
    """Fused BasicBlock forward for one image (one grid step).

    x_ref  : (1, H, W, cin_p)       input, channel-padded, compute dtype
    w1_ref : (9, cin_p, cmid_p)     conv1 weights, taps ordered (kh, kw)
    s1_ref : (1, cmid_p)    f32     folded BN1 scale (zero in pad channels)
    b1_ref : (1, cmid_p)    f32     folded BN1 bias
    w2_ref : (9, cmid_p, cout_p)    conv2 weights
    s2_ref : (1, cout_p)    f32     folded BN2 scale
    b2_ref : (1, cout_p)    f32     folded BN2 bias
    o_ref  : (1, H, W, cout_p)      output, compute dtype
    xpad_ref : VMEM (H+2, W+2, cin_p)  compute dtype  zero-haloed input
    mid_ref  : VMEM (H+2, W+2, cmid_p) compute dtype  zero-haloed conv1 output
    """
    f32 = jnp.float32
    cdt = xpad_ref.dtype

    # ---- zero only the halo strips (interior is fully overwritten below). ---
    # NOT gated on program_id: with dimension_semantics=("parallel",) each core
    # runs a subset of program ids, so "first step" init would be unsafe.
    xpad_ref[0] = jnp.zeros((W + 2, cin_p), cdt)
    xpad_ref[H + 1] = jnp.zeros((W + 2, cin_p), cdt)
    xpad_ref[1:H + 1, 0:1, :] = jnp.zeros((H, 1, cin_p), cdt)
    xpad_ref[1:H + 1, W + 1:W + 2, :] = jnp.zeros((H, 1, cin_p), cdt)

    mid_ref[0] = jnp.zeros((W + 2, cmid_p), cdt)
    mid_ref[H + 1] = jnp.zeros((W + 2, cmid_p), cdt)
    mid_ref[1:H + 1, 0:1, :] = jnp.zeros((H, 1, cmid_p), cdt)
    mid_ref[1:H + 1, W + 1:W + 2, :] = jnp.zeros((H, 1, cmid_p), cdt)

    # ---- stage zero-haloed input in VMEM (channel-last, lane-dense) ----
    xpad_ref[1:H + 1, 1:W + 1, :] = x_ref[0]

    def conv3x3(src_ref, w_ref, c_in, c_out):
        # Shift-and-accumulate: 9 MXU matmuls with K = c_in (a 128 multiple),
        # taken directly from sublane-offset windows of the haloed scratch.
        # The (H, W, C) -> (H*W, C) collapse is layout-preserving (W % 8 == 0).
        acc = jnp.zeros((H * W, c_out), f32)
        for kh in range(3):
            for kw in range(3):
                tap = src_ref[kh:kh + H, kw:kw + W, :].reshape(H * W, c_in)
                acc += jnp.dot(tap, w_ref[kh * 3 + kw],
                               preferred_element_type=f32)
        return acc

    # ---- conv1 + BN1 + ReLU, staged (with halo) in VMEM for conv2 ----
    y1 = conv3x3(xpad_ref, w1_ref, cin_p, cmid_p)
    y1 = jnp.maximum(y1 * s1_ref[...] + b1_ref[...], 0.0)
    mid_ref[1:H + 1, 1:W + 1, :] = y1.reshape(H, W, cmid_p).astype(cdt)

    # ---- conv2 + BN2 + residual add + ReLU ----
    y2 = conv3x3(mid_ref, w2_ref, cmid_p, cout_p)
    y2 = y2 * s2_ref[...] + b2_ref[...]
    # identity (cin == cout, stride 1); pad channels of x are zero, so padded
    # output channels remain exactly zero.
    y2 = y2 + x_ref[0].reshape(H * W, cin_p).astype(f32)
    o_ref[0] = jnp.maximum(y2, 0.0).reshape(H, W, cout_p).astype(o_ref.dtype)


# ----------------------------------------------------------------------------
# Wrappers
# ----------------------------------------------------------------------------
_LANE = 128


def _round_up(x, m):
    return (x + m - 1) // m * m


def _fold_bn(gamma, beta, mean, var, eps=1e-5):
    scale = gamma / jnp.sqrt(var + eps)
    bias = beta - mean * scale
    return scale, bias


def _prep_conv_weight(w_oihw, cin_p, cout_p, dtype):
    # OIHW -> (kh, kw, cin, cout) -> zero-pad channels -> (9, cin_p, cout_p).
    cout, cin = w_oihw.shape[0], w_oihw.shape[1]
    w = jnp.transpose(w_oihw, (2, 3, 1, 0))
    w = jnp.pad(w, ((0, 0), (0, 0), (0, cin_p - cin), (0, cout_p - cout)))
    return w.reshape(9, cin_p, cout_p).astype(dtype)


def _pad_bn_vec(v, c_p):
    return jnp.pad(v, (0, c_p - v.shape[0])).reshape(1, c_p).astype(jnp.float32)


@functools.partial(jax.jit, static_argnames=("compute_dtype",))
def basic_block_forward_nhwc(x_nhwc, params, compute_dtype=jnp.bfloat16):
    N, H, W, cin = x_nhwc.shape
    cmid = params["conv1_w"].shape[0]
    cout = params["conv2_w"].shape[0]
    # downsample=None / stride=1 => residual shapes must match.
    assert cin == cout, "BasicBlock with downsample=None requires cin == cout"
    assert W % 8 == 0, "W must be a multiple of 8 for layout-preserving reshapes"

    cin_p = _round_up(cin, _LANE)
    cmid_p = _round_up(cmid, _LANE)
    cout_p = _round_up(cout, _LANE)

    w1 = _prep_conv_weight(params["conv1_w"], cin_p, cmid_p, compute_dtype)
    w2 = _prep_conv_weight(params["conv2_w"], cmid_p, cout_p, compute_dtype)
    s1, b1 = _fold_bn(params["bn1_gamma"], params["bn1_beta"],
                      params["bn1_mean"], params["bn1_var"])
    s2, b2 = _fold_bn(params["bn2_gamma"], params["bn2_beta"],
                      params["bn2_mean"], params["bn2_var"])
    s1p, b1p = _pad_bn_vec(s1, cmid_p), _pad_bn_vec(b1, cmid_p)
    s2p, b2p = _pad_bn_vec(s2, cout_p), _pad_bn_vec(b2, cout_p)

    # Channel-last, lane-padded input slab (zero pad channels feed both the
    # conv reads and the residual add of the padded output channels).
    xp = jnp.pad(x_nhwc, ((0, 0), (0, 0), (0, 0), (0, cin_p - cin)))
    xp = xp.astype(compute_dtype)

    kernel = functools.partial(_fused_basic_block_kernel,
                               H=H, W=W, cin_p=cin_p, cmid_p=cmid_p,
                               cout_p=cout_p)

    out = pl.pallas_call(
        kernel,
        out_shape=jax.ShapeDtypeStruct((N, H, W, cout_p), compute_dtype),
        grid=(N,),
        in_specs=[
            pl.BlockSpec((1, H, W, cin_p), lambda n: (n, 0, 0, 0)),
            pl.BlockSpec((9, cin_p, cmid_p), lambda n: (0, 0, 0)),
            pl.BlockSpec((1, cmid_p), lambda n: (0, 0)),
            pl.BlockSpec((1, cmid_p), lambda n: (0, 0)),
            pl.BlockSpec((9, cmid_p, cout_p), lambda n: (0, 0, 0)),
            pl.BlockSpec((1, cout_p), lambda n: (0, 0)),
            pl.BlockSpec((1, cout_p), lambda n: (0, 0)),
        ],
        out_specs=pl.BlockSpec((1, H, W, cout_p), lambda n: (n, 0, 0, 0)),
        scratch_shapes=[
            pltpu.VMEM((H + 2, W + 2, cin_p), compute_dtype),
            pltpu.VMEM((H + 2, W + 2, cmid_p), compute_dtype),
        ],
        compiler_params=pltpu.CompilerParams(
            dimension_semantics=("parallel",),
            vmem_limit_bytes=48 * 1024 * 1024,
        ),
    )(xp, w1, s1p, b1p, w2, s2p, b2p)

    return out[..., :cout]


@functools.partial(jax.jit, static_argnames=("compute_dtype",))
def basic_block_forward(x_nchw, params, compute_dtype=jnp.bfloat16):
    # NCHW in / NCHW out, like the PyTorch module.
    x = jnp.transpose(x_nchw, (0, 2, 3, 1))
    out = basic_block_forward_nhwc(x, params, compute_dtype=compute_dtype)
    return jnp.transpose(out, (0, 3, 1, 2))


# ----------------------------------------------------------------------------
# Pure-JAX reference (lax conv) for correctness check
# ----------------------------------------------------------------------------
def _reference(x_nchw, params):
    x = x_nchw.astype(jnp.float32)

    def conv(x, w_oihw):
        return jax.lax.conv_general_dilated(
            x, w_oihw, window_strides=(1, 1), padding=((1, 1), (1, 1)),
            dimension_numbers=("NCHW", "OIHW", "NCHW"))

    def bn(x, g, b, m, v, eps=1e-5):
        g = g.reshape(1, -1, 1, 1); b = b.reshape(1, -1, 1, 1)
        m = m.reshape(1, -1, 1, 1); v = v.reshape(1, -1, 1, 1)
        return (x - m) / jnp.sqrt(v + eps) * g + b

    out = conv(x, params["conv1_w"])
    out = jnp.maximum(bn(out, params["bn1_gamma"], params["bn1_beta"],
                         params["bn1_mean"], params["bn1_var"]), 0.0)
    out = conv(out, params["conv2_w"])
    out = bn(out, params["bn2_gamma"], params["bn2_beta"],
             params["bn2_mean"], params["bn2_var"])
    return jnp.maximum(out + x, 0.0)


# ----------------------------------------------------------------------------
if __name__ == "__main__":
    key = jax.random.PRNGKey(0)
    N, C, H, W = 2, 4, 16, 16          # inplanes = planes = 4, stride = 1
    ks = jax.random.split(key, 10)

    x = jax.random.normal(ks[0], (N, C, H, W), jnp.float32)
    params = {
        "conv1_w": 0.1 * jax.random.normal(ks[1], (C, C, 3, 3), jnp.float32),
        "conv2_w": 0.1 * jax.random.normal(ks[2], (C, C, 3, 3), jnp.float32),
        "bn1_gamma": 1.0 + 0.1 * jax.random.normal(ks[3], (C,), jnp.float32),
        "bn1_beta": 0.1 * jax.random.normal(ks[4], (C,), jnp.float32),
        "bn1_mean": 0.05 * jax.random.normal(ks[5], (C,), jnp.float32),
        "bn1_var": jnp.abs(1.0 + 0.1 * jax.random.normal(ks[6], (C,), jnp.float32)),
        "bn2_gamma": 1.0 + 0.1 * jax.random.normal(ks[7], (C,), jnp.float32),
        "bn2_beta": 0.1 * jax.random.normal(ks[8], (C,), jnp.float32),
        "bn2_mean": 0.05 * jax.random.normal(ks[9], (C,), jnp.float32),
        "bn2_var": jnp.abs(1.0 + 0.1 * jax.random.normal(ks[6], (C,), jnp.float32)),
    }

    ref = jax.block_until_ready(_reference(x, params))

    # f32 MXU path: tight tolerance.
    out_f32 = jax.block_until_ready(
        basic_block_forward(x, params, compute_dtype=jnp.float32))
    assert out_f32.shape == (N, C, H, W), out_f32.shape
    assert jnp.allclose(out_f32, ref, atol=1e-4, rtol=1e-4), (
        float(jnp.max(jnp.abs(out_f32 - ref))))

    # Default path: bf16 MXU operands, f32 accumulate/epilogue, bf16 output.
    out_bf16 = jax.block_until_ready(basic_block_forward(x, params))
    assert out_bf16.shape == (N, C, H, W), out_bf16.shape
    assert jnp.allclose(out_bf16.astype(jnp.float32), ref,
                        atol=1e-1, rtol=1e-1), (
        float(jnp.max(jnp.abs(out_bf16.astype(jnp.float32) - ref))))

    print("KERNEL_OK")
</pallas_src>

<mosaic_0001>
module attributes {stable_mosaic.version = 11 : i64} {
  func.func @_fused_basic_block_kernel(%arg0: i32, %arg1: memref<1x16x16x128xf32, #tpu.memory_space<vmem>>, %arg2: memref<9x128x128xf32, #tpu.memory_space<vmem>>, %arg3: memref<1x128xf32, #tpu.memory_space<vmem>>, %arg4: memref<1x128xf32, #tpu.memory_space<vmem>>, %arg5: memref<9x128x128xf32, #tpu.memory_space<vmem>>, %arg6: memref<1x128xf32, #tpu.memory_space<vmem>>, %arg7: memref<1x128xf32, #tpu.memory_space<vmem>>, %arg8: memref<1x16x16x128xf32, #tpu.memory_space<vmem>>, %arg9: memref<18x18x128xf32, #tpu.memory_space<vmem>>, %arg10: memref<18x18x128xf32, #tpu.memory_space<vmem>>) attributes {dimension_semantics = [#tpu.dimension_semantics<parallel>], iteration_bounds = array<i64: 2>, scalar_prefetch = 0 : i64, scratch_operands = 2 : i64, tpu.core_type = #tpu.core_type<tc>, window_params = [{transform_indices = @transform_0, window_bounds = array<i64: 1, 16, 16, 128>}, {pipeline_mode = #tpu.pipeline_mode<synchronous>, transform_indices = @transform_1, window_bounds = array<i64: 9, 128, 128>}, {pipeline_mode = #tpu.pipeline_mode<synchronous>, transform_indices = @transform_2, window_bounds = array<i64: 1, 128>}, {pipeline_mode = #tpu.pipeline_mode<synchronous>, transform_indices = @transform_3, window_bounds = array<i64: 1, 128>}, {pipeline_mode = #tpu.pipeline_mode<synchronous>, transform_indices = @transform_4, window_bounds = array<i64: 9, 128, 128>}, {pipeline_mode = #tpu.pipeline_mode<synchronous>, transform_indices = @transform_5, window_bounds = array<i64: 1, 128>}, {pipeline_mode = #tpu.pipeline_mode<synchronous>, transform_indices = @transform_6, window_bounds = array<i64: 1, 128>}, {transform_indices = @transform_7, window_bounds = array<i64: 1, 16, 16, 128>}]} {
    %cst = arith.constant 0.000000e+00 : f32
    %0 = vector.broadcast %cst : f32 to vector<18x128xf32>
    %c0 = arith.constant 0 : index
    %c0_0 = arith.constant 0 : index
    %c0_1 = arith.constant 0 : index
    %1 = vector.load %arg9[%c0, %c0_0, %c0_1] : memref<18x18x128xf32, #tpu.memory_space<vmem>>, vector<1x18x128xf32>
    %2 = vector.shape_cast %1 : vector<1x18x128xf32> to vector<18x128xf32>
    %3 = vector.shape_cast %0 : vector<18x128xf32> to vector<1x18x128xf32>
    tpu.vector_store %arg9[%c0, %c0_0, %c0_1], %3 {strides = array<i32>} : memref<18x18x128xf32, #tpu.memory_space<vmem>>, vector<1x18x128xf32>,
    %cst_2 = arith.constant 0.000000e+00 : f32
    %4 = vector.broadcast %cst_2 : f32 to vector<18x128xf32>
    %c17 = arith.constant 17 : index
    %c0_3 = arith.constant 0 : index
    %c0_4 = arith.constant 0 : index
    %5 = vector.load %arg9[%c17, %c0_3, %c0_4] : memref<18x18x128xf32, #tpu.memory_space<vmem>>, vector<1x18x128xf32>
    %6 = vector.shape_cast %5 : vector<1x18x128xf32> to vector<18x128xf32>
    %7 = vector.shape_cast %4 : vector<18x128xf32> to vector<1x18x128xf32>
    tpu.vector_store %arg9[%c17, %c0_3, %c0_4], %7 {strides = array<i32>} : memref<18x18x128xf32, #tpu.memory_space<vmem>>, vector<1x18x128xf32>,
    %cst_5 = arith.constant 0.000000e+00 : f32
    %8 = vector.broadcast %cst_5 : f32 to vector<16x1x128xf32>
    %c1 = arith.constant 1 : index
    %c0_6 = arith.constant 0 : index
    %c0_7 = arith.constant 0 : index
    %9 = vector.load %arg9[%c1, %c0_6, %c0_7] : memref<18x18x128xf32, #tpu.memory_space<vmem>>, vector<16x1x128xf32>
    tpu.vector_store %arg9[%c1, %c0_6, %c0_7], %8 {strides = array<i32>} : memref<18x18x128xf32, #tpu.memory_space<vmem>>, vector<16x1x128xf32>,
    %cst_8 = arith.constant 0.000000e+00 : f32
    %10 = vector.broadcast %cst_8 : f32 to vector<16x1x128xf32>
    %c1_9 = arith.constant 1 : index
    %c17_10 = arith.constant 17 : index
    %c0_11 = arith.constant 0 : index
    %11 = vector.load %arg9[%c1_9, %c17_10, %c0_11] : memref<18x18x128xf32, #tpu.memory_space<vmem>>, vector<16x1x128xf32>
    tpu.vector_store %arg9[%c1_9, %c17_10, %c0_11], %10 {strides = array<i32>} : memref<18x18x128xf32, #tpu.memory_space<vmem>>, vector<16x1x128xf32>,
    %cst_12 = arith.constant 0.000000e+00 : f32
    %12 = vector.broadcast %cst_12 : f32 to vector<18x128xf32>
    %c0_13 = arith.constant 0 : index
    %c0_14 = arith.constant 0 : index
    %c0_15 = arith.constant 0 : index
    %13 = vector.load %arg10[%c0_13, %c0_14, %c0_15] : memref<18x18x128xf32, #tpu.memory_space<vmem>>, vector<1x18x128xf32>
    %14 = vector.shape_cast %13 : vector<1x18x128xf32> to vector<18x128xf32>
    %15 = vector.shape_cast %12 : vector<18x128xf32> to vector<1x18x128xf32>
    tpu.vector_store %arg10[%c0_13, %c0_14, %c0_15], %15 {strides = array<i32>} : memref<18x18x128xf32, #tpu.memory_space<vmem>>, vector<1x18x128xf32>,
    %cst_16 = arith.constant 0.000000e+00 : f32
    %16 = vector.broadcast %cst_16 : f32 to vector<18x128xf32>
    %c17_17 = arith.constant 17 : index
    %c0_18 = arith.constant 0 : index
    %c0_19 = arith.constant 0 : index
    %17 = vector.load %arg10[%c17_17, %c0_18, %c0_19] : memref<18x18x128xf32, #tpu.memory_space<vmem>>, vector<1x18x128xf32>
    %18 = vector.shape_cast %17 : vector<1x18x128xf32> to vector<18x128xf32>
    %19 = vector.shape_cast %16 : vector<18x128xf32> to vector<1x18x128xf32>
    tpu.vector_store %arg10[%c17_17, %c0_18, %c0_19], %19 {strides = array<i32>} : memref<18x18x128xf32, #tpu.memory_space<vmem>>, vector<1x18x128xf32>,
    %cst_20 = arith.constant 0.000000e+00 : f32
    %20 = vector.broadcast %cst_20 : f32 to vector<16x1x128xf32>
    %c1_21 = arith.constant 1 : index
    %c0_22 = arith.constant 0 : index
    %c0_23 = arith.constant 0 : index
    %21 = vector.load %arg10[%c1_21, %c0_22, %c0_23] : memref<18x18x128xf32, #tpu.memory_space<vmem>>, vector<16x1x128xf32>
    tpu.vector_store %arg10[%c1_21, %c0_22, %c0_23], %20 {strides = array<i32>} : memref<18x18x128xf32, #tpu.memory_space<vmem>>, vector<16x1x128xf32>,
    %cst_24 = arith.constant 0.000000e+00 : f32
    %22 = vector.broadcast %cst_24 : f32 to vector<16x1x128xf32>
    %c1_25 = arith.constant 1 : index
    %c17_26 = arith.constant 17 : index
    %c0_27 = arith.constant 0 : index
    %23 = vector.load %arg10[%c1_25, %c17_26, %c0_27] : memref<18x18x128xf32, #tpu.memory_space<vmem>>, vector<16x1x128xf32>
    tpu.vector_store %arg10[%c1_25, %c17_26, %c0_27], %22 {strides = array<i32>} : memref<18x18x128xf32, #tpu.memory_space<vmem>>, vector<16x1x128xf32>,
    %c0_28 = arith.constant 0 : index
    %c0_29 = arith.constant 0 : index
    %c0_30 = arith.constant 0 : index
    %c0_31 = arith.constant 0 : index
    %24 = vector.load %arg1[%c0_28, %c0_29, %c0_30, %c0_31] : memref<1x16x16x128xf32, #tpu.memory_space<vmem>>, vector<1x16x16x128xf32>
    %25 = vector.shape_cast %24 : vector<1x16x16x128xf32> to vector<16x16x128xf32>
    %c1_32 = arith.constant 1 : index
    %c1_33 = arith.constant 1 : index
    %c0_34 = arith.constant 0 : index
    %26 = vector.load %arg9[%c1_32, %c1_33, %c0_34] : memref<18x18x128xf32, #tpu.memory_space<vmem>>, vector<16x16x128xf32>
    tpu.vector_store %arg9[%c1_32, %c1_33, %c0_34], %25 {strides = array<i32>} : memref<18x18x128xf32, #tpu.memory_space<vmem>>, vector<16x16x128xf32>,
    %cst_35 = arith.constant 0.000000e+00 : f32
    %27 = vector.broadcast %cst_35 : f32 to vector<256x128xf32>
    %c0_36 = arith.constant 0 : index
    %c0_37 = arith.constant 0 : index
    %c0_38 = arith.constant 0 : index
    %28 = vector.load %arg9[%c0_36, %c0_37, %c0_38] : memref<18x18x128xf32, #tpu.memory_space<vmem>>, vector<16x16x128xf32>
    %29 = vector.shape_cast %28 : vector<16x16x128xf32> to vector<256x128xf32>
    %c0_39 = arith.constant 0 : index
    %c0_40 = arith.constant 0 : index
    %c0_41 = arith.constant 0 : index
    %30 = vector.load %arg2[%c0_39, %c0_40, %c0_41] : memref<9x128x128xf32, #tpu.memory_space<vmem>>, vector<1x128x128xf32>
    %31 = vector.shape_cast %30 : vector<1x128x128xf32> to vector<128x128xf32>
    %cst_42 = arith.constant dense<0.000000e+00> : vector<256x128xf32>
    %32 = tpu.matmul %29, %31, %cst_42 {dimension_numbers = #tpu.dot_dimension_numbers<[1], [0], [0], [1], [0, 0, 1, 1], [], []>} : vector<256x128xf32>, vector<128x128xf32>, vector<256x128xf32> -> vector<256x128xf32>
    %33 = arith.addf %27, %32 : vector<256x128xf32>
    %c0_43 = arith.constant 0 : index
    %c1_44 = arith.constant 1 : index
    %c0_45 = arith.constant 0 : index
    %34 = vector.load %arg9[%c0_43, %c1_44, %c0_45] : memref<18x18x128xf32, #tpu.memory_space<vmem>>, vector<16x16x128xf32>
    %35 = vector.shape_cast %34 : vector<16x16x128xf32> to vector<256x128xf32>
    %c1_46 = arith.constant 1 : index
    %c0_47 = arith.constant 0 : index
    %c0_48 = arith.constant 0 : index
    %36 = vector.load %arg2[%c1_46, %c0_47, %c0_48] : memref<9x128x128xf32, #tpu.memory_space<vmem>>, vector<1x128x128xf32>
    %37 = vector.shape_cast %36 : vector<1x128x128xf32> to vector<128x128xf32>
    %cst_49 = arith.constant dense<0.000000e+00> : vector<256x128xf32>
    %38 = tpu.matmul %35, %37, %cst_49 {dimension_numbers = #tpu.dot_dimension_numbers<[1], [0], [0], [1], [0, 0, 1, 1], [], []>} : vector<256x128xf32>, vector<128x128xf32>, vector<256x128xf32> -> vector<256x128xf32>
    %39 = arith.addf %33, %38 : vector<256x128xf32>
    %c0_50 = arith.constant 0 : index
    %c2 = arith.constant 2 : index
    %c0_51 = arith.constant 0 : index
    %40 = vector.load %arg9[%c0_50, %c2, %c0_51] : memref<18x18x128xf32, #tpu.memory_space<vmem>>, vector<16x16x128xf32>
    %41 = vector.shape_cast %40 : vector<16x16x128xf32> to vector<256x128xf32>
    %c2_52 = arith.constant 2 : index
    %c0_53 = arith.constant 0 : index
    %c0_54 = arith.constant 0 : index
    %42 = vector.load %arg2[%c2_52, %c0_53, %c0_54] : memref<9x128x128xf32, #tpu.memory_space<vmem>>, vector<1x128x128xf32>
    %43 = vector.shape_cast %42 : vector<1x128x128xf32> to vector<128x128xf32>
    %cst_55 = arith.constant dense<0.000000e+00> : vector<256x128xf32>
    %44 = tpu.matmul %41, %43, %cst_55 {dimension_numbers = #tpu.dot_dimension_numbers<[1], [0], [0], [1], [0, 0, 1, 1], [], []>} : vector<256x128xf32>, vector<128x128xf32>, vector<256x128xf32> -> vector<256x128xf32>
    %45 = arith.addf %39, %44 : vector<256x128xf32>
    %c1_56 = arith.constant 1 : index
    %c0_57 = arith.constant 0 : index
    %c0_58 = arith.constant 0 : index
    %46 = vector.load %arg9[%c1_56, %c0_57, %c0_58] : memref<18x18x128xf32, #tpu.memory_space<vmem>>, vector<16x16x128xf32>
    %47 = vector.shape_cast %46 : vector<16x16x128xf32> to vector<256x128xf32>
    %c3 = arith.constant 3 : index
    %c0_59 = arith.constant 0 : index
    %c0_60 = arith.constant 0 : index
    %48 = vector.load %arg2[%c3, %c0_59, %c0_60] : memref<9x128x128xf32, #tpu.memory_space<vmem>>, vector<1x128x128xf32>
    %49 = vector.shape_cast %48 : vector<1x128x128xf32> to vector<128x128xf32>
    %cst_61 = arith.constant dense<0.000000e+00> : vector<256x128xf32>
    %50 = tpu.matmul %47, %49, %cst_61 {dimension_numbers = #tpu.dot_dimension_numbers<[1], [0], [0], [1], [0, 0, 1, 1], [], []>} : vector<256x128xf32>, vector<128x128xf32>, vector<256x128xf32> -> vector<256x128xf32>
    %51 = arith.addf %45, %50 : vector<256x128xf32>
    %c1_62 = arith.constant 1 : index
    %c1_63 = arith.constant 1 : index
    %c0_64 = arith.constant 0 : index
    %52 = vector.load %arg9[%c1_62, %c1_63, %c0_64] : memref<18x18x128xf32, #tpu.memory_space<vmem>>, vector<16x16x128xf32>
    %53 = vector.shape_cast %52 : vector<16x16x128xf32> to vector<256x128xf32>
    %c4 = arith.constant 4 : index
    %c0_65 = arith.constant 0 : index
    %c0_66 = arith.constant 0 : index
    %54 = vector.load %arg2[%c4, %c0_65, %c0_66] : memref<9x128x128xf32, #tpu.memory_space<vmem>>, vector<1x128x128xf32>
    %55 = vector.shape_cast %54 : vector<1x128x128xf32> to vector<128x128xf32>
    %cst_67 = arith.constant dense<0.000000e+00> : vector<256x128xf32>
    %56 = tpu.matmul %53, %55, %cst_67 {dimension_numbers = #tpu.dot_dimension_numbers<[1], [0], [0], [1], [0, 0, 1, 1], [], []>} : vector<256x128xf32>, vector<128x128xf32>, vector<256x128xf32> -> vector<256x128xf32>
    %57 = arith.addf %51, %56 : vector<256x128xf32>
    %c1_68 = arith.constant 1 : index
    %c2_69 = arith.constant 2 : index
    %c0_70 = arith.constant 0 : index
    %58 = vector.load %arg9[%c1_68, %c2_69, %c0_70] : memref<18x18x128xf32, #tpu.memory_space<vmem>>, vector<16x16x128xf32>
    %59 = vector.shape_cast %58 : vector<16x16x128xf32> to vector<256x128xf32>
    %c5 = arith.constant 5 : index
    %c0_71 = arith.constant 0 : index
    %c0_72 = arith.constant 0 : index
    %60 = vector.load %arg2[%c5, %c0_71, %c0_72] : memref<9x128x128xf32, #tpu.memory_space<vmem>>, vector<1x128x128xf32>
    %61 = vector.shape_cast %60 : vector<1x128x128xf32> to vector<128x128xf32>
    %cst_73 = arith.constant dense<0.000000e+00> : vector<256x128xf32>
    %62 = tpu.matmul %59, %61, %cst_73 {dimension_numbers = #tpu.dot_dimension_numbers<[1], [0], [0], [1], [0, 0, 1, 1], [], []>} : vector<256x128xf32>, vector<128x128xf32>, vector<256x128xf32> -> vector<256x128xf32>
    %63 = arith.addf %57, %62 : vector<256x128xf32>
    %c2_74 = arith.constant 2 : index
    %c0_75 = arith.constant 0 : index
    %c0_76 = arith.constant 0 : index
    %64 = vector.load %arg9[%c2_74, %c0_75, %c0_76] : memref<18x18x128xf32, #tpu.memory_space<vmem>>, vector<16x16x128xf32>
    %65 = vector.shape_cast %64 : vector<16x16x128xf32> to vector<256x128xf32>
    %c6 = arith.constant 6 : index
    %c0_77 = arith.constant 0 : index
    %c0_78 = arith.constant 0 : index
    %66 = vector.load %arg2[%c6, %c0_77, %c0_78] : memref<9x128x128xf32, #tpu.memory_space<vmem>>, vector<1x128x128xf32>
    %67 = vector.shape_cast %66 : vector<1x128x128xf32> to vector<128x128xf32>
    %cst_79 = arith.constant dense<0.000000e+00> : vector<256x128xf32>
    %68 = tpu.matmul %65, %67, %cst_79 {dimension_numbers = #tpu.dot_dimension_numbers<[1], [0], [0], [1], [0, 0, 1, 1], [], []>} : vector<256x128xf32>, vector<128x128xf32>, vector<256x128xf32> -> vector<256x128xf32>
    %69 = arith.addf %63, %68 : vector<256x128xf32>
    %c2_80 = arith.constant 2 : index
    %c1_81 = arith.constant 1 : index
    %c0_82 = arith.constant 0 : index
    %70 = vector.load %arg9[%c2_80, %c1_81, %c0_82] : memref<18x18x128xf32, #tpu.memory_space<vmem>>, vector<16x16x128xf32>
    %71 = vector.shape_cast %70 : vector<16x16x128xf32> to vector<256x128xf32>
    %c7 = arith.constant 7 : index
    %c0_83 = arith.constant 0 : index
    %c0_84 = arith.constant 0 : index
    %72 = vector.load %arg2[%c7, %c0_83, %c0_84] : memref<9x128x128xf32, #tpu.memory_space<vmem>>, vector<1x128x128xf32>
    %73 = vector.shape_cast %72 : vector<1x128x128xf32> to vector<128x128xf32>
    %cst_85 = arith.constant dense<0.000000e+00> : vector<256x128xf32>
    %74 = tpu.matmul %71, %73, %cst_85 {dimension_numbers = #tpu.dot_dimension_numbers<[1], [0], [0], [1], [0, 0, 1, 1], [], []>} : vector<256x128xf32>, vector<128x128xf32>, vector<256x128xf32> -> vector<256x128xf32>
    %75 = arith.addf %69, %74 : vector<256x128xf32>
    %c2_86 = arith.constant 2 : index
    %c2_87 = arith.constant 2 : index
    %c0_88 = arith.constant 0 : index
    %76 = vector.load %arg9[%c2_86, %c2_87, %c0_88] : memref<18x18x128xf32, #tpu.memory_space<vmem>>, vector<16x16x128xf32>
    %77 = vector.shape_cast %76 : vector<16x16x128xf32> to vector<256x128xf32>
    %c8 = arith.constant 8 : index
    %c0_89 = arith.constant 0 : index
    %c0_90 = arith.constant 0 : index
    %78 = vector.load %arg2[%c8, %c0_89, %c0_90] : memref<9x128x128xf32, #tpu.memory_space<vmem>>, vector<1x128x128xf32>
    %79 = vector.shape_cast %78 : vector<1x128x128xf32> to vector<128x128xf32>
    %cst_91 = arith.constant dense<0.000000e+00> : vector<256x128xf32>
    %80 = tpu.matmul %77, %79, %cst_91 {dimension_numbers = #tpu.dot_dimension_numbers<[1], [0], [0], [1], [0, 0, 1, 1], [], []>} : vector<256x128xf32>, vector<128x128xf32>, vector<256x128xf32> -> vector<256x128xf32>
    %81 = arith.addf %75, %80 : vector<256x128xf32>
    %c0_92 = arith.constant 0 : index
    %c0_93 = arith.constant 0 : index
    %82 = vector.load %arg3[%c0_92, %c0_93] : memref<1x128xf32, #tpu.memory_space<vmem>>, vector<1x128xf32>
    %83 = vector.broadcast %82 : vector<1x128xf32> to vector<256x128xf32>
    %84 = arith.mulf %81, %83 : vector<256x128xf32>
    %c0_94 = arith.constant 0 : index
    %c0_95 = arith.constant 0 : index
    %85 = vector.load %arg4[%c0_94, %c0_95] : memref<1x128xf32, #tpu.memory_space<vmem>>, vector<1x128xf32>
    %86 = vector.broadcast %85 : vector<1x128xf32> to vector<256x128xf32>
    %87 = arith.addf %84, %86 : vector<256x128xf32>
    %cst_96 = arith.constant 0.000000e+00 : f32
    %88 = vector.broadcast %cst_96 : f32 to vector<256x128xf32>
    %89 = arith.maximumf %87, %88 : vector<256x128xf32>
    %90 = vector.shape_cast %89 : vector<256x128xf32> to vector<16x16x128xf32>
    %c1_97 = arith.constant 1 : index
    %c1_98 = arith.constant 1 : index
    %c0_99 = arith.constant 0 : index
    %91 = vector.load %arg10[%c1_97, %c1_98, %c0_99] : memref<18x18x128xf32, #tpu.memory_space<vmem>>, vector<16x16x128xf32>
    tpu.vector_store %arg10[%c1_97, %c1_98, %c0_99], %90 {strides = array<i32>} : memref<18x18x128xf32, #tpu.memory_space<vmem>>, vector<16x16x128xf32>,
    %cst_100 = arith.constant 0.000000e+00 : f32
    %92 = vector.broadcast %cst_100 : f32 to vector<256x128xf32>
    %c0_101 = arith.constant 0 : index
    %c0_102 = arith.constant 0 : index
    %c0_103 = arith.constant 0 : index
    %93 = vector.load %arg10[%c0_101, %c0_102, %c0_103] : memref<18x18x128xf32, #tpu.memory_space<vmem>>, vector<16x16x128xf32>
    %94 = vector.shape_cast %93 : vector<16x16x128xf32> to vector<256x128xf32>
    %c0_104 = arith.constant 0 : index
    %c0_105 = arith.constant 0 : index
    %c0_106 = arith.constant 0 : index
    %95 = vector.load %arg5[%c0_104, %c0_105, %c0_106] : memref<9x128x128xf32, #tpu.memory_space<vmem>>, vector<1x128x128xf32>
    %96 = vector.shape_cast %95 : vector<1x128x128xf32> to vector<128x128xf32>
    %cst_107 = arith.constant dense<0.000000e+00> : vector<256x128xf32>
    %97 = tpu.matmul %94, %96, %cst_107 {dimension_numbers = #tpu.dot_dimension_numbers<[1], [0], [0], [1], [0, 0, 1, 1], [], []>} : vector<256x128xf32>, vector<128x128xf32>, vector<256x128xf32> -> vector<256x128xf32>
    %98 = arith.addf %92, %97 : vector<256x128xf32>
    %c0_108 = arith.constant 0 : index
    %c1_109 = arith.constant 1 : index
    %c0_110 = arith.constant 0 : index
    %99 = vector.load %arg10[%c0_108, %c1_109, %c0_110] : memref<18x18x128xf32, #tpu.memory_space<vmem>>, vector<16x16x128xf32>
    %100 = vector.shape_cast %99 : vector<16x16x128xf32> to vector<256x128xf32>
    %c1_111 = arith.constant 1 : index
    %c0_112 = arith.constant 0 : index
    %c0_113 = arith.constant 0 : index
    %101 = vector.load %arg5[%c1_111, %c0_112, %c0_113] : memref<9x128x128xf32, #tpu.memory_space<vmem>>, vector<1x128x128xf32>
    %102 = vector.shape_cast %101 : vector<1x128x128xf32> to vector<128x128xf32>
    %cst_114 = arith.constant dense<0.000000e+00> : vector<256x128xf32>
    %103 = tpu.matmul %100, %102, %cst_114 {dimension_numbers = #tpu.dot_dimension_numbers<[1], [0], [0], [1], [0, 0, 1, 1], [], []>} : vector<256x128xf32>, vector<128x128xf32>, vector<256x128xf32> -> vector<256x128xf32>
    %104 = arith.addf %98, %103 : vector<256x128xf32>
    %c0_115 = arith.constant 0 : index
    %c2_116 = arith.constant 2 : index
    %c0_117 = arith.constant 0 : index
    %105 = vector.load %arg10[%c0_115, %c2_116, %c0_117] : memref<18x18x128xf32, #tpu.memory_space<vmem>>, vector<16x16x128xf32>
    %106 = vector.shape_cast %105 : vector<16x16x128xf32> to vector<256x128xf32>
    %c2_118 = arith.constant 2 : index
    %c0_119 = arith.constant 0 : index
    %c0_120 = arith.constant 0 : index
    %107 = vector.load %arg5[%c2_118, %c0_119, %c0_120] : memref<9x128x128xf32, #tpu.memory_space<vmem>>, vector<1x128x128xf32>
    %108 = vector.shape_cast %107 : vector<1x128x128xf32> to vector<128x128xf32>
    %cst_121 = arith.constant dense<0.000000e+00> : vector<256x128xf32>
    %109 = tpu.matmul %106, %108, %cst_121 {dimension_numbers = #tpu.dot_dimension_numbers<[1], [0], [0], [1], [0, 0, 1, 1], [], []>} : vector<256x128xf32>, vector<128x128xf32>, vector<256x128xf32> -> vector<256x128xf32>
    %110 = arith.addf %104, %109 : vector<256x128xf32>
    %c1_122 = arith.constant 1 : index
    %c0_123 = arith.constant 0 : index
    %c0_124 = arith.constant 0 : index
    %111 = vector.load %arg10[%c1_122, %c0_123, %c0_124] : memref<18x18x128xf32, #tpu.memory_space<vmem>>, vector<16x16x128xf32>
    %112 = vector.shape_cast %111 : vector<16x16x128xf32> to vector<256x128xf32>
    %c3_125 = arith.constant 3 : index
    %c0_126 = arith.constant 0 : index
    %c0_127 = arith.constant 0 : index
    %113 = vector.load %arg5[%c3_125, %c0_126, %c0_127] : memref<9x128x128xf32, #tpu.memory_space<vmem>>, vector<1x128x128xf32>
    %114 = vector.shape_cast %113 : vector<1x128x128xf32> to vector<128x128xf32>
    %cst_128 = arith.constant dense<0.000000e+00> : vector<256x128xf32>
    %115 = tpu.matmul %112, %114, %cst_128 {dimension_numbers = #tpu.dot_dimension_numbers<[1], [0], [0], [1], [0, 0, 1, 1], [], []>} : vector<256x128xf32>, vector<128x128xf32>, vector<256x128xf32> -> vector<256x128xf32>
    %116 = arith.addf %110, %115 : vector<256x128xf32>
    %c1_129 = arith.constant 1 : index
    %c1_130 = arith.constant 1 : index
    %c0_131 = arith.constant 0 : index
    %117 = vector.load %arg10[%c1_129, %c1_130, %c0_131] : memref<18x18x128xf32, #tpu.memory_space<vmem>>, vector<16x16x128xf32>
    %118 = vector.shape_cast %117 : vector<16x16x128xf32> to vector<256x128xf32>
    %c4_132 = arith.constant 4 : index
    %c0_133 = arith.constant 0 : index
    %c0_134 = arith.constant 0 : index
    %119 = vector.load %arg5[%c4_132, %c0_133, %c0_134] : memref<9x128x128xf32, #tpu.memory_space<vmem>>, vector<1x128x128xf32>
    %120 = vector.shape_cast %119 : vector<1x128x128xf32> to vector<128x128xf32>
    %cst_135 = arith.constant dense<0.000000e+00> : vector<256x128xf32>
    %121 = tpu.matmul %118, %120, %cst_135 {dimension_numbers = #tpu.dot_dimension_numbers<[1], [0], [0], [1], [0, 0, 1, 1], [], []>} : vector<256x128xf32>, vector<128x128xf32>, vector<256x128xf32> -> vector<256x128xf32>
    %122 = arith.addf %116, %121 : vector<256x128xf32>
    %c1_136 = arith.constant 1 : index
    %c2_137 = arith.constant 2 : index
    %c0_138 = arith.constant 0 : index
    %123 = vector.load %arg10[%c1_136, %c2_137, %c0_138] : memref<18x18x128xf32, #tpu.memory_space<vmem>>, vector<16x16x128xf32>
    %124 = vector.shape_cast %123 : vector<16x16x128xf32> to vector<256x128xf32>
    %c5_139 = arith.constant 5 : index
    %c0_140 = arith.constant 0 : index
    %c0_141 = arith.constant 0 : index
    %125 = vector.load %arg5[%c5_139, %c0_140, %c0_141] : memref<9x128x128xf32, #tpu.memory_space<vmem>>, vector<1x128x128xf32>
    %126 = vector.shape_cast %125 : vector<1x128x128xf32> to vector<128x128xf32>
    %cst_142 = arith.constant dense<0.000000e+00> : vector<256x128xf32>
    %127 = tpu.matmul %124, %126, %cst_142 {dimension_numbers = #tpu.dot_dimension_numbers<[1], [0], [0], [1], [0, 0, 1, 1], [], []>} : vector<256x128xf32>, vector<128x128xf32>, vector<256x128xf32> -> vector<256x128xf32>
    %128 = arith.addf %122, %127 : vector<256x128xf32>
    %c2_143 = arith.constant 2 : index
    %c0_144 = arith.constant 0 : index
    %c0_145 = arith.constant 0 : index
    %129 = vector.load %arg10[%c2_143, %c0_144, %c0_145] : memref<18x18x128xf32, #tpu.memory_space<vmem>>, vector<16x16x128xf32>
    %130 = vector.shape_cast %129 : vector<16x16x128xf32> to vector<256x128xf32>
    %c6_146 = arith.constant 6 : index
    %c0_147 = arith.constant 0 : index
    %c0_148 = arith.constant 0 : index
    %131 = vector.load %arg5[%c6_146, %c0_147, %c0_148] : memref<9x128x128xf32, #tpu.memory_space<vmem>>, vector<1x128x128xf32>
    %132 = vector.shape_cast %131 : vector<1x128x128xf32> to vector<128x128xf32>
    %cst_149 = arith.constant dense<0.000000e+00> : vector<256x128xf32>
    %133 = tpu.matmul %130, %132, %cst_149 {dimension_numbers = #tpu.dot_dimension_numbers<[1], [0], [0], [1], [0, 0, 1, 1], [], []>} : vector<256x128xf32>, vector<128x128xf32>, vector<256x128xf32> -> vector<256x128xf32>
    %134 = arith.addf %128, %133 : vector<256x128xf32>
    %c2_150 = arith.constant 2 : index
    %c1_151 = arith.constant 1 : index
    %c0_152 = arith.constant 0 : index
    %135 = vector.load %arg10[%c2_150, %c1_151, %c0_152] : memref<18x18x128xf32, #tpu.memory_space<vmem>>, vector<16x16x128xf32>
    %136 = vector.shape_cast %135 : vector<16x16x128xf32> to vector<256x128xf32>
    %c7_153 = arith.constant 7 : index
    %c0_154 = arith.constant 0 : index
    %c0_155 = arith.constant 0 : index
    %137 = vector.load %arg5[%c7_153, %c0_154, %c0_155] : memref<9x128x128xf32, #tpu.memory_space<vmem>>, vector<1x128x128xf32>
    %138 = vector.shape_cast %137 : vector<1x128x128xf32> to vector<128x128xf32>
    %cst_156 = arith.constant dense<0.000000e+00> : vector<256x128xf32>
    %139 = tpu.matmul %136, %138, %cst_156 {dimension_numbers = #tpu.dot_dimension_numbers<[1], [0], [0], [1], [0, 0, 1, 1], [], []>} : vector<256x128xf32>, vector<128x128xf32>, vector<256x128xf32> -> vector<256x128xf32>
    %140 = arith.addf %134, %139 : vector<256x128xf32>
    %c2_157 = arith.constant 2 : index
    %c2_158 = arith.constant 2 : index
    %c0_159 = arith.constant 0 : index
    %141 = vector.load %arg10[%c2_157, %c2_158, %c0_159] : memref<18x18x128xf32, #tpu.memory_space<vmem>>, vector<16x16x128xf32>
    %142 = vector.shape_cast %141 : vector<16x16x128xf32> to vector<256x128xf32>
    %c8_160 = arith.constant 8 : index
    %c0_161 = arith.constant 0 : index
    %c0_162 = arith.constant 0 : index
    %143 = vector.load %arg5[%c8_160, %c0_161, %c0_162] : memref<9x128x128xf32, #tpu.memory_space<vmem>>, vector<1x128x128xf32>
    %144 = vector.shape_cast %143 : vector<1x128x128xf32> to vector<128x128xf32>
    %cst_163 = arith.constant dense<0.000000e+00> : vector<256x128xf32>
    %145 = tpu.matmul %142, %144, %cst_163 {dimension_numbers = #tpu.dot_dimension_numbers<[1], [0], [0], [1], [0, 0, 1, 1], [], []>} : vector<256x128xf32>, vector<128x128xf32>, vector<256x128xf32> -> vector<256x128xf32>
    %146 = arith.addf %140, %145 : vector<256x128xf32>
    %c0_164 = arith.constant 0 : index
    %c0_165 = arith.constant 0 : index
    %147 = vector.load %arg6[%c0_164, %c0_165] : memref<1x128xf32, #tpu.memory_space<vmem>>, vector<1x128xf32>
    %148 = vector.broadcast %147 : vector<1x128xf32> to vector<256x128xf32>
    %149 = arith.mulf %146, %148 : vector<256x128xf32>
    %c0_166 = arith.constant 0 : index
    %c0_167 = arith.constant 0 : index
    %150 = vector.load %arg7[%c0_166, %c0_167] : memref<1x128xf32, #tpu.memory_space<vmem>>, vector<1x128xf32>
    %151 = vector.broadcast %150 : vector<1x128xf32> to vector<256x128xf32>
    %152 = arith.addf %149, %151 : vector<256x128xf32>
    %c0_168 = arith.constant 0 : index
    %c0_169 = arith.constant 0 : index
    %c0_170 = arith.constant 0 : index
    %c0_171 = arith.constant 0 : index
    %153 = vector.load %arg1[%c0_168, %c0_169, %c0_170, %c0_171] : memref<1x16x16x128xf32, #tpu.memory_space<vmem>>, vector<1x16x16x128xf32>
    %154 = vector.shape_cast %153 : vector<1x16x16x128xf32> to vector<16x16x128xf32>
    %155 = vector.shape_cast %154 : vector<16x16x128xf32> to vector<256x128xf32>
    %156 = arith.addf %152, %155 : vector<256x128xf32>
    %cst_172 = arith.constant 0.000000e+00 : f32
    %157 = vector.broadcast %cst_172 : f32 to vector<256x128xf32>
    %158 = arith.maximumf %156, %157 : vector<256x128xf32>
    %159 = vector.shape_cast %158 : vector<256x128xf32> to vector<16x16x128xf32>
    %c0_173 = arith.constant 0 : index
    %c0_174 = arith.constant 0 : index
    %c0_175 = arith.constant 0 : index
    %c0_176 = arith.constant 0 : index
    %160 = vector.load %arg8[%c0_173, %c0_174, %c0_175, %c0_176] : memref<1x16x16x128xf32, #tpu.memory_space<vmem>>, vector<1x16x16x128xf32>
    %161 = vector.shape_cast %160 : vector<1x16x16x128xf32> to vector<16x16x128xf32>
    %162 = vector.shape_cast %159 : vector<16x16x128xf32> to vector<1x16x16x128xf32>
    tpu.vector_store %arg8[%c0_173, %c0_174, %c0_175, %c0_176], %162 {strides = array<i32>} : memref<1x16x16x128xf32, #tpu.memory_space<vmem>>, vector<1x16x16x128xf32>,
    return
  }
  func.func @transform_0(%arg0: i32) -> (i32, i32, i32, i32) {
    %c0_i32 = arith.constant 0 : i32
    %c0_i32_0 = arith.constant 0 : i32
    %c0_i32_1 = arith.constant 0 : i32
    %c0_i32_2 = arith.constant 0 : i32
    return %arg0, %c0_i32, %c0_i32_0, %c0_i32_1 : i32, i32, i32, i32
  }
  func.func @transform_1(%arg0: i32) -> (i32, i32, i32) {
    %c0_i32 = arith.constant 0 : i32
    %c0_i32_0 = arith.constant 0 : i32
    %c0_i32_1 = arith.constant 0 : i32
    %c0_i32_2 = arith.constant 0 : i32
    return %c0_i32, %c0_i32_0, %c0_i32_1 : i32, i32, i32
  }
  func.func @transform_2(%arg0: i32) -> (i32, i32) {
    %c0_i32 = arith.constant 0 : i32
    %c0_i32_0 = arith.constant 0 : i32
    %c0_i32_1 = arith.constant 0 : i32
    return %c0_i32, %c0_i32_0 : i32, i32
  }
  func.func @transform_3(%arg0: i32) -> (i32, i32) {
    %c0_i32 = arith.constant 0 : i32
    %c0_i32_0 = arith.constant 0 : i32
    %c0_i32_1 = arith.constant 0 : i32
    return %c0_i32, %c0_i32_0 : i32, i32
  }
  func.func @transform_4(%arg0: i32) -> (i32, i32, i32) {
    %c0_i32 = arith.constant 0 : i32
    %c0_i32_0 = arith.constant 0 : i32
    %c0_i32_1 = arith.constant 0 : i32
    %c0_i32_2 = arith.constant 0 : i32
    return %c0_i32, %c0_i32_0, %c0_i32_1 : i32, i32, i32
  }
  func.func @transform_5(%arg0: i32) -> (i32, i32) {
    %c0_i32 = arith.constant 0 : i32
    %c0_i32_0 = arith.constant 0 : i32
    %c0_i32_1 = arith.constant 0 : i32
    return %c0_i32, %c0_i32_0 : i32, i32
  }
  func.func @transform_6(%arg0: i32) -> (i32, i32) {
    %c0_i32 = arith.constant 0 : i32
    %c0_i32_0 = arith.constant 0 : i32
    %c0_i32_1 = arith.constant 0 : i32
    return %c0_i32, %c0_i32_0 : i32, i32
  }
  func.func @transform_7(%arg0: i32) -> (i32, i32, i32, i32) {
    %c0_i32 = arith.constant 0 : i32
    %c0_i32_0 = arith.constant 0 : i32
    %c0_i32_1 = arith.constant 0 : i32
    %c0_i32_2 = arith.constant 0 : i32
    return %arg0, %c0_i32, %c0_i32_0, %c0_i32_1 : i32, i32, i32, i32
  }
}

</mosaic_0001>

<bundles_post_ra>
// kernel: basic_block_forward_nhwc.1
= control target key start
LH: loop header
LB: loop body
LE: loop exit
PB: predicated region body
PF: predicated region fallthrough
CT: control target
= control target key end

     0   :  { %s9933_s24 = smov 0   ;;  %s12043_s0 = inlined_call_operand.vmem [shape: f32[2,16,16,128], index: 0, kind: input, shape index: {}]   ;;  %s12044_s1 = inlined_call_operand.vmem [shape: f32[9,128,128], index: 1, kind: input, shape index: {}]   ;;  %s12045_s2 = inlined_call_operand.vmem [shape: f32[1,128], index: 2, kind: input, shape index: {}]   ;;  %s12046_s3 = inlined_call_operand.vmem [shape: f32[1,128], index: 3, kind: input, shape index: {}]   ;;  %s12047_s4 = inlined_call_operand.vmem [shape: f32[9,128,128], index: 4, kind: input, shape index: {}]   ;;  %s12048_s5 = inlined_call_operand.vmem [shape: f32[1,128], index: 5, kind: input, shape index: {}]   ;;  %s12049_s6 = inlined_call_operand.vmem [shape: f32[1,128], index: 6, kind: input, shape index: {}]   ;;  %s12050_s7 = inlined_call_operand.vmem [shape: f32[2,16,16,128], index: 7, kind: output, shape index: {}]  }
   0x1 LB: > { %s6206_s25 = sadd.s32 4294967295, %s9890_s24   ;;  %p6210_p0 = scmp.ge.s32.totalorder %s9890_s24, 1  ;;  %s9890_s24 = sphi %s9933_s24, %s17_s24  }
   0x2   : > { %p237_p1 = scmp.lt.s32.totalorder %s9890_s24, 3 }
   0x4   : > { %p238_p2 = pnand %p6210_p0, %p237_p1 }
   0x6   : > { %241 = sbr.rel (%p238_p2) target bundleno = 1570 (0x622), region = 48 }
   0xd   : > { %v6215_v0 = vld [vmem:[%s12044_s1 + $0x80] sm:$0xff]  ;;  %v6216_v1 = vld [vmem:[%s12044_s1 + $0x88] sm:$0xff]  ;;  %v9950_v2 = vld [vmem:[%s12044_s1 + $0x90] sm:$0xff]  ;;  %p9954_p3 = scmp.lt.s32.totalorder %s6206_s25, 1  ;;  %v9892_v5 = vmov 0.0  }
   0xe   : > { %v9958_v3 = vpack.c.bf16 %v6216_v1, %v6215_v0  ;;  %v9963_v4 = vld [vmem:[%s12044_s1 + $0x98] sm:$0xff]  ;;  %279 = vst [vmem:[#allocation2] sm:$0xff] %v9892_v5  ;;  %280 = vst [vmem:[#allocation2 + $0x8] sm:$0xff] %v9892_v5  ;;  %v6219_v7 = vld [vmem:[%s12044_s1 + $0xa0] sm:$0xff] }
   0xf   : > { %281 = vst [vmem:[#allocation2 + $0x10] sm:$0x3] %v9892_v5  ;;  %283 = vst [vmem:[#allocation2 + $0x198] sm:$0xff] %v9892_v5  ;;  %v8787_v6 = vpack.c.bf16 %v9963_v4, %v9950_v2  ;;  %v6220_v8 = vld [vmem:[%s12044_s1 + $0xa8] sm:$0xff]  ;;  %s12258_s25 = smov (!%p9954_p3, %s6206_s25), 1  ;;  %v6221_v10 = vld [vmem:[%s12044_s1 + $0xb0] sm:$0xff] }
  0x10   : > { %284 = vst [vmem:[#allocation2 + $0x1a0] sm:$0xff] %v9892_v5  ;;  %285 = vst [vmem:[#allocation2 + $0x1a8] sm:$0x3] %v9892_v5  ;;  %8784 = vmatprep.subr.bf16.mxu0 %v9958_v3  ;;  %s6477_s16 = sshll.u32 %s12258_s25, 8  ;;  %v8791_v9 = vpack.c.bf16 %v6220_v8, %v6219_v7  ;;  %v6222_v11 = vld [vmem:[%s12044_s1 + $0xb8] sm:$0xff]  ;;  %v6223_v22 = vld [vmem:[%s12044_s1 + $0xc0] sm:$0xff] }
  0x11   : > { %287 = vst [vmem:[#allocation2 + $0x18] sm:$0x1] %v9892_v5  ;;  %288 = vst [vmem:[#allocation2 + $0x30] sm:$0x1] %v9892_v5  ;;  %8786 = vmatpush3.bf16.msra.mxu0 %v9958_v3  ;;  %s10069_s23 = scalar_lea.vmem %s12043_s0, %s6477_s16  ;;  %v8795_v18 = vpack.c.bf16 %v6222_v11, %v6221_v10  ;;  %v6224_v23 = vld [vmem:[%s12044_s1 + $0xc8] sm:$0xff]  ;;  %v6225_v33 = vld [vmem:[%s12044_s1 + $0xd0] sm:$0xff]  ;;  %s11917_s26 = scalar_lea.vmem %s12050_s7, %s6477_s16 }
  0x12   : > { %289 = vst [vmem:[#allocation2 + $0x48] sm:$0x1] %v9892_v5  ;;  %290 = vst [vmem:[#allocation2 + $0x60] sm:$0x1] %v9892_v5  ;;  %8788 = vmatprep.subr.bf16.mxu0 %v8787_v6  ;;  %v10072_v12 = vld [vmem:[%s10069_s23] sm:$0xff]  ;;  %v10075_v13 = vld [vmem:[%s10069_s23 + $0x8] sm:$0xff]  ;;  %v8799_v29 = vpack.c.bf16 %v6224_v23, %v6223_v22 }
  0x13   : > { %291 = vst [vmem:[#allocation2 + $0x78] sm:$0x1] %v9892_v5  ;;  %292 = vst [vmem:[#allocation2 + $0x90] sm:$0x1] %v9892_v5  ;;  %v10078_v14 = vld [vmem:[%s10069_s23 + $0x10] sm:$0xff]  ;;  %v10084_v15 = vld [vmem:[%s10069_s23 + $0x18] sm:$0xff] }
  0x14   : > { %293 = vst [vmem:[#allocation2 + $0xa8] sm:$0x1] %v9892_v5  ;;  %294 = vst [vmem:[#allocation2 + $0xc0] sm:$0x1] %v9892_v5  ;;  %v10088_v17 = vld [vmem:[%s10069_s23 + $0x20] sm:$0xff]  ;;  %v10092_v19 = vld [vmem:[%s10069_s23 + $0x28] sm:$0xff] }
  0x15   : > { %295 = vst [vmem:[#allocation2 + $0xd8] sm:$0x1] %v9892_v5  ;;  %296 = vst [vmem:[#allocation2 + $0xf0] sm:$0x1] %v9892_v5  ;;  %8790 = vmatpush3.bf16.msra.mxu0 %v8787_v6  ;;  %v471_v16 = vld [vmem:[#allocation2 + $0x1] sm:$0xff]  ;;  %v10095_v20 = vld [vmem:[%s10069_s23 + $0x30] sm:$0xff] }
  0x16   : > { %297 = vst [vmem:[#allocation2 + $0x108] sm:$0x1] %v9892_v5  ;;  %298 = vst [vmem:[#allocation2 + $0x120] sm:$0x1] %v9892_v5  ;;  %8792 = vmatprep.subr.bf16.mxu0 %v8791_v9  ;;  %7375 = vmatprep.mubr.f32.mxu0 %v471_v16  ;;  %v10098_v21 = vld [vmem:[%s10069_s23 + $0x38] sm:$0xff]  ;;  %v10110_v24 = vld [vmem:[%s10069_s23 + $0x40] sm:$0xff] }
  0x17   : > { %299 = vst [vmem:[#allocation2 + $0x138] sm:$0x1] %v9892_v5  ;;  %300 = vst [vmem:[#allocation2 + $0x150] sm:$0x1] %v9892_v5  ;;  %v10114_v25 = vld [vmem:[%s10069_s23 + $0x48] sm:$0xff]  ;;  %v10117_v26 = vld [vmem:[%s10069_s23 + $0x50] sm:$0xff] }
  0x18   : > { %301 = vst [vmem:[#allocation2 + $0x168] sm:$0x1] %v9892_v5  ;;  %302 = vst [vmem:[#allocation2 + $0x180] sm:$0x1] %v9892_v5  ;;  %v10120_v27 = vld [vmem:[%s10069_s23 + $0x58] sm:$0xff]  ;;  %v10126_v28 = vld [vmem:[%s10069_s23 + $0x60] sm:$0xff] }
  0x19   : > { %303 = vst [vmem:[#allocation2 + $0x29] sm:$0x1] %v9892_v5  ;;  %304 = vst [vmem:[#allocation2 + $0x41] sm:$0x1] %v9892_v5  ;;  %8794 = vmatpush3.bf16.msra.mxu0 %v8791_v9  ;;  %v10130_v30 = vld [vmem:[%s10069_s23 + $0x68] sm:$0xff]  ;;  %v10133_v31 = vld [vmem:[%s10069_s23 + $0x70] sm:$0xff] }
  0x1a   : > { %305 = vst [vmem:[#allocation2 + $0x59] sm:$0x1] %v9892_v5  ;;  %306 = vst [vmem:[#allocation2 + $0x71] sm:$0x1] %v9892_v5  ;;  %8796 = vmatprep.subr.bf16.mxu0 %v8795_v18  ;;  %v10136_v32 = vld [vmem:[%s10069_s23 + $0x78] sm:$0xff]  ;;  %v10148_v35 = vld [vmem:[%s10069_s23 + $0x80] sm:$0xff] }
  0x1b   : > { %307 = vst [vmem:[#allocation2 + $0x89] sm:$0x1] %v9892_v5  ;;  %308 = vst [vmem:[#allocation2 + $0xa1] sm:$0x1] %v9892_v5  ;;  %v6226_v34 = vld [vmem:[%s12044_s1 + $0xd8] sm:$0xff]  ;;  %v10152_v36 = vld [vmem:[%s10069_s23 + $0x88] sm:$0xff] }
  0x1c   : > { %309 = vst [vmem:[#allocation2 + $0xb9] sm:$0x1] %v9892_v5  ;;  %310 = vst [vmem:[#allocation2 + $0xd1] sm:$0x1] %v9892_v5  ;;  %v10155_v37 = vld [vmem:[%s10069_s23 + $0x90] sm:$0xff]  ;;  %v10158_v38 = vld [vmem:[%s10069_s23 + $0x98] sm:$0xff]  ;;  %v8803_v40 = vpack.c.bf16 %v6226_v34, %v6225_v33 }
  0x1d   : > { %311 = vst [vmem:[#allocation2 + $0xe9] sm:$0x1] %v9892_v5  ;;  %312 = vst [vmem:[#allocation2 + $0x101] sm:$0x1] %v9892_v5  ;;  %8798 = vmatpush3.bf16.msra.mxu0 %v8795_v18  ;;  %v10164_v39 = vld [vmem:[%s10069_s23 + $0xa0] sm:$0xff]  ;;  %v10168_v41 = vld [vmem:[%s10069_s23 + $0xa8] sm:$0xff] }
  0x1e   : > { %313 = vst [vmem:[#allocation2 + $0x119] sm:$0x1] %v9892_v5  ;;  %314 = vst [vmem:[#allocation2 + $0x131] sm:$0x1] %v9892_v5  ;;  %8800 = vmatprep.subr.bf16.mxu0 %v8799_v29  ;;  %v10171_v42 = vld [vmem:[%s10069_s23 + $0xb0] sm:$0xff]  ;;  %v10174_v43 = vld [vmem:[%s10069_s23 + $0xb8] sm:$0xff] }
  0x1f   : > { %315 = vst [vmem:[#allocation2 + $0x149] sm:$0x1] %v9892_v5  ;;  %316 = vst [vmem:[#allocation2 + $0x161] sm:$0x1] %v9892_v5  ;;  %v6227_v44 = vld [vmem:[%s12044_s1 + $0xe0] sm:$0xff]  ;;  %v6228_v45 = vld [vmem:[%s12044_s1 + $0xe8] sm:$0xff] }
  0x20   : > { %317 = vst [vmem:[#allocation2 + $0x179] sm:$0x1] %v9892_v5  ;;  %318 = vst [vmem:[#allocation2 + $0x191] sm:$0x1] %v9892_v5  ;;  %v10186_v46 = vld [vmem:[%s10069_s23 + $0xc0] sm:$0xff]  ;;  %v10190_v47 = vld [vmem:[%s10069_s23 + $0xc8] sm:$0xff]  ;;  %v8807_v51 = vpack.c.bf16 %v6228_v45, %v6227_v44 }
  0x21   : > { %319 = vst [vmem:[#allocation3] sm:$0xff] %v9892_v5  ;;  %320 = vst [vmem:[#allocation3 + $0x8] sm:$0xff] %v9892_v5  ;;  %v10193_v48 = vld [vmem:[%s10069_s23 + $0xd0] sm:$0xff]  ;;  %v10196_v49 = vld [vmem:[%s10069_s23 + $0xd8] sm:$0xff]  ;;  %8802 = vmatpush3.bf16.msra.mxu0 %v8799_v29 }
  0x22   : > { %321 = vst [vmem:[#allocation3 + $0x10] sm:$0x3] %v9892_v5  ;;  %323 = vst [vmem:[#allocation3 + $0x198] sm:$0xff] %v9892_v5  ;;  %v10202_v50 = vld [vmem:[%s10069_s23 + $0xe0] sm:$0xff]  ;;  %8804 = vmatprep.subr.bf16.mxu0 %v8803_v40  ;;  %v10206_v52 = vld [vmem:[%s10069_s23 + $0xe8] sm:$0xff] }
  0x23   : > { %324 = vst [vmem:[#allocation3 + $0x1a0] sm:$0xff] %v9892_v5  ;;  %325 = vst [vmem:[#allocation3 + $0x1a8] sm:$0x3] %v9892_v5  ;;  %v6229_v53 = vld [vmem:[%s12044_s1 + $0xf0] sm:$0xff]  ;;  %v6230_v54 = vld [vmem:[%s12044_s1 + $0xf8] sm:$0xff] }
  0x24   : > { %327 = vst [vmem:[#allocation3 + $0x18] sm:$0x1] %v9892_v5  ;;  %328 = vst [vmem:[#allocation3 + $0x30] sm:$0x1] %v9892_v5  ;;  %v8811_v55 = vpack.c.bf16 %v6230_v54, %v6229_v53  ;;  %v455_v56 = vld [vmem:[%s12044_s1] sm:$0xff]  ;;  %v456_v57 = vld [vmem:[%s12044_s1 + $0x8] sm:$0xff] }
  0x25   : > { %329 = vst [vmem:[#allocation3 + $0x48] sm:$0x1] %v9892_v5  ;;  %330 = vst [vmem:[#allocation3 + $0x60] sm:$0x1] %v9892_v5  ;;  %8806 = vmatpush3.bf16.msra.mxu0 %v8803_v40  ;;  %v8815_v58 = vpack.c.bf16 %v456_v57, %v455_v56  ;;  %v457_v59 = vld [vmem:[%s12044_s1 + $0x10] sm:$0xff]  ;;  %v458_v60 = vld [vmem:[%s12044_s1 + $0x18] sm:$0xff] }
  0x26   : > { %331 = vst [vmem:[#allocation3 + $0x78] sm:$0x1] %v9892_v5  ;;  %332 = vst [vmem:[#allocation3 + $0x90] sm:$0x1] %v9892_v5  ;;  %8808 = vmatprep.subr.bf16.mxu0 %v8807_v51  ;;  %v472_v61 = vld [vmem:[#allocation2 + $0x9] sm:$0xff]  ;;  %v8819_v62 = vpack.c.bf16 %v458_v60, %v457_v59  ;;  %v459_v63 = vld [vmem:[%s12044_s1 + $0x20] sm:$0xff] }
  0x27   : > { %333 = vst [vmem:[#allocation3 + $0xa8] sm:$0x1] %v9892_v5  ;;  %334 = vst [vmem:[#allocation3 + $0xc0] sm:$0x1] %v9892_v5  ;;  %v460_v0 = vld [vmem:[%s12044_s1 + $0x28] sm:$0xff]  ;;  %v461_v2 = vld [vmem:[%s12044_s1 + $0x30] sm:$0xff] }
  0x28   : > { %335 = vst [vmem:[#allocation3 + $0xd8] sm:$0x1] %v9892_v5  ;;  %336 = vst [vmem:[#allocation3 + $0xf0] sm:$0x1] %v9892_v5  ;;  %v8823_v1 = vpack.c.bf16 %v460_v0, %v459_v63  ;;  %v462_v3 = vld [vmem:[%s12044_s1 + $0x38] sm:$0xff]  ;;  %v463_v6 = vld [vmem:[%s12044_s1 + $0x40] sm:$0xff] }
  0x29   : > { %337 = vst [vmem:[#allocation3 + $0x108] sm:$0x1] %v9892_v5  ;;  %338 = vst [vmem:[#allocation3 + $0x120] sm:$0x1] %v9892_v5  ;;  %8810 = vmatpush3.bf16.msra.mxu0 %v8807_v51  ;;  %v8827_v4 = vpack.c.bf16 %v462_v3, %v461_v2  ;;  %v464_v7 = vld [vmem:[%s12044_s1 + $0x48] sm:$0xff]  ;;  %v465_v9 = vld [vmem:[%s12044_s1 + $0x50] sm:$0xff] }
  0x2a   : > { %339 = vst [vmem:[#allocation3 + $0x138] sm:$0x1] %v9892_v5  ;;  %340 = vst [vmem:[#allocation3 + $0x150] sm:$0x1] %v9892_v5  ;;  %8812 = vmatprep.subr.bf16.mxu0 %v8811_v55  ;;  %v8831_v8 = vpack.c.bf16 %v464_v7, %v463_v6  ;;  %v466_v10 = vld [vmem:[%s12044_s1 + $0x58] sm:$0xff]  ;;  %v467_v16 = vld [vmem:[%s12044_s1 + $0x60] sm:$0xff] }
  0x2b   : > { %341 = vst [vmem:[#allocation3 + $0x168] sm:$0x1] %v9892_v5  ;;  %342 = vst [vmem:[#allocation3 + $0x180] sm:$0x1] %v9892_v5  ;;  %v8835_v11 = vpack.c.bf16 %v466_v10, %v465_v9  ;;  %v468_v18 = vld [vmem:[%s12044_s1 + $0x68] sm:$0xff]  ;;  %v469_v23 = vld [vmem:[%s12044_s1 + $0x70] sm:$0xff] }
  0x2c   : > { %343 = vst [vmem:[#allocation3 + $0x29] sm:$0x1] %v9892_v5  ;;  %344 = vst [vmem:[#allocation3 + $0x41] sm:$0x1] %v9892_v5  ;;  %v8839_v22 = vpack.c.bf16 %v468_v18, %v467_v16  ;;  %v470_v29 = vld [vmem:[%s12044_s1 + $0x78] sm:$0xff]  ;;  %v6231_v34 = vld [vmem:[%s12044_s1 + $0x100] sm:$0xff] }
  0x2d   : > { %345 = vst [vmem:[#allocation3 + $0x59] sm:$0x1] %v9892_v5  ;;  %346 = vst [vmem:[#allocation3 + $0x71] sm:$0x1] %v9892_v5  ;;  %8814 = vmatpush3.bf16.msra.mxu0 %v8811_v55  ;;  %v8843_v33 = vpack.c.bf16 %v470_v29, %v469_v23  ;;  %v6232_v40 = vld [vmem:[%s12044_s1 + $0x108] sm:$0xff]  ;;  %v6233_v45 = vld [vmem:[%s12044_s1 + $0x110] sm:$0xff] }
  0x2e   : > { %347 = vst [vmem:[#allocation3 + $0x89] sm:$0x1] %v9892_v5  ;;  %348 = vst [vmem:[#allocation3 + $0xa1] sm:$0x1] %v9892_v5  ;;  %8816 = vmatprep.subr.bf16.mxu0 %v8815_v58  ;;  %v8847_v44 = vpack.c.bf16 %v6232_v40, %v6231_v34  ;;  %v6234_v51 = vld [vmem:[%s12044_s1 + $0x118] sm:$0xff]  ;;  %v6235_v55 = vld [vmem:[%s12044_s1 + $0x120] sm:$0xff] }
  0x2f   : > { %349 = vst [vmem:[#allocation3 + $0xb9] sm:$0x1] %v9892_v5  ;;  %350 = vst [vmem:[#allocation3 + $0xd1] sm:$0x1] %v9892_v5  ;;  %v8851_v54 = vpack.c.bf16 %v6234_v51, %v6233_v45  ;;  %v6236_v56 = vld [vmem:[%s12044_s1 + $0x128] sm:$0xff]  ;;  %v6237_v60 = vld [vmem:[%s12044_s1 + $0x130] sm:$0xff] }
  0x30   : > { %351 = vst [vmem:[#allocation3 + $0xe9] sm:$0x1] %v9892_v5  ;;  %352 = vst [vmem:[#allocation3 + $0x101] sm:$0x1] %v9892_v5  ;;  %7376 = vmatmul.mubr.f32.vlgmr.msra.gmra.mrb[0].mxu0 %v472_v61  ;;  %v8855_v59 = vpack.c.bf16 %v6236_v56, %v6235_v55  ;;  %v6238_v61 = vld [vmem:[%s12044_s1 + $0x138] sm:$0xff]  ;;  %v6239_v0 = vld [vmem:[%s12044_s1 + $0x140] sm:$0xff] }
  0x31   : > { %353 = vst [vmem:[#allocation3 + $0x119] sm:$0x1] %v9892_v5  ;;  %354 = vst [vmem:[#allocation3 + $0x131] sm:$0x1] %v9892_v5  ;;  %8818 = vmatpush3.bf16.msra.mxu0 %v8815_v58  ;;  %7378 = vmatprep.mubr.f32.mxu0 %v10072_v12  ;;  %v8859_v63 = vpack.c.bf16 %v6238_v61, %v6237_v60  ;;  %v6241_v6 = vld [vmem:[%s12044_s1 + $0x150] sm:$0xff]  ;;  %v6242_v7 = vld [vmem:[%s12044_s1 + $0x158] sm:$0xff] }
  0x32   : > { %355 = vst [vmem:[#allocation3 + $0x149] sm:$0x1] %v9892_v5  ;;  %356 = vst [vmem:[#allocation3 + $0x161] sm:$0x1] %v9892_v5  ;;  %8820 = vmatprep.subr.bf16.mxu0 %v8819_v62  ;;  %v8867_v10 = vpack.c.bf16 %v6242_v7, %v6241_v6  ;;  %v6244_v16 = vld [vmem:[%s12044_s1 + $0x168] sm:$0xff]  ;;  %v6245_v29 = vld [vmem:[%s12044_s1 + $0x170] sm:$0xff] }
  0x33   : > { %357 = vst [vmem:[#allocation3 + $0x179] sm:$0x1] %v9892_v5  ;;  %358 = vst [vmem:[#allocation3 + $0x191] sm:$0x1] %v9892_v5  ;;  %v6247_v45 = vld [vmem:[%s12044_s1 + $0x180] sm:$0xff]  ;;  %v6248_v51 = vld [vmem:[%s12044_s1 + $0x188] sm:$0xff] }
  0x34   : > { %391 = vst [vmem:[#allocation2 + $0x19] sm:$0xff] %v10072_v12  ;;  %392 = vst [vmem:[#allocation2 + $0x21] sm:$0xff] %v10075_v13  ;;  %7379 = vmatmul.mubr.f32.gmra.mrb[2].mxu0 %v10075_v13  ;;  %v8879_v56 = vpack.c.bf16 %v6248_v51, %v6247_v45  ;;  %v970_v51 = vld [vmem:[#allocation2 + $0x2] sm:$0xff] }
  0x35   : > { %393 = vst [vmem:[#allocation2 + $0x31] sm:$0xff] %v10078_v14  ;;  %394 = vst [vmem:[#allocation2 + $0x39] sm:$0xff] %v10084_v15  ;;  %7381 = vmatprep.mubr.f32.mxu0 %v10078_v14  ;;  %8822 = vmatpush3.bf16.msra.mxu0 %v8819_v62 }
  0x36   : > { %395 = vst [vmem:[#allocation2 + $0x49] sm:$0xff] %v10088_v17  ;;  %396 = vst [vmem:[#allocation2 + $0x51] sm:$0xff] %v10092_v19  ;;  %8824 = vmatprep.subr.bf16.mxu0 %v8823_v1 }
  0x37   : > { %397 = vst [vmem:[#allocation2 + $0x61] sm:$0xff] %v10095_v20  ;;  %398 = vst [vmem:[#allocation2 + $0x69] sm:$0xff] %v10098_v21 }
  0x38   : > { %399 = vst [vmem:[#allocation2 + $0x79] sm:$0xff] %v10110_v24  ;;  %400 = vst [vmem:[#allocation2 + $0x81] sm:$0xff] %v10114_v25  ;;  %7382 = vmatmul.mubr.f32.gmra.mrb[4].mxu0 %v10084_v15 }
  0x39   : > { %401 = vst [vmem:[#allocation2 + $0x91] sm:$0xff] %v10117_v26  ;;  %402 = vst [vmem:[#allocation2 + $0x99] sm:$0xff] %v10120_v27  ;;  %7384 = vmatprep.mubr.f32.mxu0 %v10088_v17  ;;  %8826 = vmatpush3.bf16.msra.mxu0 %v8823_v1  ;;  %v6240_v1 = vld [vmem:[%s12044_s1 + $0x148] sm:$0xff] }
  0x3a   : > { %403 = vst [vmem:[#allocation2 + $0xa9] sm:$0xff] %v10126_v28  ;;  %404 = vst [vmem:[#allocation2 + $0xb1] sm:$0xff] %v10130_v30  ;;  %8828 = vmatprep.subr.bf16.mxu0 %v8827_v4 }
  0x3b   : > { %405 = vst [vmem:[#allocation2 + $0xc1] sm:$0xff] %v10133_v31  ;;  %406 = vst [vmem:[#allocation2 + $0xc9] sm:$0xff] %v10136_v32  ;;  %v10306_v53 = vld [vmem:[#allocation2 + $0x18] sm:$0xff]  ;;  %v10316_v57 = vld [vmem:[#allocation2 + $0x20] sm:$0xff] }
  0x3c   : > { %407 = vst [vmem:[#allocation2 + $0xd9] sm:$0xff] %v10148_v35  ;;  %408 = vst [vmem:[#allocation2 + $0xe1] sm:$0xff] %v10152_v36  ;;  %7385 = vmatmul.mubr.f32.gmra.mrb[6].mxu0 %v10092_v19  ;;  %v10318_v58 = vld [vmem:[#allocation2 + $0x30] sm:$0xff] }
  0x3d   : > { %409 = vst [vmem:[#allocation2 + $0xf1] sm:$0xff] %v10155_v37  ;;  %410 = vst [vmem:[#allocation2 + $0xf9] sm:$0xff] %v10158_v38  ;;  %7387 = vmatprep.mubr.f32.mxu0 %v10095_v20  ;;  %8830 = vmatpush3.bf16.msra.mxu0 %v8827_v4  ;;  %v10330_v62 = vld [vmem:[#allocation2 + $0x48] sm:$0xff]  ;;  %v10340_v2 = vld [vmem:[#allocation2 + $0x50] sm:$0xff]  ;;  %v8863_v4 = vpack.c.bf16 %v6240_v1, %v6239_v0 }
  0x3e   : > { %411 = vst [vmem:[#allocation2 + $0x109] sm:$0xff] %v10164_v39  ;;  %12121 = vst [vmem:[#allocation4_spill] sm:$0xff] %v10174_v43  ;;  %8832 = vmatprep.subr.bf16.mxu0 %v8831_v8  ;;  %v10342_v3 = vld [vmem:[#allocation2 + $0x60] sm:$0xff] }
  0x3f   : > { %412 = vst [vmem:[#allocation2 + $0x111] sm:$0xff] %v10168_v41  ;;  %413 = vst [vmem:[#allocation2 + $0x121] sm:$0xff] %v10171_v42  ;;  %v10354_v9 = vld [vmem:[#allocation2 + $0x78] sm:$0xff]  ;;  %v10364_v18 = vld [vmem:[#allocation2 + $0x80] sm:$0xff] }
  0x40   : > { %414 = vst [vmem:[#allocation2 + $0x129] sm:$0xff] %v10174_v43  ;;  %12122 = vst [vmem:[#allocation5_spill] sm:$0xff] %v10186_v46  ;;  %7388 = vmatmul.mubr.f32.gmra.mrb[8].mxu0 %v10098_v21  ;;  %v10376_v34 = vld [vmem:[#allocation2 + $0x98] sm:$0xff] }
  0x41   : > { %415 = vst [vmem:[#allocation2 + $0x139] sm:$0xff] %v10186_v46  ;;  %12123 = vst [vmem:[#allocation6_spill] sm:$0xff] %v10190_v47  ;;  %7390 = vmatprep.mubr.f32.mxu0 %v10110_v24  ;;  %8834 = vmatpush3.bf16.msra.mxu0 %v8831_v8  ;;  %v10352_v8 = vld [vmem:[#allocation2 + $0x68] sm:$0xff] }
  0x42   : > { %12124 = vst [vmem:[#allocation7_spill] sm:$0xff] %v10193_v48  ;;  %12125 = vst [vmem:[#allocation8_spill] sm:$0xff] %v10196_v49  ;;  %8836 = vmatprep.subr.bf16.mxu0 %v8835_v11  ;;  %v10378_v40 = vld [vmem:[#allocation2 + $0xa8] sm:$0xff]  ;;  %v10390_v55 = vld [vmem:[#allocation2 + $0xc0] sm:$0xff] }
  0x43   : > { %416 = vst [vmem:[#allocation2 + $0x141] sm:$0xff] %v10190_v47  ;;  %417 = vst [vmem:[#allocation2 + $0x151] sm:$0xff] %v10193_v48  ;;  %v10396_v60 = vld [vmem:[#allocation2 + $0xd8] sm:$0xff]  ;;  %v10400_v61 = vld [vmem:[#allocation2 + $0xe0] sm:$0xff] }
  0x44   : > { %418 = vst [vmem:[#allocation2 + $0x159] sm:$0xff] %v10196_v49  ;;  %12126 = vst [vmem:[#allocation9_spill] sm:$0xff] %v10202_v50  ;;  %7391 = vmatmul.mubr.f32.gmra.mrb[10].mxu0 %v10114_v25  ;;  %v10406_v0 = vld [vmem:[#allocation2 + $0xf8] sm:$0xff] }
  0x45   : > { %419 = vst [vmem:[#allocation2 + $0x169] sm:$0xff] %v10202_v50  ;;  %12127 = vst [vmem:[#allocation10_spill] sm:$0xff] %v10206_v52  ;;  %7393 = vmatprep.mubr.f32.mxu0 %v10117_v26  ;;  %8838 = vmatpush3.bf16.msra.mxu0 %v8835_v11  ;;  %v6243_v11 = vld [vmem:[%s12044_s1 + $0x160] sm:$0xff]  ;;  %v10408_v1 = vld [vmem:[#allocation2 + $0x108] sm:$0xff] }
  0x46   : > { %420 = vst [vmem:[#allocation2 + $0x171] sm:$0xff] %v10206_v52  ;;  %8840 = vmatprep.subr.bf16.mxu0 %v8839_v22  ;;  %v8871_v23 = vpack.c.bf16 %v6244_v16, %v6243_v11  ;;  %v10414_v6 = vld [vmem:[#allocation2 + $0x120] sm:$0xff] }
  0x47   : > { %v10418_v7 = vld [vmem:[#allocation2 + $0x128] sm:$0xff] }
  0x48   : > { %7394 = vmatmul.mubr.f32.gmra.mrb[12].mxu0 %v10120_v27 }
  0x49   : > { %7396 = vmatprep.mubr.f32.mxu0 %v10126_v28  ;;  %8842 = vmatpush3.bf16.msra.mxu0 %v8839_v22  ;;  %v10366_v22 = vld [vmem:[#allocation2 + $0x90] sm:$0xff] }
  0x4a   : > { %8844 = vmatprep.subr.bf16.mxu0 %v8843_v33  ;;  %v10424_v11 = vld [vmem:[#allocation2 + $0x140] sm:$0xff]  ;;  %v10426_v16 = vld [vmem:[#allocation2 + $0x150] sm:$0xff] }
  0x4c   : > { %7397 = vmatmul.mubr.f32.gmra.mrb[14].mxu0 %v10130_v30 }
  0x4d   : > { %7399 = vmatprep.mubr.f32.mxu0 %v10133_v31  ;;  %8846 = vmatpush3.bf16.msra.mxu0 %v8843_v33  ;;  %v6246_v33 = vld [vmem:[%s12044_s1 + $0x178] sm:$0xff]  ;;  %v10444_v45 = vld [vmem:[#allocation2 + $0x170] sm:$0xff] }
  0x4e   : > { %8848 = vmatprep.subr.bf16.mxu0 %v8847_v44 }
  0x50   : > { %7400 = vmatmul.mubr.f32.gmra.mrb[16].mxu0 %v10136_v32 }
  0x51   : > { %7402 = vmatprep.mubr.f32.mxu0 %v10148_v35 }
  0x54   : > { %7403 = vmatmul.mubr.f32.gmra.mrb[18].mxu0 %v10152_v36 }
  0x55   : > { %7405 = vmatprep.mubr.f32.mxu0 %v10155_v37 }
  0x58   : > { %7406 = vmatmul.mubr.f32.gmra.mrb[20].mxu0 %v10158_v38 }
  0x59   : > { %7408 = vmatprep.mubr.f32.mxu0 %v10164_v39 }
  0x5c   : > { %7409 = vmatmul.mubr.f32.gmra.mrb[22].mxu0 %v10168_v41 }
  0x5d   : > { %7411 = vmatprep.mubr.f32.mxu0 %v10171_v42 }
  0x60   : > { %7412 = vmatmul.mubr.f32.gmra.mrb[24].mxu0 %v10174_v43  ;;  %v10464_v43 = vld [vmem:[#allocation2 + $0x32] sm:$0xff] }
  0x61   : > { %7414 = vmatprep.mubr.f32.mxu0 %v10186_v46  ;;  %v10462_v46 = vld [vmem:[#allocation2 + $0x22] sm:$0xff]  ;;  %12132 = vst [vmem:[#allocation15_spill] sm:$0xff] %v10464_v43 }
  0x62   : > { %12131 = vst [vmem:[#allocation14_spill] sm:$0xff] %v10462_v46 }
  0x64   : > { %7415 = vmatmul.mubr.f32.gmra.mrb[26].mxu0 %v10190_v47  ;;  %v6252_v47 = vld [vmem:[%s12044_s1 + $0x1a8] sm:$0xff] }
  0x65   : > { %7417 = vmatprep.mubr.f32.mxu0 %v10193_v48  ;;  %v6251_v48 = vld [vmem:[%s12044_s1 + $0x1a0] sm:$0xff] }
  0x68   : > { %7418 = vmatmul.mubr.f32.gmra.mrb[28].mxu0 %v10196_v49 }
  0x69   : > { %7420 = vmatprep.mubr.f32.mxu0 %v10202_v50  ;;  %v10453_v50 = vld [vmem:[#allocation2 + $0x1a] sm:$0xff] }
  0x6a   : > { %12130 = vst [vmem:[#allocation13_spill] sm:$0xff] %v10453_v50 }
  0x6c   : > { %7421 = vmatmul.mubr.f32.gmra.mrb[30].mxu0 %v10206_v52  ;;  %v971_v52 = vld [vmem:[#allocation2 + $0xa] sm:$0xff] }
  0x6d   : > { %7455 = vmatprep.mubr.f32.mxu0 %v9892_v5 }
  0x70   : > { %7456 = vmatmul.mubr.f32.vlgmr.msra.gmra.mrb[0].mxu0 %v9892_v5  ;;  %v10328_v5 = vld [vmem:[#allocation2 + $0x38] sm:$0xff] }
  0x71   : > { %8850 = vmatpush3.bf16.msra.mxu0 %v8847_v44  ;;  %7458 = vmatprep.mubr.f32.mxu0 %v10306_v53  ;;  %v8875_v44 = vpack.c.bf16 %v6246_v33, %v6245_v29  ;;  %v10433_v29 = vld [vmem:[%s10069_s23 + $0xf8] sm:$0xff] }
  0x72   : > { %8852 = vmatprep.subr.bf16.mxu0 %v8851_v54  ;;  %12129 = vst [vmem:[#allocation12_spill] sm:$0xff] %v10433_v29  ;;  %422 = vst [vmem:[#allocation2 + $0x189] sm:$0xff] %v10433_v29  ;;  %v10438_v33 = vld [vmem:[#allocation2 + $0x158] sm:$0xff] }
  0x73   : > { %v6250_v29 = vld [vmem:[%s12044_s1 + $0x198] sm:$0xff] }
  0x74   : > { %7459 = vmatmul.mubr.f32.gmra.mrb[2].mxu0 %v10316_v57 }
  0x75   : > { %7461 = vmatprep.mubr.f32.mxu0 %v10318_v58  ;;  %8854 = vmatpush3.bf16.msra.mxu0 %v8851_v54  ;;  %v10388_v54 = vld [vmem:[#allocation2 + $0xb0] sm:$0xff] }
  0x76   : > { %8856 = vmatprep.subr.bf16.mxu0 %v8855_v59 }
  0x78   : > { %7462 = vmatmul.mubr.f32.gmra.mrb[4].mxu0 %v10328_v5 }
  0x79   : > { %7464 = vmatprep.mubr.f32.mxu0 %v10330_v62  ;;  %8858 = vmatpush3.bf16.msra.mxu0 %v8855_v59  ;;  %v10394_v59 = vld [vmem:[#allocation2 + $0xc8] sm:$0xff] }
  0x7a   : > { %8860 = vmatprep.subr.bf16.mxu0 %v8859_v63 }
  0x7c   : > { %7465 = vmatmul.mubr.f32.gmra.mrb[6].mxu0 %v10340_v2 }
  0x7d   : > { %7467 = vmatprep.mubr.f32.mxu0 %v10342_v3  ;;  %8862 = vmatpush3.bf16.msra.mxu0 %v8859_v63  ;;  %v10402_v63 = vld [vmem:[#allocation2 + $0xf0] sm:$0xff] }
  0x7e   : > { %8864 = vmatprep.subr.bf16.mxu0 %v8863_v4 }
  0x80   : > { %7468 = vmatmul.mubr.f32.gmra.mrb[8].mxu0 %v10352_v8 }
  0x81   : > { %7470 = vmatprep.mubr.f32.mxu0 %v10354_v9  ;;  %8866 = vmatpush3.bf16.msra.mxu0 %v8863_v4  ;;  %v10412_v4 = vld [vmem:[#allocation2 + $0x110] sm:$0xff] }
  0x82   : > { %8868 = vmatprep.subr.bf16.mxu0 %v8867_v10 }
  0x84   : > { %7471 = vmatmul.mubr.f32.gmra.mrb[10].mxu0 %v10364_v18 }
  0x85   : > { %7473 = vmatprep.mubr.f32.mxu0 %v10366_v22  ;;  %8870 = vmatpush3.bf16.msra.mxu0 %v8867_v10  ;;  %v10420_v10 = vld [vmem:[#allocation2 + $0x138] sm:$0xff] }
  0x86   : > { %8872 = vmatprep.subr.bf16.mxu0 %v8871_v23 }
  0x88   : > { %7474 = vmatmul.mubr.f32.gmra.mrb[12].mxu0 %v10376_v34 }
  0x89   : > { %7476 = vmatprep.mubr.f32.mxu0 %v10378_v40  ;;  %8874 = vmatpush3.bf16.msra.mxu0 %v8871_v23  ;;  %v10429_v23 = vld [vmem:[%s10069_s23 + $0xf0] sm:$0xff] }
  0x8a   : > { %8876 = vmatprep.subr.bf16.mxu0 %v8875_v44  ;;  %12128 = vst [vmem:[#allocation11_spill] sm:$0xff] %v10429_v23  ;;  %421 = vst [vmem:[#allocation2 + $0x181] sm:$0xff] %v10429_v23  ;;  %v6249_v23 = vld [vmem:[%s12044_s1 + $0x190] sm:$0xff] }
  0x8b   : > { %v8883_v49 = vpack.c.bf16 %v6250_v29, %v6249_v23  ;;  %v6253_v23 = vld [vmem:[%s12044_s1 + $0x1b0] sm:$0xff]  ;;  %v6254_v29 = vld [vmem:[%s12044_s1 + $0x1b8] sm:$0xff] }
  0x8c   : > { %7477 = vmatmul.mubr.f32.gmra.mrb[14].mxu0 %v10388_v54 }
  0x8d   : > { %7479 = vmatprep.mubr.f32.mxu0 %v10390_v55  ;;  %8878 = vmatpush3.bf16.msra.mxu0 %v8875_v44  ;;  %v10440_v44 = vld [vmem:[#allocation2 + $0x168] sm:$0xff] }
  0x8e   : > { %8880 = vmatprep.subr.bf16.mxu0 %v8879_v56 }
  0x90   : > { %7480 = vmatmul.mubr.f32.gmra.mrb[16].mxu0 %v10394_v59 }
  0x91   : > { %7482 = vmatprep.mubr.f32.mxu0 %v10396_v60 }
  0x94   : > { %7483 = vmatmul.mubr.f32.gmra.mrb[18].mxu0 %v10400_v61 }
  0x95   : > { %7485 = vmatprep.mubr.f32.mxu0 %v10402_v63 }
  0x98   : > { %7486 = vmatmul.mubr.f32.gmra.mrb[20].mxu0 %v10406_v0 }
  0x99   : > { %7488 = vmatprep.mubr.f32.mxu0 %v10408_v1 }
  0x9c   : > { %7489 = vmatmul.mubr.f32.gmra.mrb[22].mxu0 %v10412_v4 }
  0x9d   : > { %7491 = vmatprep.mubr.f32.mxu0 %v10414_v6 }
  0xa0   : > { %7492 = vmatmul.mubr.f32.gmra.mrb[24].mxu0 %v10418_v7 }
  0xa1   : > { %7494 = vmatprep.mubr.f32.mxu0 %v10420_v10 }
  0xa4   : > { %7495 = vmatmul.mubr.f32.gmra.mrb[26].mxu0 %v10424_v11 }
  0xa5   : > { %7497 = vmatprep.mubr.f32.mxu0 %v10426_v16 }
  0xa8   : > { %7498 = vmatmul.mubr.f32.gmra.mrb[28].mxu0 %v10438_v33 }
  0xa9   : > { %7500 = vmatprep.mubr.f32.mxu0 %v10440_v44 }
  0xac   : > { %7501 = vmatmul.mubr.f32.gmra.mrb[30].mxu0 %v10444_v45 }
  0xad   : > { %7535 = vmatprep.mubr.f32.mxu0 %v970_v51  ;;  %v8887_v51 = vpack.c.bf16 %v6252_v47, %v6251_v48  ;;  %v6255_v47 = vld [vmem:[%s12044_s1 + $0x1c0] sm:$0xff]  ;;  %v6256_v48 = vld [vmem:[%s12044_s1 + $0x1c8] sm:$0xff] }
  0xb0   : > { %7536 = vmatmul.mubr.f32.vlgmr.msra.gmra.mrb[0].mxu0 %v971_v52  ;;  %v10474_v52 = vld [vmem:[#allocation2 + $0x3a] sm:$0xff] }
  0xb1   : > { %8882 = vmatpush3.bf16.msra.mxu0 %v8879_v56  ;;  %7538 = vmatprep.mubr.f32.mxu0 %v10453_v50  ;;  %12133 = vst [vmem:[#allocation16_spill] sm:$0xff] %v10474_v52  ;;  %v10476_v56 = vld [vmem:[#allocation2 + $0x4a] sm:$0xff]  ;;  %v8891_v50 = vpack.c.bf16 %v6254_v29, %v6253_v23  ;;  %v6258_v29 = vld [vmem:[%s12044_s1 + $0x1d8] sm:$0xff] }
  0xb2   : > { %8884 = vmatprep.subr.bf16.mxu0 %v8883_v49  ;;  %12134 = vst [vmem:[#allocation17_spill] sm:$0xff] %v10476_v56  ;;  %v6257_v23 = vld [vmem:[%s12044_s1 + $0x1d0] sm:$0xff] }
  0xb4   : > { %7539 = vmatmul.mubr.f32.gmra.mrb[2].mxu0 %v10462_v46  ;;  %v8895_v46 = vpack.c.bf16 %v6256_v48, %v6255_v47  ;;  %v6259_v47 = vld [vmem:[%s12044_s1 + $0x1e0] sm:$0xff]  ;;  %v6260_v48 = vld [vmem:[%s12044_s1 + $0x1e8] sm:$0xff] }
  0xb5   : > { %7541 = vmatprep.mubr.f32.mxu0 %v10464_v43  ;;  %8886 = vmatpush3.bf16.msra.mxu0 %v8883_v49  ;;  %v10486_v43 = vld [vmem:[#allocation2 + $0x52] sm:$0xff]  ;;  %v10488_v49 = vld [vmem:[#allocation2 + $0x62] sm:$0xff] }
  0xb6   : > { %8888 = vmatprep.subr.bf16.mxu0 %v8887_v51  ;;  %12135 = vst [vmem:[#allocation18_spill] sm:$0xff] %v10486_v43  ;;  %12136 = vst [vmem:[#allocation19_spill] sm:$0xff] %v10488_v49 }
  0xb8   : > { %7542 = vmatmul.mubr.f32.gmra.mrb[4].mxu0 %v10474_v52  ;;  %v8899_v52 = vpack.c.bf16 %v6258_v29, %v6257_v23  ;;  %v6261_v23 = vld [vmem:[%s12044_s1 + $0x1f0] sm:$0xff]  ;;  %v6262_v29 = vld [vmem:[%s12044_s1 + $0x1f8] sm:$0xff] }
  0xb9   : > { %7544 = vmatprep.mubr.f32.mxu0 %v10476_v56  ;;  %8890 = vmatpush3.bf16.msra.mxu0 %v8887_v51  ;;  %v10498_v56 = vld [vmem:[#allocation2 + $0x6a] sm:$0xff]  ;;  %v10500_v51 = vld [vmem:[#allocation2 + $0x7a] sm:$0xff] }
  0xba   : > { %8892 = vmatprep.subr.bf16.mxu0 %v8891_v50  ;;  %12137 = vst [vmem:[#allocation20_spill] sm:$0xff] %v10498_v56  ;;  %12138 = vst [vmem:[#allocation21_spill] sm:$0xff] %v10500_v51 }
  0xbc   : > { %7545 = vmatmul.mubr.f32.gmra.mrb[6].mxu0 %v10486_v43  ;;  %v8903_v43 = vpack.c.bf16 %v6260_v48, %v6259_v47  ;;  %v6263_v47 = vld [vmem:[%s12044_s1 + $0x200] sm:$0xff]  ;;  %v6264_v48 = vld [vmem:[%s12044_s1 + $0x208] sm:$0xff] }
  0xbd   : > { %7547 = vmatprep.mubr.f32.mxu0 %v10488_v49  ;;  %8894 = vmatpush3.bf16.msra.mxu0 %v8891_v50  ;;  %v10510_v49 = vld [vmem:[#allocation2 + $0x82] sm:$0xff]  ;;  %v10512_v50 = vld [vmem:[#allocation2 + $0x92] sm:$0xff] }
  0xbe   : > { %8896 = vmatprep.subr.bf16.mxu0 %v8895_v46  ;;  %12139 = vst [vmem:[#allocation22_spill] sm:$0xff] %v10510_v49  ;;  %12140 = vst [vmem:[#allocation23_spill] sm:$0xff] %v10512_v50 }
  0xc0   : > { %7548 = vmatmul.mubr.f32.gmra.mrb[8].mxu0 %v10498_v56  ;;  %v8907_v56 = vpack.c.bf16 %v6262_v29, %v6261_v23  ;;  %v10540_v23 = vld [vmem:[#allocation2 + $0xca] sm:$0xff]  ;;  %v10542_v29 = vld [vmem:[#allocation2 + $0xda] sm:$0xff] }
  0xc1   : > { %7550 = vmatprep.mubr.f32.mxu0 %v10500_v51  ;;  %8898 = vmatpush3.bf16.msra.mxu0 %v8895_v46  ;;  %v10522_v51 = vld [vmem:[#allocation2 + $0x9a] sm:$0xff]  ;;  %v10524_v46 = vld [vmem:[#allocation2 + $0xaa] sm:$0xff]  ;;  %12142 = vst [vmem:[#allocation25_spill] sm:$0xff] %v10540_v23  ;;  %12143 = vst [vmem:[#allocation26_spill] sm:$0xff] %v10542_v29 }
  0xc2   : > { %8900 = vmatprep.subr.bf16.mxu0 %v8899_v52  ;;  %12141 = vst [vmem:[#allocation24_spill] sm:$0xff] %v10524_v46 }
  0xc4   : > { %7551 = vmatmul.mubr.f32.gmra.mrb[10].mxu0 %v10510_v49  ;;  %v8911_v49 = vpack.c.bf16 %v6264_v48, %v6263_v47  ;;  %v10552_v47 = vld [vmem:[#allocation2 + $0xfa] sm:$0xff]  ;;  %v10554_v48 = vld [vmem:[#allocation2 + $0x10a] sm:$0xff] }
  0xc5   : > { %7553 = vmatprep.mubr.f32.mxu0 %v10512_v50  ;;  %8902 = vmatpush3.bf16.msra.mxu0 %v8899_v52  ;;  %v10534_v50 = vld [vmem:[#allocation2 + $0xb2] sm:$0xff]  ;;  %v10536_v52 = vld [vmem:[#allocation2 + $0xc2] sm:$0xff]  ;;  %12146 = vst [vmem:[#allocation29_spill] sm:$0xff] %v10552_v47  ;;  %12147 = vst [vmem:[#allocation30_spill] sm:$0xff] %v10554_v48 }
  0xc6   : > { %8904 = vmatprep.subr.bf16.mxu0 %v8903_v43 }
  0xc8   : > { %7554 = vmatmul.mubr.f32.gmra.mrb[12].mxu0 %v10522_v51 }
  0xc9   : > { %7556 = vmatprep.mubr.f32.mxu0 %v10524_v46  ;;  %8906 = vmatpush3.bf16.msra.mxu0 %v8903_v43  ;;  %v10546_v46 = vld [vmem:[#allocation2 + $0xe2] sm:$0xff]  ;;  %v10548_v43 = vld [vmem:[#allocation2 + $0xf2] sm:$0xff] }
  0xca   : > { %8908 = vmatprep.subr.bf16.mxu0 %v8907_v56  ;;  %12144 = vst [vmem:[#allocation27_spill] sm:$0xff] %v10546_v46  ;;  %12145 = vst [vmem:[#allocation28_spill] sm:$0xff] %v10548_v43 }
  0xcc   : > { %7557 = vmatmul.mubr.f32.gmra.mrb[14].mxu0 %v10534_v50 }
  0xcd   : > { %7559 = vmatprep.mubr.f32.mxu0 %v10536_v52  ;;  %8910 = vmatpush3.bf16.msra.mxu0 %v8907_v56  ;;  %v10558_v56 = vld [vmem:[#allocation2 + $0x112] sm:$0xff] }
  0xce   : > { %8912 = vmatprep.subr.bf16.mxu0 %v8911_v49  ;;  %12148 = vst [vmem:[#allocation31_spill] sm:$0xff] %v10558_v56 }
  0xd0   : > { %7560 = vmatmul.mubr.f32.gmra.mrb[16].mxu0 %v10540_v23  ;;  %v10560_v23 = vld [vmem:[#allocation2 + $0x122] sm:$0xff] }
  0xd1   : > { %7562 = vmatprep.mubr.f32.mxu0 %v10542_v29  ;;  %12149 = vst [vmem:[#allocation32_spill] sm:$0xff] %v10560_v23  ;;  %v10564_v29 = vld [vmem:[#allocation2 + $0x12a] sm:$0xff] }
  0xd2   : > { %12150 = vst [vmem:[#allocation33_spill] sm:$0xff] %v10564_v29 }
  0xd4   : > { %7563 = vmatmul.mubr.f32.gmra.mrb[18].mxu0 %v10546_v46  ;;  %v10566_v46 = vld [vmem:[#allocation2 + $0x13a] sm:$0xff] }
  0xd5   : > { %7565 = vmatprep.mubr.f32.mxu0 %v10548_v43  ;;  %12151 = vst [vmem:[#allocation34_spill] sm:$0xff] %v10566_v46  ;;  %v10570_v43 = vld [vmem:[#allocation2 + $0x142] sm:$0xff] }
  0xd6   : > { %12152 = vst [vmem:[#allocation35_spill] sm:$0xff] %v10570_v43 }
  0xd8   : > { %7566 = vmatmul.mubr.f32.gmra.mrb[20].mxu0 %v10552_v47  ;;  %v10572_v47 = vld [vmem:[#allocation2 + $0x152] sm:$0xff] }
  0xd9   : > { %7568 = vmatprep.mubr.f32.mxu0 %v10554_v48  ;;  %12153 = vst [vmem:[#allocation36_spill] sm:$0xff] %v10572_v47  ;;  %v10576_v48 = vld [vmem:[#allocation2 + $0x15a] sm:$0xff] }
  0xda   : > { %12154 = vst [vmem:[#allocation37_spill] sm:$0xff] %v10576_v48 }
  0xdc   : > { %7569 = vmatmul.mubr.f32.gmra.mrb[22].mxu0 %v10558_v56  ;;  %v10578_v56 = vld [vmem:[#allocation2 + $0x16a] sm:$0xff] }
  0xdd   : > { %7571 = vmatprep.mubr.f32.mxu0 %v10560_v23  ;;  %12155 = vst [vmem:[#allocation38_spill] sm:$0xff] %v10578_v56  ;;  %v10582_v23 = vld [vmem:[#allocation2 + $0x172] sm:$0xff] }
  0xe0   : > { %7572 = vmatmul.mubr.f32.gmra.mrb[24].mxu0 %v10564_v29 }
  0xe1   : > { %7574 = vmatprep.mubr.f32.mxu0 %v10566_v46  ;;  %v6265_v46 = vld [vmem:[%s12044_s1 + $0x210] sm:$0xff] }
  0xe4   : > { %7575 = vmatmul.mubr.f32.gmra.mrb[26].mxu0 %v10570_v43  ;;  %v6266_v43 = vld [vmem:[%s12044_s1 + $0x218] sm:$0xff] }
  0xe5   : > { %7577 = vmatprep.mubr.f32.mxu0 %v10572_v47  ;;  %v8915_v47 = vpack.c.bf16 %v6266_v43, %v6265_v46  ;;  %v6270_v46 = vld [vmem:[%s12044_s1 + $0x238] sm:$0xff]  ;;  %v6272_v43 = vld [vmem:[%s12044_s1 + $0x248] sm:$0xff] }
  0xe8   : > { %7578 = vmatmul.mubr.f32.gmra.mrb[28].mxu0 %v10576_v48  ;;  %v6267_v48 = vld [vmem:[%s12044_s1 + $0x220] sm:$0xff] }
  0xe9   : > { %7580 = vmatprep.mubr.f32.mxu0 %v10578_v56  ;;  %v6268_v56 = vld [vmem:[%s12044_s1 + $0x228] sm:$0xff] }
  0xea   : > { %v8919_v29 = vpack.c.bf16 %v6268_v56, %v6267_v48  ;;  %v6274_v56 = vld [vmem:[%s12044_s1 + $0x258] sm:$0xff] }
  0xec   : > { %7581 = vmatmul.mubr.f32.gmra.mrb[30].mxu0 %v10582_v23 }
  0xed   : > { %7615 = vmatprep.mubr.f32.mxu0 %v10306_v53  ;;  %v6269_v53 = vld [vmem:[%s12044_s1 + $0x230] sm:$0xff] }
  0xf0   : > { %7616 = vmatmul.mubr.f32.vlgmr.msra.gmra.mrb[0].mxu0 %v10316_v57  ;;  %v8923_v57 = vpack.c.bf16 %v6270_v46, %v6269_v53  ;;  %v6276_v46 = vld [vmem:[%s12044_s1 + $0x268] sm:$0xff] }
  0xf1   : > { %8914 = vmatpush3.bf16.msra.mxu0 %v8911_v49  ;;  %7618 = vmatprep.mubr.f32.mxu0 %v10318_v58  ;;  %v6271_v49 = vld [vmem:[%s12044_s1 + $0x240] sm:$0xff] }
  0xf2   : > { %8916 = vmatprep.subr.bf16.mxu0 %v8915_v47  ;;  %v8927_v48 = vpack.c.bf16 %v6272_v43, %v6271_v49  ;;  %v6278_v43 = vld [vmem:[%s12044_s1 + $0x278] sm:$0xff] }
  0xf4   : > { %7619 = vmatmul.mubr.f32.gmra.mrb[2].mxu0 %v10328_v5 }
  0xf5   : > { %7621 = vmatprep.mubr.f32.mxu0 %v10330_v62  ;;  %8918 = vmatpush3.bf16.msra.mxu0 %v8915_v47  ;;  %v6273_v47 = vld [vmem:[%s12044_s1 + $0x250] sm:$0xff] }
  0xf6   : > { %8920 = vmatprep.subr.bf16.mxu0 %v8919_v29  ;;  %v8931_v53 = vpack.c.bf16 %v6274_v56, %v6273_v47  ;;  %v6280_v56 = vld [vmem:[%s12044_s1 + $0x288] sm:$0xff] }
  0xf8   : > { %7622 = vmatmul.mubr.f32.gmra.mrb[4].mxu0 %v10340_v2 }
  0xf9   : > { %7624 = vmatprep.mubr.f32.mxu0 %v10342_v3  ;;  %8922 = vmatpush3.bf16.msra.mxu0 %v8919_v29  ;;  %v6275_v29 = vld [vmem:[%s12044_s1 + $0x260] sm:$0xff] }
  0xfa   : > { %8924 = vmatprep.subr.bf16.mxu0 %v8923_v57  ;;  %v8935_v49 = vpack.c.bf16 %v6276_v46, %v6275_v29  ;;  %v10666_v46 = vld [vmem:[#allocation2 + $0x188] sm:$0xff] }
  0xfc   : > { %7625 = vmatmul.mubr.f32.gmra.mrb[6].mxu0 %v10352_v8 }
  0xfd   : > { %7627 = vmatprep.mubr.f32.mxu0 %v10354_v9  ;;  %8926 = vmatpush3.bf16.msra.mxu0 %v8923_v57  ;;  %v6277_v57 = vld [vmem:[%s12044_s1 + $0x270] sm:$0xff] }
  0xfe   : > { %8928 = vmatprep.subr.bf16.mxu0 %v8927_v48  ;;  %v8939_v47 = vpack.c.bf16 %v6278_v43, %v6277_v57  ;;  %v6282_v57 = vld [vmem:[%s12044_s1 + $0x298] sm:$0xff] }
 0x100   : > { %7628 = vmatmul.mubr.f32.gmra.mrb[8].mxu0 %v10364_v18 }
 0x101   : > { %7630 = vmatprep.mubr.f32.mxu0 %v10366_v22  ;;  %8930 = vmatpush3.bf16.msra.mxu0 %v8927_v48  ;;  %v6279_v48 = vld [vmem:[%s12044_s1 + $0x280] sm:$0xff] }
 0x102   : > { %8932 = vmatprep.subr.bf16.mxu0 %v8931_v53  ;;  %v8943_v29 = vpack.c.bf16 %v6280_v56, %v6279_v48  ;;  %v6284_v48 = vld [vmem:[%s12044_s1 + $0x2a8] sm:$0xff] }
 0x104   : > { %7631 = vmatmul.mubr.f32.gmra.mrb[10].mxu0 %v10376_v34 }
 0x105   : > { %7633 = vmatprep.mubr.f32.mxu0 %v10378_v40  ;;  %8934 = vmatpush3.bf16.msra.mxu0 %v8931_v53  ;;  %v10662_v53 = vld [vmem:[#allocation2 + $0x180] sm:$0xff] }
 0x106   : > { %8936 = vmatprep.subr.bf16.mxu0 %v8935_v49 }
 0x108   : > { %7634 = vmatmul.mubr.f32.gmra.mrb[12].mxu0 %v10388_v54 }
 0x109   : > { %7636 = vmatprep.mubr.f32.mxu0 %v10390_v55  ;;  %8938 = vmatpush3.bf16.msra.mxu0 %v8935_v49  ;;  %v6281_v49 = vld [vmem:[%s12044_s1 + $0x290] sm:$0xff] }
 0x10a   : > { %8940 = vmatprep.subr.bf16.mxu0 %v8939_v47  ;;  %v8947_v43 = vpack.c.bf16 %v6282_v57, %v6281_v49  ;;  %v6286_v49 = vld [vmem:[%s12044_s1 + $0x2b8] sm:$0xff] }
 0x10b   : > { %v6290_v57 = vld [vmem:[%s12044_s1 + $0x2d8] sm:$0xff] }
 0x10c   : > { %7637 = vmatmul.mubr.f32.gmra.mrb[14].mxu0 %v10394_v59 }
 0x10d   : > { %7639 = vmatprep.mubr.f32.mxu0 %v10396_v60  ;;  %8942 = vmatpush3.bf16.msra.mxu0 %v8939_v47  ;;  %v6283_v47 = vld [vmem:[%s12044_s1 + $0x2a0] sm:$0xff] }
 0x10e   : > { %8944 = vmatprep.subr.bf16.mxu0 %v8943_v29  ;;  %v8951_v56 = vpack.c.bf16 %v6284_v48, %v6283_v47  ;;  %v6294_v47 = vld [vmem:[%s12044_s1 + $0x2f8] sm:$0xff]  ;;  %v6296_v48 = vld [vmem:[%s12044_s1 + $0x308] sm:$0xff] }
 0x110   : > { %7640 = vmatmul.mubr.f32.gmra.mrb[16].mxu0 %v10400_v61 }
 0x111   : > { %7642 = vmatprep.mubr.f32.mxu0 %v10402_v63 }
 0x114   : > { %7643 = vmatmul.mubr.f32.gmra.mrb[18].mxu0 %v10406_v0 }
 0x115   : > { %7645 = vmatprep.mubr.f32.mxu0 %v10408_v1 }
 0x118   : > { %7646 = vmatmul.mubr.f32.gmra.mrb[20].mxu0 %v10412_v4 }
 0x119   : > { %7648 = vmatprep.mubr.f32.mxu0 %v10414_v6 }
 0x11c   : > { %7649 = vmatmul.mubr.f32.gmra.mrb[22].mxu0 %v10418_v7 }
 0x11d   : > { %7651 = vmatprep.mubr.f32.mxu0 %v10420_v10 }
 0x120   : > { %7652 = vmatmul.mubr.f32.gmra.mrb[24].mxu0 %v10424_v11 }
 0x121   : > { %7654 = vmatprep.mubr.f32.mxu0 %v10426_v16 }
 0x124   : > { %7655 = vmatmul.mubr.f32.gmra.mrb[26].mxu0 %v10438_v33 }
 0x125   : > { %7657 = vmatprep.mubr.f32.mxu0 %v10440_v44 }
 0x128   : > { %7658 = vmatmul.mubr.f32.gmra.mrb[28].mxu0 %v10444_v45 }
 0x129   : > { %7660 = vmatprep.mubr.f32.mxu0 %v10662_v53 }
 0x12c   : > { %7661 = vmatmul.mubr.f32.gmra.mrb[30].mxu0 %v10666_v46 }
 0x12d   : > { %7695 = vmatprep.mubr.f32.mxu0 %v10072_v12  ;;  %v6285_v12 = vld [vmem:[%s12044_s1 + $0x2b0] sm:$0xff] }
 0x130   : > { %7696 = vmatmul.mubr.f32.vlgmr.msra.gmra.mrb[0].mxu0 %v10075_v13  ;;  %v8955_v13 = vpack.c.bf16 %v6286_v49, %v6285_v12  ;;  %v6299_v49 = vld [vmem:[%s12044_s1 + $0x320] sm:$0xff] }
 0x131   : > { %8946 = vmatpush3.bf16.msra.mxu0 %v8943_v29  ;;  %7698 = vmatprep.mubr.f32.mxu0 %v10078_v14  ;;  %v6287_v14 = vld [vmem:[%s12044_s1 + $0x2c0] sm:$0xff]  ;;  %v6288_v29 = vld [vmem:[%s12044_s1 + $0x2c8] sm:$0xff] }
 0x132   : > { %8948 = vmatprep.subr.bf16.mxu0 %v8947_v43 }
 0x134   : > { %7699 = vmatmul.mubr.f32.gmra.mrb[2].mxu0 %v10084_v15  ;;  %v8959_v15 = vpack.c.bf16 %v6288_v29, %v6287_v14  ;;  %v12166_v14 = vld [vmem:[#allocation14_spill] sm:$0xff]  ;;  %v12167_v29 = vld [vmem:[#allocation15_spill] sm:$0xff] }
 0x135   : > { %7701 = vmatprep.mubr.f32.mxu0 %v10088_v17  ;;  %8950 = vmatpush3.bf16.msra.mxu0 %v8947_v43  ;;  %v6289_v17 = vld [vmem:[%s12044_s1 + $0x2d0] sm:$0xff]  ;;  %v6292_v43 = vld [vmem:[%s12044_s1 + $0x2e8] sm:$0xff] }
 0x136   : > { %8952 = vmatprep.subr.bf16.mxu0 %v8951_v56 }
 0x138   : > { %7702 = vmatmul.mubr.f32.gmra.mrb[4].mxu0 %v10092_v19  ;;  %v8963_v19 = vpack.c.bf16 %v6290_v57, %v6289_v17  ;;  %v6301_v17 = vld [vmem:[%s12044_s1 + $0x330] sm:$0xff]  ;;  %v6302_v57 = vld [vmem:[%s12044_s1 + $0x338] sm:$0xff] }
 0x139   : > { %7704 = vmatprep.mubr.f32.mxu0 %v10095_v20  ;;  %8954 = vmatpush3.bf16.msra.mxu0 %v8951_v56  ;;  %v6291_v20 = vld [vmem:[%s12044_s1 + $0x2e0] sm:$0xff]  ;;  %v12165_v56 = vld [vmem:[#allocation13_spill] sm:$0xff] }
 0x13a   : > { %8956 = vmatprep.subr.bf16.mxu0 %v8955_v13 }
 0x13c   : > { %7705 = vmatmul.mubr.f32.gmra.mrb[6].mxu0 %v10098_v21  ;;  %v8967_v21 = vpack.c.bf16 %v6292_v43, %v6291_v20  ;;  %v12169_v20 = vld [vmem:[#allocation17_spill] sm:$0xff]  ;;  %v8987_v43 = vpack.c.bf16 %v6302_v57, %v6301_v17  ;;  %v12182_v57 = vld [vmem:[#allocation30_spill] sm:$0xff] }
 0x13d   : > { %7707 = vmatprep.mubr.f32.mxu0 %v10110_v24  ;;  %8958 = vmatpush3.bf16.msra.mxu0 %v8955_v13  ;;  %v6293_v24 = vld [vmem:[%s12044_s1 + $0x2f0] sm:$0xff]  ;;  %v6300_v13 = vld [vmem:[%s12044_s1 + $0x328] sm:$0xff] }
 0x13e   : > { %8960 = vmatprep.subr.bf16.mxu0 %v8959_v15  ;;  %v12181_v17 = vld [vmem:[#allocation29_spill] sm:$0xff] }
 0x140   : > { %7708 = vmatmul.mubr.f32.gmra.mrb[8].mxu0 %v10114_v25  ;;  %v8971_v25 = vpack.c.bf16 %v6294_v47, %v6293_v24  ;;  %v6304_v24 = vld [vmem:[%s12044_s1 + $0x348] sm:$0xff]  ;;  %v12170_v47 = vld [vmem:[#allocation18_spill] sm:$0xff] }
 0x141   : > { %7710 = vmatprep.mubr.f32.mxu0 %v10117_v26  ;;  %8962 = vmatpush3.bf16.msra.mxu0 %v8959_v15  ;;  %v6295_v26 = vld [vmem:[%s12044_s1 + $0x300] sm:$0xff]  ;;  %v8983_v15 = vpack.c.bf16 %v6300_v13, %v6299_v49  ;;  %v6312_v49 = vld [vmem:[%s12044_s1 + $0x388] sm:$0xff] }
 0x142   : > { %8964 = vmatprep.subr.bf16.mxu0 %v8963_v19  ;;  %v12177_v13 = vld [vmem:[#allocation25_spill] sm:$0xff] }
 0x144   : > { %7711 = vmatmul.mubr.f32.gmra.mrb[10].mxu0 %v10120_v27  ;;  %v8975_v27 = vpack.c.bf16 %v6296_v48, %v6295_v26  ;;  %v6305_v48 = vld [vmem:[%s12044_s1 + $0x350] sm:$0xff] }
 0x145   : > { %7713 = vmatprep.mubr.f32.mxu0 %v10126_v28  ;;  %8966 = vmatpush3.bf16.msra.mxu0 %v8963_v19  ;;  %v12156_v28 = vld [vmem:[#allocation4_spill] sm:$0xff] }
 0x146   : > { %8968 = vmatprep.subr.bf16.mxu0 %v8967_v21  ;;  %v12168_v19 = vld [vmem:[#allocation16_spill] sm:$0xff] }
 0x148   : > { %7714 = vmatmul.mubr.f32.gmra.mrb[12].mxu0 %v10130_v30  ;;  %v12157_v30 = vld [vmem:[#allocation5_spill] sm:$0xff] }
 0x149   : > { %7716 = vmatprep.mubr.f32.mxu0 %v10133_v31  ;;  %8970 = vmatpush3.bf16.msra.mxu0 %v8967_v21  ;;  %v12158_v31 = vld [vmem:[#allocation6_spill] sm:$0xff]  ;;  %v6303_v21 = vld [vmem:[%s12044_s1 + $0x340] sm:$0xff] }
 0x14a   : > { %8972 = vmatprep.subr.bf16.mxu0 %v8971_v25  ;;  %v8991_v26 = vpack.c.bf16 %v6304_v24, %v6303_v21  ;;  %v12188_v21 = vld [vmem:[#allocation36_spill] sm:$0xff]  ;;  %v12189_v24 = vld [vmem:[#allocation37_spill] sm:$0xff] }
 0x14c   : > { %7717 = vmatmul.mubr.f32.gmra.mrb[14].mxu0 %v10136_v32  ;;  %v12159_v32 = vld [vmem:[#allocation7_spill] sm:$0xff] }
 0x14d   : > { %7719 = vmatprep.mubr.f32.mxu0 %v10148_v35  ;;  %8974 = vmatpush3.bf16.msra.mxu0 %v8971_v25  ;;  %v12160_v35 = vld [vmem:[#allocation8_spill] sm:$0xff]  ;;  %v12171_v25 = vld [vmem:[#allocation19_spill] sm:$0xff] }
 0x14e   : > { %8976 = vmatprep.subr.bf16.mxu0 %v8975_v27 }
 0x150   : > { %7720 = vmatmul.mubr.f32.gmra.mrb[16].mxu0 %v10152_v36  ;;  %v12161_v36 = vld [vmem:[#allocation9_spill] sm:$0xff] }
 0x151   : > { %7722 = vmatprep.mubr.f32.mxu0 %v10155_v37  ;;  %v12162_v37 = vld [vmem:[#allocation10_spill] sm:$0xff] }
 0x154   : > { %7723 = vmatmul.mubr.f32.gmra.mrb[18].mxu0 %v10158_v38  ;;  %v12163_v38 = vld [vmem:[#allocation11_spill] sm:$0xff] }
 0x155   : > { %7725 = vmatprep.mubr.f32.mxu0 %v10164_v39  ;;  %v6297_v39 = vld [vmem:[%s12044_s1 + $0x310] sm:$0xff] }
 0x158   : > { %7726 = vmatmul.mubr.f32.gmra.mrb[20].mxu0 %v10168_v41  ;;  %v6298_v41 = vld [vmem:[%s12044_s1 + $0x318] sm:$0xff] }
 0x159   : > { %7728 = vmatprep.mubr.f32.mxu0 %v10171_v42  ;;  %v12164_v42 = vld [vmem:[#allocation12_spill] sm:$0xff]  ;;  %v8979_v12 = vpack.c.bf16 %v6298_v41, %v6297_v39  ;;  %v6309_v39 = vld [vmem:[%s12044_s1 + $0x370] sm:$0xff]  ;;  %v6310_v41 = vld [vmem:[%s12044_s1 + $0x378] sm:$0xff] }
 0x15c   : > { %7729 = vmatmul.mubr.f32.gmra.mrb[22].mxu0 %v12156_v28  ;;  %v12172_v28 = vld [vmem:[#allocation20_spill] sm:$0xff] }
 0x15d   : > { %7731 = vmatprep.mubr.f32.mxu0 %v12157_v30  ;;  %v12173_v30 = vld [vmem:[#allocation21_spill] sm:$0xff] }
 0x160   : > { %7732 = vmatmul.mubr.f32.gmra.mrb[24].mxu0 %v12158_v31 }
 0x161   : > { %7734 = vmatprep.mubr.f32.mxu0 %v12159_v32  ;;  %v6307_v32 = vld [vmem:[%s12044_s1 + $0x360] sm:$0xff] }
 0x164   : > { %7735 = vmatmul.mubr.f32.gmra.mrb[26].mxu0 %v12160_v35  ;;  %v6308_v35 = vld [vmem:[%s12044_s1 + $0x368] sm:$0xff] }
 0x165   : > { %7737 = vmatprep.mubr.f32.mxu0 %v12161_v36  ;;  %v12174_v36 = vld [vmem:[#allocation22_spill] sm:$0xff] }
 0x168   : > { %7738 = vmatmul.mubr.f32.gmra.mrb[28].mxu0 %v12162_v37  ;;  %v12175_v37 = vld [vmem:[#allocation23_spill] sm:$0xff] }
 0x169   : > { %7740 = vmatprep.mubr.f32.mxu0 %v12163_v38  ;;  %v8999_v38 = vpack.c.bf16 %v6308_v35, %v6307_v32  ;;  %v6318_v32 = vld [vmem:[%s12044_s1 + $0x3b8] sm:$0xff]  ;;  %v6320_v35 = vld [vmem:[%s12044_s1 + $0x3c8] sm:$0xff] }
 0x16c   : > { %7741 = vmatmul.mubr.f32.gmra.mrb[30].mxu0 %v12164_v42  ;;  %v12176_v42 = vld [vmem:[#allocation24_spill] sm:$0xff] }
 0x16d   : > { %7775 = vmatprep.mubr.f32.mxu0 %v12165_v56  ;;  %v9003_v56 = vpack.c.bf16 %v6310_v41, %v6309_v39  ;;  %v6328_v39 = vld [vmem:[%s12044_s1 + $0x408] sm:$0xff] }
 0x16e   : > { %v2505_v41 = vld [vmem:[#allocation2 + $0x61] sm:$0xff] }
 0x170   : > { %7776 = vmatmul.mubr.f32.vlgmr.msra.gmra.mrb[0].mxu0 %v12166_v14  ;;  %v12178_v14 = vld [vmem:[#allocation26_spill] sm:$0xff] }
 0x171   : > { %8978 = vmatpush3.bf16.msra.mxu0 %v8975_v27  ;;  %7778 = vmatprep.mubr.f32.mxu0 %v12167_v29  ;;  %v6306_v27 = vld [vmem:[%s12044_s1 + $0x358] sm:$0xff] }
 0x172   : > { %8980 = vmatprep.subr.bf16.mxu0 %v8979_v12  ;;  %v8995_v31 = vpack.c.bf16 %v6306_v27, %v6305_v48  ;;  %v12179_v29 = vld [vmem:[#allocation27_spill] sm:$0xff]  ;;  %v6313_v48 = vld [vmem:[%s12044_s1 + $0x390] sm:$0xff] }
 0x173   : > { %v6314_v27 = vld [vmem:[%s12044_s1 + $0x398] sm:$0xff] }
 0x174   : > { %7779 = vmatmul.mubr.f32.gmra.mrb[2].mxu0 %v12168_v19  ;;  %v12185_v19 = vld [vmem:[#allocation33_spill] sm:$0xff] }
 0x175   : > { %7781 = vmatprep.mubr.f32.mxu0 %v12169_v20  ;;  %8982 = vmatpush3.bf16.msra.mxu0 %v8979_v12  ;;  %v6311_v12 = vld [vmem:[%s12044_s1 + $0x380] sm:$0xff]  ;;  %v12186_v20 = vld [vmem:[#allocation34_spill] sm:$0xff] }
 0x176   : > { %8984 = vmatprep.subr.bf16.mxu0 %v8983_v15 }
 0x178   : > { %7782 = vmatmul.mubr.f32.gmra.mrb[4].mxu0 %v12170_v47  ;;  %v12190_v47 = vld [vmem:[#allocation38_spill] sm:$0xff] }
 0x179   : > { %7784 = vmatprep.mubr.f32.mxu0 %v12171_v25  ;;  %8986 = vmatpush3.bf16.msra.mxu0 %v8983_v15  ;;  %v12180_v15 = vld [vmem:[#allocation28_spill] sm:$0xff] }
 0x17a   : > { %8988 = vmatprep.subr.bf16.mxu0 %v8987_v43  ;;  %v10826_v25 = vld [vmem:[#allocation2 + $0x182] sm:$0xff] }
 0x17c   : > { %7785 = vmatmul.mubr.f32.gmra.mrb[6].mxu0 %v12172_v28  ;;  %v9011_v28 = vpack.c.bf16 %v6314_v27, %v6313_v48  ;;  %v6338_v48 = vld [vmem:[%s12044_s1 + $0x458] sm:$0xff] }
 0x17d   : > { %7787 = vmatprep.mubr.f32.mxu0 %v12173_v30  ;;  %8990 = vmatpush3.bf16.msra.mxu0 %v8987_v43  ;;  %v12187_v43 = vld [vmem:[#allocation35_spill] sm:$0xff]  ;;  %v6316_v30 = vld [vmem:[%s12044_s1 + $0x3a8] sm:$0xff] }
 0x17e   : > { %8992 = vmatprep.subr.bf16.mxu0 %v8991_v26  ;;  %v2510_v27 = vld [vmem:[#allocation2 + $0x99] sm:$0xff] }
 0x180   : > { %7788 = vmatmul.mubr.f32.gmra.mrb[8].mxu0 %v12174_v36  ;;  %v6322_v36 = vld [vmem:[%s12044_s1 + $0x3d8] sm:$0xff] }
 0x181   : > { %7790 = vmatprep.mubr.f32.mxu0 %v12175_v37  ;;  %8994 = vmatpush3.bf16.msra.mxu0 %v8991_v26  ;;  %v10830_v26 = vld [vmem:[#allocation2 + $0x18a] sm:$0xff] }
 0x182   : > { %8996 = vmatprep.subr.bf16.mxu0 %v8995_v31  ;;  %v6324_v37 = vld [vmem:[%s12044_s1 + $0x3e8] sm:$0xff] }
 0x184   : > { %7791 = vmatmul.mubr.f32.gmra.mrb[10].mxu0 %v10522_v51  ;;  %v9007_v51 = vpack.c.bf16 %v6312_v49, %v6311_v12  ;;  %v6334_v49 = vld [vmem:[%s12044_s1 + $0x438] sm:$0xff] }
 0x185   : > { %7793 = vmatprep.mubr.f32.mxu0 %v12176_v42  ;;  %8998 = vmatpush3.bf16.msra.mxu0 %v8995_v31 }
 0x186   : > { %9000 = vmatprep.subr.bf16.mxu0 %v8999_v38 }
 0x188   : > { %7794 = vmatmul.mubr.f32.gmra.mrb[12].mxu0 %v10534_v50  ;;  %v12183_v50 = vld [vmem:[#allocation31_spill] sm:$0xff] }
 0x189   : > { %7796 = vmatprep.mubr.f32.mxu0 %v10536_v52  ;;  %9002 = vmatpush3.bf16.msra.mxu0 %v8999_v38  ;;  %v12184_v52 = vld [vmem:[#allocation32_spill] sm:$0xff]  ;;  %v6326_v38 = vld [vmem:[%s12044_s1 + $0x3f8] sm:$0xff] }
 0x18a   : > { %9004 = vmatprep.subr.bf16.mxu0 %v9003_v56 }
 0x18c   : > { %7797 = vmatmul.mubr.f32.gmra.mrb[14].mxu0 %v12177_v13  ;;  %v6352_v13 = vld [vmem:[%s12047_s4 + $0xb8] sm:$0xff] }
 0x18d   : > { %7799 = vmatprep.mubr.f32.mxu0 %v12178_v14  ;;  %9006 = vmatpush3.bf16.msra.mxu0 %v9003_v56  ;;  %v6333_v56 = vld [vmem:[%s12044_s1 + $0x430] sm:$0xff] }
 0x18e   : > { %9008 = vmatprep.subr.bf16.mxu0 %v9007_v51  ;;  %v2506_v14 = vld [vmem:[#allocation2 + $0x69] sm:$0xff] }
 0x190   : > { %7800 = vmatmul.mubr.f32.gmra.mrb[16].mxu0 %v12179_v29  ;;  %v2507_v29 = vld [vmem:[#allocation2 + $0x79] sm:$0xff] }
 0x191   : > { %7802 = vmatprep.mubr.f32.mxu0 %v12180_v15  ;;  %v9051_v15 = vpack.c.bf16 %v6334_v49, %v6333_v56  ;;  %v2819_v56 = vld [vmem:[#allocation2 + $0xc2] sm:$0xff]  ;;  %v2821_v49 = vld [vmem:[#allocation2 + $0xda] sm:$0xff] }
 0x194   : > { %7803 = vmatmul.mubr.f32.gmra.mrb[18].mxu0 %v12181_v17  ;;  %v6335_v17 = vld [vmem:[%s12044_s1 + $0x440] sm:$0xff] }
 0x195   : > { %7805 = vmatprep.mubr.f32.mxu0 %v12182_v57 }
 0x198   : > { %7806 = vmatmul.mubr.f32.gmra.mrb[20].mxu0 %v12183_v50  ;;  %v6336_v50 = vld [vmem:[%s12044_s1 + $0x448] sm:$0xff] }
 0x199   : > { %7808 = vmatprep.mubr.f32.mxu0 %v12184_v52  ;;  %v6353_v52 = vld [vmem:[%s12047_s4 + $0xc0] sm:$0xff] }
 0x19c   : > { %7809 = vmatmul.mubr.f32.gmra.mrb[22].mxu0 %v12185_v19  ;;  %v6354_v19 = vld [vmem:[%s12047_s4 + $0xc8] sm:$0xff] }
 0x19d   : > { %7811 = vmatprep.mubr.f32.mxu0 %v12186_v20  ;;  %v2508_v20 = vld [vmem:[#allocation2 + $0x81] sm:$0xff] }
 0x1a0   : > { %7812 = vmatmul.mubr.f32.gmra.mrb[24].mxu0 %v12187_v43  ;;  %v2509_v43 = vld [vmem:[#allocation2 + $0x91] sm:$0xff] }
 0x1a1   : > { %7814 = vmatprep.mubr.f32.mxu0 %v12188_v21  ;;  %v9055_v21 = vpack.c.bf16 %v6336_v50, %v6335_v17  ;;  %v2827_v17 = vld [vmem:[#allocation2 + $0x122] sm:$0xff]  ;;  %v2829_v50 = vld [vmem:[#allocation2 + $0x13a] sm:$0xff] }
 0x1a4   : > { %7815 = vmatmul.mubr.f32.gmra.mrb[26].mxu0 %v12189_v24  ;;  %v9087_v24 = vpack.c.bf16 %v6354_v19, %v6353_v52  ;;  %v2830_v52 = vld [vmem:[#allocation2 + $0x142] sm:$0xff]  ;;  %v2831_v19 = vld [vmem:[#allocation2 + $0x152] sm:$0xff] }
 0x1a5   : > { %7817 = vmatprep.mubr.f32.mxu0 %v12190_v47  ;;  %v6337_v47 = vld [vmem:[%s12044_s1 + $0x450] sm:$0xff] }
 0x1a8   : > { %7818 = vmatmul.mubr.f32.gmra.mrb[28].mxu0 %v10582_v23  ;;  %v6315_v23 = vld [vmem:[%s12044_s1 + $0x3a0] sm:$0xff] }
 0x1a9   : > { %7820 = vmatprep.mubr.f32.mxu0 %v10826_v25  ;;  %v9015_v31 = vpack.c.bf16 %v6316_v30, %v6315_v23  ;;  %v9059_v23 = vpack.c.bf16 %v6338_v48, %v6337_v47  ;;  %v6339_v30 = vld [vmem:[%s12044_s1 + $0x460] sm:$0xff]  ;;  %v6355_v48 = vld [vmem:[%s12047_s4 + $0xd0] sm:$0xff] }
 0x1aa   : > { %v2838_v47 = vld [vmem:[#allocation2 + $0x1a2] sm:$0xff] }
 0x1ac   : > { %7821 = vmatmul.mubr.f32.gmra.mrb[30].mxu0 %v10830_v26 }
 0x1ad   : > { %7855 = vmatprep.mubr.f32.mxu0 %v10318_v58  ;;  %v6317_v58 = vld [vmem:[%s12044_s1 + $0x3b0] sm:$0xff] }
 0x1b0   : > { %7856 = vmatmul.mubr.f32.vlgmr.msra.gmra.mrb[0].mxu0 %v10328_v5  ;;  %v9019_v5 = vpack.c.bf16 %v6318_v32, %v6317_v58  ;;  %v2512_v58 = vld [vmem:[#allocation2 + $0xb1] sm:$0xff]  ;;  %v2513_v32 = vld [vmem:[#allocation2 + $0xc1] sm:$0xff] }
 0x1b1   : > { %9010 = vmatpush3.bf16.msra.mxu0 %v9007_v51  ;;  %7858 = vmatprep.mubr.f32.mxu0 %v10330_v62  ;;  %v6319_v62 = vld [vmem:[%s12044_s1 + $0x3c0] sm:$0xff]  ;;  %v6351_v51 = vld [vmem:[%s12047_s4 + $0xb0] sm:$0xff] }
 0x1b2   : > { %9012 = vmatprep.subr.bf16.mxu0 %v9011_v28  ;;  %v9083_v57 = vpack.c.bf16 %v6352_v13, %v6351_v51  ;;  %v2822_v51 = vld [vmem:[#allocation2 + $0xe2] sm:$0xff]  ;;  %v2823_v13 = vld [vmem:[#allocation2 + $0xf2] sm:$0xff] }
 0x1b4   : > { %7859 = vmatmul.mubr.f32.gmra.mrb[2].mxu0 %v10340_v2  ;;  %v9023_v2 = vpack.c.bf16 %v6320_v35, %v6319_v62  ;;  %v6341_v62 = vld [vmem:[%s12044_s1 + $0x470] sm:$0xff]  ;;  %v6342_v35 = vld [vmem:[%s12044_s1 + $0x478] sm:$0xff] }
 0x1b5   : > { %7861 = vmatprep.mubr.f32.mxu0 %v10342_v3  ;;  %9014 = vmatpush3.bf16.msra.mxu0 %v9011_v28  ;;  %v6321_v3 = vld [vmem:[%s12044_s1 + $0x3d0] sm:$0xff] }
 0x1b6   : > { %9016 = vmatprep.subr.bf16.mxu0 %v9015_v31  ;;  %v2511_v28 = vld [vmem:[#allocation2 + $0xa9] sm:$0xff] }
 0x1b8   : > { %7862 = vmatmul.mubr.f32.gmra.mrb[4].mxu0 %v10352_v8  ;;  %v9027_v8 = vpack.c.bf16 %v6322_v36, %v6321_v3  ;;  %v2515_v3 = vld [vmem:[#allocation2 + $0xd9] sm:$0xff]  ;;  %v9067_v36 = vpack.c.bf16 %v6342_v35, %v6341_v62  ;;  %v3288_v35 = vld [vmem:[%s12047_s4 + $0x8] sm:$0xff] }
 0x1b9   : > { %7864 = vmatprep.mubr.f32.mxu0 %v10354_v9  ;;  %9018 = vmatpush3.bf16.msra.mxu0 %v9015_v31  ;;  %v6323_v9 = vld [vmem:[%s12044_s1 + $0x3e0] sm:$0xff]  ;;  %v6340_v31 = vld [vmem:[%s12044_s1 + $0x468] sm:$0xff] }
 0x1ba   : > { %9020 = vmatprep.subr.bf16.mxu0 %v9019_v5  ;;  %v3287_v62 = vld [vmem:[%s12047_s4] sm:$0xff] }
 0x1bc   : > { %7865 = vmatmul.mubr.f32.gmra.mrb[6].mxu0 %v10364_v18  ;;  %v9031_v18 = vpack.c.bf16 %v6324_v37, %v6323_v9  ;;  %v2517_v9 = vld [vmem:[#allocation2 + $0xf1] sm:$0xff]  ;;  %v2518_v37 = vld [vmem:[#allocation2 + $0xf9] sm:$0xff] }
 0x1bd   : > { %7867 = vmatprep.mubr.f32.mxu0 %v10366_v22  ;;  %9022 = vmatpush3.bf16.msra.mxu0 %v9019_v5  ;;  %v6325_v22 = vld [vmem:[%s12044_s1 + $0x3f0] sm:$0xff]  ;;  %v9063_v5 = vpack.c.bf16 %v6340_v31, %v6339_v30  ;;  %v6360_v31 = vld [vmem:[%s12047_s4 + $0xf8] sm:$0xff] }
 0x1be   : > { %9024 = vmatprep.subr.bf16.mxu0 %v9023_v2  ;;  %v6359_v30 = vld [vmem:[%s12047_s4 + $0xf0] sm:$0xff] }
 0x1c0   : > { %7868 = vmatmul.mubr.f32.gmra.mrb[8].mxu0 %v10376_v34  ;;  %v9035_v34 = vpack.c.bf16 %v6326_v38, %v6325_v22  ;;  %v2520_v22 = vld [vmem:[#allocation2 + $0x111] sm:$0xff]  ;;  %v2521_v38 = vld [vmem:[#allocation2 + $0x121] sm:$0xff] }
 0x1c1   : > { %7870 = vmatprep.mubr.f32.mxu0 %v10378_v40  ;;  %9026 = vmatpush3.bf16.msra.mxu0 %v9023_v2  ;;  %v6327_v40 = vld [vmem:[%s12044_s1 + $0x400] sm:$0xff]  ;;  %v2514_v2 = vld [vmem:[#allocation2 + $0xc9] sm:$0xff] }
 0x1c2   : > { %9028 = vmatprep.subr.bf16.mxu0 %v9027_v8 }
 0x1c4   : > { %7871 = vmatmul.mubr.f32.gmra.mrb[10].mxu0 %v10388_v54  ;;  %v9039_v54 = vpack.c.bf16 %v6328_v39, %v6327_v40  ;;  %v2523_v40 = vld [vmem:[#allocation2 + $0x139] sm:$0xff]  ;;  %v2524_v39 = vld [vmem:[#allocation2 + $0x141] sm:$0xff] }
 0x1c5   : > { %7873 = vmatprep.mubr.f32.mxu0 %v10390_v55  ;;  %9030 = vmatpush3.bf16.msra.mxu0 %v9027_v8  ;;  %v10911_v55 = vld [vmem:[#allocation2] sm:$0xff] }
 0x1c6   : > { %9032 = vmatprep.subr.bf16.mxu0 %v9031_v18  ;;  %v2516_v8 = vld [vmem:[#allocation2 + $0xe1] sm:$0xff] }
 0x1c8   : > { %7874 = vmatmul.mubr.f32.gmra.mrb[12].mxu0 %v10394_v59  ;;  %v2501_v59 = vld [vmem:[#allocation2 + $0x31] sm:$0xff] }
 0x1c9   : > { %7876 = vmatprep.mubr.f32.mxu0 %v10396_v60  ;;  %9034 = vmatpush3.bf16.msra.mxu0 %v9031_v18  ;;  %v6329_v60 = vld [vmem:[%s12044_s1 + $0x410] sm:$0xff] }
 0x1ca   : > { %9036 = vmatprep.subr.bf16.mxu0 %v9035_v34  ;;  %v2519_v18 = vld [vmem:[#allocation2 + $0x109] sm:$0xff] }
 0x1cc   : > { %7877 = vmatmul.mubr.f32.gmra.mrb[14].mxu0 %v10400_v61  ;;  %v6330_v61 = vld [vmem:[%s12044_s1 + $0x418] sm:$0xff] }
 0x1cd   : > { %7879 = vmatprep.mubr.f32.mxu0 %v10402_v63  ;;  %9038 = vmatpush3.bf16.msra.mxu0 %v9035_v34  ;;  %v6345_v63 = vld [vmem:[%s12047_s4 + $0x80] sm:$0xff]  ;;  %v2522_v34 = vld [vmem:[#allocation2 + $0x129] sm:$0xff] }
 0x1ce   : > { %9040 = vmatprep.subr.bf16.mxu0 %v9039_v54 }
 0x1d0   : > { %7880 = vmatmul.mubr.f32.gmra.mrb[16].mxu0 %v10406_v0  ;;  %v6346_v0 = vld [vmem:[%s12047_s4 + $0x88] sm:$0xff] }
 0x1d1   : > { %7882 = vmatprep.mubr.f32.mxu0 %v10408_v1  ;;  %v6347_v1 = vld [vmem:[%s12047_s4 + $0x90] sm:$0xff] }
 0x1d4   : > { %7883 = vmatmul.mubr.f32.gmra.mrb[18].mxu0 %v10412_v4  ;;  %v2502_v4 = vld [vmem:[#allocation2 + $0x39] sm:$0xff] }
 0x1d5   : > { %7885 = vmatprep.mubr.f32.mxu0 %v10414_v6  ;;  %v9071_v6 = vpack.c.bf16 %v6346_v0, %v6345_v63  ;;  %v9881_v63 = vld [vmem:[#allocation2 + $0x181] sm:$0xff]  ;;  %v2531_v0 = vld [vmem:[#allocation2 + $0x199] sm:$0xff] }
 0x1d7   : > { %9072 = vmatprep.subr.bf16.mxu1 %v9071_v6 }
 0x1d8   : > { %7886 = vmatmul.mubr.f32.gmra.mrb[20].mxu0 %v10418_v7  ;;  %v6348_v7 = vld [vmem:[%s12047_s4 + $0x98] sm:$0xff]  ;;  %9074 = vmatpush3.bf16.msra.mxu1 %v9071_v6 }
 0x1d9   : > { %7888 = vmatprep.mubr.f32.mxu0 %v10420_v10  ;;  %v2503_v10 = vld [vmem:[#allocation2 + $0x49] sm:$0xff]  ;;  %v2807_v6 = vld [vmem:[#allocation2 + $0x32] sm:$0xff] }
 0x1dc   : > { %7889 = vmatmul.mubr.f32.gmra.mrb[22].mxu0 %v10424_v11  ;;  %v9043_v11 = vpack.c.bf16 %v6330_v61, %v6329_v60  ;;  %v2527_v60 = vld [vmem:[#allocation2 + $0x169] sm:$0xff]  ;;  %v2528_v61 = vld [vmem:[#allocation2 + $0x171] sm:$0xff] }
 0x1dd   : > { %7891 = vmatprep.mubr.f32.mxu0 %v10426_v16  ;;  %v6331_v16 = vld [vmem:[%s12044_s1 + $0x420] sm:$0xff] }
 0x1e0   : > { %7892 = vmatmul.mubr.f32.gmra.mrb[24].mxu0 %v10438_v33  ;;  %v9075_v33 = vpack.c.bf16 %v6348_v7, %v6347_v1  ;;  %v9882_v1 = vld [vmem:[#allocation2 + $0x189] sm:$0xff]  ;;  %v2808_v7 = vld [vmem:[#allocation2 + $0x3a] sm:$0xff] }
 0x1e1   : > { %7894 = vmatprep.mubr.f32.mxu0 %v10440_v44  ;;  %v6332_v44 = vld [vmem:[%s12044_s1 + $0x428] sm:$0xff] }
 0x1e2   : > { %v9047_v42 = vpack.c.bf16 %v6332_v44, %v6331_v16  ;;  %9076 = vmatprep.subr.bf16.mxu1 %v9075_v33  ;;  %v2811_v16 = vld [vmem:[#allocation2 + $0x62] sm:$0xff]  ;;  %v2813_v44 = vld [vmem:[#allocation2 + $0x7a] sm:$0xff] }
 0x1e3   : > { %9078 = vmatpush3.bf16.msra.mxu1 %v9075_v33  ;;  %v2812_v33 = vld [vmem:[#allocation2 + $0x6a] sm:$0xff] }
 0x1e4   : > { %7895 = vmatmul.mubr.f32.gmra.mrb[26].mxu0 %v10444_v45  ;;  %v6349_v45 = vld [vmem:[%s12047_s4 + $0xa0] sm:$0xff] }
 0x1e5   : > { %7897 = vmatprep.mubr.f32.mxu0 %v10662_v53  ;;  %v6350_v53 = vld [vmem:[%s12047_s4 + $0xa8] sm:$0xff] }
 0x1e6   : > { %v9079_v12 = vpack.c.bf16 %v6350_v53, %v6349_v45  ;;  %v2814_v45 = vld [vmem:[#allocation2 + $0x82] sm:$0xff]  ;;  %v2815_v53 = vld [vmem:[#allocation2 + $0x92] sm:$0xff] }
 0x1e8   : > { %7898 = vmatmul.mubr.f32.gmra.mrb[28].mxu0 %v10666_v46  ;;  %v2504_v46 = vld [vmem:[#allocation2 + $0x51] sm:$0xff]  ;;  %9080 = vmatprep.subr.bf16.mxu1 %v9079_v12 }
 0x1e9   : > { %7900 = vmatprep.mubr.f32.mxu0 %v10911_v55  ;;  %9082 = vmatpush3.bf16.msra.mxu1 %v9079_v12  ;;  %v2820_v12 = vld [vmem:[#allocation2 + $0xca] sm:$0xff] }
 0x1ea   : > { %9084 = vmatprep.subr.bf16.mxu1 %v9083_v57 }
 0x1ec   : > { %7901 = vmatmul.mubr.f32.gmra.mrb[30].mxu0 %v10911_v55 }
 0x1ed   : > { %7935 = vmatprep.mubr.f32.mxu0 %v2501_v59  ;;  %9086 = vmatpush3.bf16.msra.mxu1 %v9083_v57  ;;  %v2526_v59 = vld [vmem:[#allocation2 + $0x159] sm:$0xff]  ;;  %v2828_v57 = vld [vmem:[#allocation2 + $0x12a] sm:$0xff] }
 0x1ee   : > { %9088 = vmatprep.subr.bf16.mxu1 %v9087_v24 }
 0x1f0   : > { %7936 = vmatmul.mubr.f32.vlgmr.msra.gmra.mrb[0].mxu0 %v2502_v4  ;;  %v2532_v4 = vld [vmem:[#allocation2 + $0x1a1] sm:$0xff] }
 0x1f1   : > { %9042 = vmatpush3.bf16.msra.mxu0 %v9039_v54  ;;  %7938 = vmatprep.mubr.f32.mxu0 %v2503_v10  ;;  %v2525_v54 = vld [vmem:[#allocation2 + $0x151] sm:$0xff] }
 0x1f2   : > { %9044 = vmatprep.subr.bf16.mxu0 %v9043_v11  ;;  %9090 = vmatpush3.bf16.msra.mxu1 %v9087_v24  ;;  %v2809_v10 = vld [vmem:[#allocation2 + $0x4a] sm:$0xff]  ;;  %v2837_v24 = vld [vmem:[#allocation2 + $0x19a] sm:$0xff] }
 0x1f4   : > { %7939 = vmatmul.mubr.f32.gmra.mrb[2].mxu0 %v2504_v46  ;;  %v2816_v46 = vld [vmem:[#allocation2 + $0x9a] sm:$0xff] }
 0x1f5   : > { %7941 = vmatprep.mubr.f32.mxu0 %v2505_v41  ;;  %9046 = vmatpush3.bf16.msra.mxu0 %v9043_v11  ;;  %v2810_v11 = vld [vmem:[#allocation2 + $0x52] sm:$0xff]  ;;  %v2817_v41 = vld [vmem:[#allocation2 + $0xaa] sm:$0xff] }
 0x1f6   : > { %9048 = vmatprep.subr.bf16.mxu0 %v9047_v42 }
 0x1f8   : > { %7942 = vmatmul.mubr.f32.gmra.mrb[4].mxu0 %v2506_v14  ;;  %v2824_v14 = vld [vmem:[#allocation2 + $0xfa] sm:$0xff] }
 0x1f9   : > { %7944 = vmatprep.mubr.f32.mxu0 %v2507_v29  ;;  %9050 = vmatpush3.bf16.msra.mxu0 %v9047_v42  ;;  %v2818_v42 = vld [vmem:[#allocation2 + $0xb2] sm:$0xff]  ;;  %v2825_v29 = vld [vmem:[#allocation2 + $0x10a] sm:$0xff] }
 0x1fa   : > { %9052 = vmatprep.subr.bf16.mxu0 %v9051_v15 }
 0x1fc   : > { %7945 = vmatmul.mubr.f32.gmra.mrb[6].mxu0 %v2508_v20  ;;  %v2832_v20 = vld [vmem:[#allocation2 + $0x15a] sm:$0xff] }
 0x1fd   : > { %7947 = vmatprep.mubr.f32.mxu0 %v2509_v43  ;;  %9054 = vmatpush3.bf16.msra.mxu0 %v9051_v15  ;;  %v2826_v15 = vld [vmem:[#allocation2 + $0x112] sm:$0xff]  ;;  %v2833_v43 = vld [vmem:[#allocation2 + $0x16a] sm:$0xff] }
 0x1fe   : > { %9056 = vmatprep.subr.bf16.mxu0 %v9055_v21 }
 0x200   : > { %7948 = vmatmul.mubr.f32.gmra.mrb[8].mxu0 %v2510_v27  ;;  %v6356_v27 = vld [vmem:[%s12047_s4 + $0xd8] sm:$0xff] }
 0x201   : > { %7950 = vmatprep.mubr.f32.mxu0 %v2511_v28  ;;  %9058 = vmatpush3.bf16.msra.mxu0 %v9055_v21  ;;  %v2834_v21 = vld [vmem:[#allocation2 + $0x172] sm:$0xff]  ;;  %v9091_v28 = vpack.c.bf16 %v6356_v27, %v6355_v48 }
 0x202   : > { %9060 = vmatprep.subr.bf16.mxu0 %v9059_v23 }
 0x203   : > { %9092 = vmatprep.subr.bf16.mxu1 %v9091_v28 }
 0x204   : > { %7951 = vmatmul.mubr.f32.gmra.mrb[10].mxu0 %v2512_v58  ;;  %9094 = vmatpush3.bf16.msra.mxu1 %v9091_v28  ;;  %v9099_v58 = vpack.c.bf16 %v6360_v31, %v6359_v30 }
 0x205   : > { %7953 = vmatprep.mubr.f32.mxu0 %v2513_v32  ;;  %9062 = vmatpush3.bf16.msra.mxu0 %v9059_v23  ;;  %v3303_v32 = vld [vmem:[#allocation3 + $0x1] sm:$0xff] }
 0x206   : > { %9064 = vmatprep.subr.bf16.mxu0 %v9063_v5  ;;  %8095 = vmatprep.mubr.f32.mxu1 %v3303_v32 }
 0x208   : > { %7954 = vmatmul.mubr.f32.gmra.mrb[12].mxu0 %v2514_v2  ;;  %v9103_v2 = vpack.c.bf16 %v3288_v35, %v3287_v62 }
 0x209   : > { %7956 = vmatprep.mubr.f32.mxu0 %v2515_v3  ;;  %9066 = vmatpush3.bf16.msra.mxu0 %v9063_v5  ;;  %v3304_v5 = vld [vmem:[#allocation3 + $0x9] sm:$0xff]  ;;  %v3289_v3 = vld [vmem:[%s12047_s4 + $0x10] sm:$0xff] }
 0x20a   : > { %9068 = vmatprep.subr.bf16.mxu0 %v9067_v36 }
 0x20c   : > { %7957 = vmatmul.mubr.f32.gmra.mrb[14].mxu0 %v2516_v8 }
 0x20d   : > { %7959 = vmatprep.mubr.f32.mxu0 %v2517_v9  ;;  %9070 = vmatpush3.bf16.msra.mxu0 %v9067_v36  ;;  %v3290_v36 = vld [vmem:[%s12047_s4 + $0x18] sm:$0xff]  ;;  %v3291_v9 = vld [vmem:[%s12047_s4 + $0x20] sm:$0xff] }
 0x20e   : > { %v9107_v8 = vpack.c.bf16 %v3290_v36, %v3289_v3 }
 0x210   : > { %7960 = vmatmul.mubr.f32.gmra.mrb[16].mxu0 %v2518_v37  ;;  %v3292_v37 = vld [vmem:[%s12047_s4 + $0x28] sm:$0xff] }
 0x211   : > { %7962 = vmatprep.mubr.f32.mxu0 %v2519_v18  ;;  %v9111_v18 = vpack.c.bf16 %v3292_v37, %v3291_v9 }
 0x214   : > { %7963 = vmatmul.mubr.f32.gmra.mrb[18].mxu0 %v2520_v22  ;;  %v3293_v22 = vld [vmem:[%s12047_s4 + $0x30] sm:$0xff] }
 0x215   : > { %7965 = vmatprep.mubr.f32.mxu0 %v2521_v38  ;;  %v3294_v38 = vld [vmem:[%s12047_s4 + $0x38] sm:$0xff] }
 0x218   : > { %7966 = vmatmul.mubr.f32.gmra.mrb[20].mxu0 %v2522_v34  ;;  %v9115_v34 = vpack.c.bf16 %v3294_v38, %v3293_v22 }
 0x219   : > { %7968 = vmatprep.mubr.f32.mxu0 %v2523_v40  ;;  %v3295_v40 = vld [vmem:[%s12047_s4 + $0x40] sm:$0xff] }
 0x21c   : > { %7969 = vmatmul.mubr.f32.gmra.mrb[22].mxu0 %v2524_v39  ;;  %v3296_v39 = vld [vmem:[%s12047_s4 + $0x48] sm:$0xff] }
 0x21d   : > { %7971 = vmatprep.mubr.f32.mxu0 %v2525_v54  ;;  %v9119_v54 = vpack.c.bf16 %v3296_v39, %v3295_v40 }
 0x220   : > { %7972 = vmatmul.mubr.f32.gmra.mrb[24].mxu0 %v2526_v59  ;;  %v3297_v59 = vld [vmem:[%s12047_s4 + $0x50] sm:$0xff] }
 0x221   : > { %7974 = vmatprep.mubr.f32.mxu0 %v2527_v60  ;;  %v3298_v60 = vld [vmem:[%s12047_s4 + $0x58] sm:$0xff] }
 0x224   : > { %7975 = vmatmul.mubr.f32.gmra.mrb[26].mxu0 %v2528_v61  ;;  %v9123_v61 = vpack.c.bf16 %v3298_v60, %v3297_v59 }
 0x225   : > { %7977 = vmatprep.mubr.f32.mxu0 %v9881_v63  ;;  %v3299_v63 = vld [vmem:[%s12047_s4 + $0x60] sm:$0xff] }
 0x228   : > { %7978 = vmatmul.mubr.f32.gmra.mrb[28].mxu0 %v9882_v1 }
 0x229   : > { %7980 = vmatprep.mubr.f32.mxu0 %v2531_v0  ;;  %v3300_v0 = vld [vmem:[%s12047_s4 + $0x68] sm:$0xff] }
 0x22a   : > { %v9127_v1 = vpack.c.bf16 %v3300_v0, %v3299_v63 }
 0x22c   : > { %7981 = vmatmul.mubr.f32.gmra.mrb[30].mxu0 %v2532_v4  ;;  %v3301_v4 = vld [vmem:[%s12047_s4 + $0x70] sm:$0xff] }
 0x22d   : > { %8015 = vmatprep.mubr.f32.mxu0 %v2807_v6  ;;  %v3302_v6 = vld [vmem:[%s12047_s4 + $0x78] sm:$0xff] }
 0x230   : > { %8016 = vmatmul.mubr.f32.vlgmr.msra.gmra.mrb[0].mxu0 %v2808_v7  ;;  %v9131_v7 = vpack.c.bf16 %v3302_v6, %v3301_v4 }
 0x231   : > { %8018 = vmatprep.mubr.f32.mxu0 %v2809_v10  ;;  %v6361_v10 = vld [vmem:[%s12047_s4 + $0x100] sm:$0xff] }
 0x234   : > { %8019 = vmatmul.mubr.f32.gmra.mrb[2].mxu0 %v2810_v11  ;;  %v6362_v11 = vld [vmem:[%s12047_s4 + $0x108] sm:$0xff] }
 0x235   : > { %8021 = vmatprep.mubr.f32.mxu0 %v2811_v16  ;;  %v11061_v16 = vpack.c.bf16 %v6362_v11, %v6361_v10 }
 0x238   : > { %8022 = vmatmul.mubr.f32.gmra.mrb[4].mxu0 %v2812_v33  ;;  %v11067_v33 = vld [vmem:[%s12045_s2] ss:$0 sm:$0xff] }
 0x239   : > { %8024 = vmatprep.mubr.f32.mxu0 %v2813_v44 }
 0x23c   : > { %8025 = vmatmul.mubr.f32.gmra.mrb[6].mxu0 %v2814_v45  ;;  %v11072_v45 = vld [vmem:[%s12046_s3] ss:$0 sm:$0xff] }
 0x23d   : > { %8027 = vmatprep.mubr.f32.mxu0 %v2815_v53 }
 0x240   : > { %8028 = vmatmul.mubr.f32.gmra.mrb[8].mxu0 %v2816_v46 }
 0x241   : > { %8030 = vmatprep.mubr.f32.mxu0 %v2817_v41 }
 0x244   : > { %8031 = vmatmul.mubr.f32.gmra.mrb[10].mxu0 %v2818_v42 }
 0x245   : > { %8033 = vmatprep.mubr.f32.mxu0 %v2819_v56 }
 0x248   : > { %8034 = vmatmul.mubr.f32.gmra.mrb[12].mxu0 %v2820_v12 }
 0x249   : > { %8036 = vmatprep.mubr.f32.mxu0 %v2821_v49 }
 0x24c   : > { %8037 = vmatmul.mubr.f32.gmra.mrb[14].mxu0 %v2822_v51 }
 0x24d   : > { %8039 = vmatprep.mubr.f32.mxu0 %v2823_v13 }
 0x250   : > { %8040 = vmatmul.mubr.f32.gmra.mrb[16].mxu0 %v2824_v14 }
 0x251   : > { %8042 = vmatprep.mubr.f32.mxu0 %v2825_v29 }
 0x254   : > { %8043 = vmatmul.mubr.f32.gmra.mrb[18].mxu0 %v2826_v15 }
 0x255   : > { %8045 = vmatprep.mubr.f32.mxu0 %v2827_v17 }
 0x258   : > { %8046 = vmatmul.mubr.f32.gmra.mrb[20].mxu0 %v2828_v57 }
 0x259   : > { %8048 = vmatprep.mubr.f32.mxu0 %v2829_v50 }
 0x25c   : > { %8049 = vmatmul.mubr.f32.gmra.mrb[22].mxu0 %v2830_v52 }
 0x25d   : > { %8051 = vmatprep.mubr.f32.mxu0 %v2831_v19 }
 0x260   : > { %8052 = vmatmul.mubr.f32.gmra.mrb[24].mxu0 %v2832_v20 }
 0x261   : > { %8054 = vmatprep.mubr.f32.mxu0 %v2833_v43 }
 0x264   : > { %8055 = vmatmul.mubr.f32.gmra.mrb[26].mxu0 %v2834_v21 }
 0x265   : > { %8057 = vmatprep.mubr.f32.mxu0 %v10826_v25  ;;  %v6357_v25 = vld [vmem:[%s12047_s4 + $0xe0] sm:$0xff] }
 0x268   : > { %8058 = vmatmul.mubr.f32.gmra.mrb[28].mxu0 %v10830_v26  ;;  %v6358_v26 = vld [vmem:[%s12047_s4 + $0xe8] sm:$0xff] }
 0x269   : > { %8060 = vmatprep.mubr.f32.mxu0 %v2837_v24  ;;  %v9095_v23 = vpack.c.bf16 %v6358_v26, %v6357_v25 }
 0x26b   : > { %9096 = vmatprep.subr.bf16.mxu1 %v9095_v23 }
 0x26c   : > { %8061 = vmatmul.mubr.f32.gmra.mrb[30].mxu0 %v2838_v47  ;;  %9098 = vmatpush3.bf16.msra.mxu1 %v9095_v23 }
 0x26d   : > { %9100 = vmatprep.subr.bf16.mxu1 %v9099_v58 }
 0x270   : > { %9102 = vmatpush3.bf16.msra.mxu1 %v9099_v58 }
 0x271   : > { %9104 = vmatprep.subr.bf16.mxu1 %v9103_v2 }
 0x273   : > { %8096 = vmatmul.mubr.f32.vlgmr.msra.gmra.mrb[0].mxu1 %v3304_v5 }
 0x274   : > { %9106 = vmatpush3.bf16.msra.mxu1 %v9103_v2 }
 0x275   : > { %9108 = vmatprep.subr.bf16.mxu1 %v9107_v8 }
 0x278   : > { %9110 = vmatpush3.bf16.msra.mxu1 %v9107_v8 }
 0x279   : > { %9112 = vmatprep.subr.bf16.mxu1 %v9111_v18 }
 0x27c   : > { %9114 = vmatpush3.bf16.msra.mxu1 %v9111_v18 }
 0x27d   : > { %9116 = vmatprep.subr.bf16.mxu1 %v9115_v34 }
 0x280   : > { %9118 = vmatpush3.bf16.msra.mxu1 %v9115_v34 }
 0x281   : > { %9120 = vmatprep.subr.bf16.mxu1 %v9119_v54 }
 0x284   : > { %9122 = vmatpush3.bf16.msra.mxu1 %v9119_v54 }
 0x285   : > { %9124 = vmatprep.subr.bf16.mxu1 %v9123_v61 }
 0x288   : > { %9126 = vmatpush3.bf16.msra.mxu1 %v9123_v61 }
 0x289   : > { %9128 = vmatprep.subr.bf16.mxu1 %v9127_v1 }
 0x28c   : > { %9130 = vmatpush3.bf16.msra.mxu1 %v9127_v1 }
 0x28d   : > { %9132 = vmatprep.subr.bf16.mxu1 %v9131_v7 }
 0x290   : > { %9134 = vmatpush3.bf16.msra.mxu1 %v9131_v7 }
 0x291   : > { %9136 = vmatprep.subr.bf16.mxu1 %v11061_v16 }
 0x303   : > { %v8017_v44 = vpop.f32.mrb[0].mxu0 }
 0x304   : > { %v3121_v53 = vmul.f32 %v8017_v44, %v11067_v33  ;;  %v2922_v46 = vpop.f32.mrb[1].mxu0 }
 0x305   : > { %v3120_v41 = vmul.f32 %v11067_v33, %v2922_v46 }
 0x306   : > { %v3160_v42 = vadd.f32 %v11072_v45, %v3121_v53 }
 0x307   : > { %v3159_v56 = vadd.f32 %v11072_v45, %v3120_v41  ;;  %v8020_v12 = vpop.f32.mrb[2].mxu0 }
 0x308   : > { %v3192_v49 = vmax.f32 %v3160_v42, 0.0  ;;  %v3123_v51 = vmul.f32 %v8020_v12, %v11067_v33  ;;  %v2932_v13 = vpop.f32.mrb[3].mxu0 }
 0x309   : > { %v3191_v14 = vmax.f32 %v3159_v56, 0.0  ;;  %v3122_v29 = vmul.f32 %v11067_v33, %v2932_v13 }
 0x30a   : > { %3224 = vst [vmem:[#allocation3 + $0x21] sm:$0xff] %v3192_v49  ;;  %v3162_v15 = vadd.f32 %v11072_v45, %v3123_v51 }
 0x30b   : > { %3223 = vst [vmem:[#allocation3 + $0x19] sm:$0xff] %v3191_v14  ;;  %v3161_v17 = vadd.f32 %v11072_v45, %v3122_v29  ;;  %v8023_v57 = vpop.f32.mrb[4].mxu0  ;;  %8098 = vmatprep.mubr.f32.mxu1 %v3191_v14 }
 0x30c   : > { %v3194_v50 = vmax.f32 %v3162_v15, 0.0  ;;  %v3125_v52 = vmul.f32 %v8023_v57, %v11067_v33  ;;  %v2942_v19 = vpop.f32.mrb[5].mxu0  ;;  %8099 = vmatmul.mubr.f32.gmra.mrb[2].mxu1 %v3192_v49 }
 0x30d   : > { %v3193_v20 = vmax.f32 %v3161_v17, 0.0  ;;  %v3124_v43 = vmul.f32 %v11067_v33, %v2942_v19 }
 0x30e   : > { %3226 = vst [vmem:[#allocation3 + $0x39] sm:$0xff] %v3194_v50  ;;  %v3164_v21 = vadd.f32 %v11072_v45, %v3125_v52 }
 0x30f   : > { %3225 = vst [vmem:[#allocation3 + $0x31] sm:$0xff] %v3193_v20  ;;  %v3163_v24 = vadd.f32 %v11072_v45, %v3124_v43  ;;  %v8026_v47 = vpop.f32.mrb[6].mxu0  ;;  %8101 = vmatprep.mubr.f32.mxu1 %v3193_v20 }
 0x310   : > { %v3196_v48 = vmax.f32 %v3164_v21, 0.0  ;;  %v3127_v27 = vmul.f32 %v8026_v47, %v11067_v33  ;;  %v2952_v28 = vpop.f32.mrb[7].mxu0  ;;  %8102 = vmatmul.mubr.f32.gmra.mrb[4].mxu1 %v3194_v50 }
 0x311   : > { %v3195_v25 = vmax.f32 %v3163_v24, 0.0  ;;  %v3126_v26 = vmul.f32 %v11067_v33, %v2952_v28 }
 0x312   : > { %3228 = vst [vmem:[#allocation3 + $0x51] sm:$0xff] %v3196_v48  ;;  %v3166_v23 = vadd.f32 %v11072_v45, %v3127_v27 }
 0x313   : > { %3227 = vst [vmem:[#allocation3 + $0x49] sm:$0xff] %v3195_v25  ;;  %v3165_v30 = vadd.f32 %v11072_v45, %v3126_v26  ;;  %v8029_v31 = vpop.f32.mrb[8].mxu0  ;;  %8104 = vmatprep.mubr.f32.mxu1 %v3195_v25 }
 0x314   : > { %v3198_v58 = vmax.f32 %v3166_v23, 0.0  ;;  %v3129_v32 = vmul.f32 %v8029_v31, %v11067_v33  ;;  %v2962_v5 = vpop.f32.mrb[9].mxu0  ;;  %8105 = vmatmul.mubr.f32.gmra.mrb[6].mxu1 %v3196_v48 }
 0x315   : > { %v3197_v62 = vmax.f32 %v3165_v30, 0.0  ;;  %v3128_v35 = vmul.f32 %v11067_v33, %v2962_v5 }
 0x316   : > { %3230 = vst [vmem:[#allocation3 + $0x69] sm:$0xff] %v3198_v58  ;;  %v3168_v2 = vadd.f32 %v11072_v45, %v3129_v32 }
 0x317   : > { %3229 = vst [vmem:[#allocation3 + $0x61] sm:$0xff] %v3197_v62  ;;  %v3167_v3 = vadd.f32 %v11072_v45, %v3128_v35  ;;  %v8032_v36 = vpop.f32.mrb[10].mxu0  ;;  %8107 = vmatprep.mubr.f32.mxu1 %v3197_v62 }
 0x318   : > { %v3200_v8 = vmax.f32 %v3168_v2, 0.0  ;;  %v3131_v9 = vmul.f32 %v8032_v36, %v11067_v33  ;;  %v2972_v37 = vpop.f32.mrb[11].mxu0  ;;  %8108 = vmatmul.mubr.f32.gmra.mrb[8].mxu1 %v3198_v58 }
 0x319   : > { %v3199_v18 = vmax.f32 %v3167_v3, 0.0  ;;  %v3130_v22 = vmul.f32 %v11067_v33, %v2972_v37 }
 0x31a   : > { %3232 = vst [vmem:[#allocation3 + $0x81] sm:$0xff] %v3200_v8  ;;  %v3170_v38 = vadd.f32 %v11072_v45, %v3131_v9 }
 0x31b   : > { %3231 = vst [vmem:[#allocation3 + $0x79] sm:$0xff] %v3199_v18  ;;  %v3169_v34 = vadd.f32 %v11072_v45, %v3130_v22  ;;  %v8035_v40 = vpop.f32.mrb[12].mxu0  ;;  %8110 = vmatprep.mubr.f32.mxu1 %v3199_v18 }
 0x31c   : > { %v3202_v39 = vmax.f32 %v3170_v38, 0.0  ;;  %v3133_v54 = vmul.f32 %v8035_v40, %v11067_v33  ;;  %v2982_v59 = vpop.f32.mrb[13].mxu0  ;;  %8111 = vmatmul.mubr.f32.gmra.mrb[10].mxu1 %v3200_v8 }
 0x31d   : > { %v3201_v60 = vmax.f32 %v3169_v34, 0.0  ;;  %v3132_v61 = vmul.f32 %v11067_v33, %v2982_v59 }
 0x31e   : > { %3234 = vst [vmem:[#allocation3 + $0x99] sm:$0xff] %v3202_v39  ;;  %v3172_v63 = vadd.f32 %v11072_v45, %v3133_v54 }
 0x31f   : > { %3233 = vst [vmem:[#allocation3 + $0x91] sm:$0xff] %v3201_v60  ;;  %v3171_v0 = vadd.f32 %v11072_v45, %v3132_v61  ;;  %v8038_v1 = vpop.f32.mrb[14].mxu0  ;;  %8113 = vmatprep.mubr.f32.mxu1 %v3201_v60 }
 0x320   : > { %v3204_v4 = vmax.f32 %v3172_v63, 0.0  ;;  %v3135_v6 = vmul.f32 %v8038_v1, %v11067_v33  ;;  %v2992_v7 = vpop.f32.mrb[15].mxu0  ;;  %8114 = vmatmul.mubr.f32.gmra.mrb[12].mxu1 %v3202_v39 }
 0x321   : > { %v3203_v10 = vmax.f32 %v3171_v0, 0.0  ;;  %v3134_v11 = vmul.f32 %v11067_v33, %v2992_v7 }
 0x322   : > { %3236 = vst [vmem:[#allocation3 + $0xb1] sm:$0xff] %v3204_v4  ;;  %v3174_v44 = vadd.f32 %v11072_v45, %v3135_v6 }
 0x323   : > { %3235 = vst [vmem:[#allocation3 + $0xa9] sm:$0xff] %v3203_v10  ;;  %v3173_v53 = vadd.f32 %v11072_v45, %v3134_v11  ;;  %v8041_v46 = vpop.f32.mrb[16].mxu0  ;;  %8116 = vmatprep.mubr.f32.mxu1 %v3203_v10 }
 0x324   : > { %v3206_v41 = vmax.f32 %v3174_v44, 0.0  ;;  %v3137_v42 = vmul.f32 %v8041_v46, %v11067_v33  ;;  %v3002_v56 = vpop.f32.mrb[17].mxu0  ;;  %8117 = vmatmul.mubr.f32.gmra.mrb[14].mxu1 %v3204_v4 }
 0x325   : > { %v3205_v12 = vmax.f32 %v3173_v53, 0.0  ;;  %v3136_v49 = vmul.f32 %v11067_v33, %v3002_v56 }
 0x326   : > { %3238 = vst [vmem:[#allocation3 + $0xc9] sm:$0xff] %v3206_v41  ;;  %v3176_v51 = vadd.f32 %v11072_v45, %v3137_v42 }
 0x327   : > { %3237 = vst [vmem:[#allocation3 + $0xc1] sm:$0xff] %v3205_v12  ;;  %v3175_v13 = vadd.f32 %v11072_v45, %v3136_v49  ;;  %v8044_v14 = vpop.f32.mrb[18].mxu0  ;;  %8119 = vmatprep.mubr.f32.mxu1 %v3205_v12  ;;  %v6363_v12 = vld [vmem:[%s12047_s4 + $0x110] sm:$0xff] }
 0x328   : > { %v11110_v29 = vmax.f32 %v3176_v51, 0.0  ;;  %v3139_v15 = vmul.f32 %v8044_v14, %v11067_v33  ;;  %v3012_v17 = vpop.f32.mrb[19].mxu0  ;;  %8120 = vmatmul.mubr.f32.gmra.mrb[16].mxu1 %v3206_v41  ;;  %v6366_v14 = vld [vmem:[%s12047_s4 + $0x128] sm:$0xff] }
 0x329   : > { %v11113_v57 = vmax.f32 %v3175_v13, 0.0  ;;  %v3138_v50 = vmul.f32 %v11067_v33, %v3012_v17  ;;  %v6365_v13 = vld [vmem:[%s12047_s4 + $0x120] sm:$0xff] }
 0x32a   : > { %3240 = vst [vmem:[#allocation3 + $0xe1] sm:$0xff] %v11110_v29  ;;  %v3178_v52 = vadd.f32 %v11072_v45, %v3139_v15  ;;  %v11218_v15 = vld [vmem:[#allocation3 + $0x18] sm:$0xff]  ;;  %v9143_v17 = vpack.c.bf16 %v6366_v14, %v6365_v13 }
 0x32b   : > { %3239 = vst [vmem:[#allocation3 + $0xd9] sm:$0xff] %v11113_v57  ;;  %v3177_v19 = vadd.f32 %v11072_v45, %v3138_v50  ;;  %v8047_v20 = vpop.f32.mrb[20].mxu0  ;;  %8122 = vmatprep.mubr.f32.mxu1 %v11113_v57  ;;  %v11222_v50 = vld [vmem:[#allocation3 + $0x20] sm:$0xff] }
 0x32c   : > { %v11121_v43 = vmax.f32 %v3178_v52, 0.0  ;;  %v3141_v21 = vmul.f32 %v8047_v20, %v11067_v33  ;;  %v3022_v24 = vpop.f32.mrb[21].mxu0  ;;  %8123 = vmatmul.mubr.f32.gmra.mrb[18].mxu1 %v11110_v29  ;;  %v6367_v52 = vld [vmem:[%s12047_s4 + $0x130] sm:$0xff]  ;;  %v11234_v20 = vld [vmem:[#allocation3 + $0x38] sm:$0xff] }
 0x32d   : > { %v11125_v47 = vmax.f32 %v3177_v19, 0.0  ;;  %v3140_v48 = vmul.f32 %v11067_v33, %v3022_v24  ;;  %v6368_v19 = vld [vmem:[%s12047_s4 + $0x138] sm:$0xff]  ;;  %v6370_v24 = vld [vmem:[%s12047_s4 + $0x148] sm:$0xff] }
 0x32e   : > { %3242 = vst [vmem:[#allocation3 + $0xf9] sm:$0xff] %v11121_v43  ;;  %v3180_v27 = vadd.f32 %v11072_v45, %v3141_v21  ;;  %v6369_v21 = vld [vmem:[%s12047_s4 + $0x140] sm:$0xff] }
 0x32f   : > { %3241 = vst [vmem:[#allocation3 + $0xf1] sm:$0xff] %v11125_v47  ;;  %v3179_v28 = vadd.f32 %v11072_v45, %v3140_v48  ;;  %v8050_v25 = vpop.f32.mrb[22].mxu0  ;;  %8125 = vmatprep.mubr.f32.mxu1 %v11125_v47  ;;  %v11243_v48 = vld [vmem:[#allocation3 + $0x48] sm:$0xff] }
 0x330   : > { %v11133_v26 = vmax.f32 %v3180_v27, 0.0  ;;  %v3143_v23 = vmul.f32 %v8050_v25, %v11067_v33  ;;  %v3032_v30 = vpop.f32.mrb[23].mxu0  ;;  %8126 = vmatmul.mubr.f32.gmra.mrb[20].mxu1 %v11121_v43  ;;  %v9151_v27 = vpack.c.bf16 %v6370_v24, %v6369_v21  ;;  %v6371_v25 = vld [vmem:[%s12047_s4 + $0x150] sm:$0xff]  ;;  %v6380_v24 = vld [vmem:[%s12047_s4 + $0x198] sm:$0xff] }
 0x331   : > { %v11137_v31 = vmax.f32 %v3179_v28, 0.0  ;;  %v3142_v58 = vmul.f32 %v11067_v33, %v3032_v30  ;;  %v11246_v28 = vld [vmem:[#allocation3 + $0x50] sm:$0xff]  ;;  %v11255_v30 = vld [vmem:[#allocation3 + $0x60] sm:$0xff] }
 0x332   : > { %3244 = vst [vmem:[#allocation3 + $0x111] sm:$0xff] %v11133_v26  ;;  %v3182_v32 = vadd.f32 %v11072_v45, %v3143_v23  ;;  %v6372_v23 = vld [vmem:[%s12047_s4 + $0x158] sm:$0xff]  ;;  %v6379_v21 = vld [vmem:[%s12047_s4 + $0x190] sm:$0xff] }
 0x333   : > { %3243 = vst [vmem:[#allocation3 + $0x109] sm:$0xff] %v11137_v31  ;;  %v3181_v5 = vadd.f32 %v11072_v45, %v3142_v58  ;;  %v8053_v62 = vpop.f32.mrb[24].mxu0  ;;  %8128 = vmatprep.mubr.f32.mxu1 %v11137_v31  ;;  %v9155_v58 = vpack.c.bf16 %v6372_v23, %v6371_v25  ;;  %v9171_v25 = vpack.c.bf16 %v6380_v24, %v6379_v21  ;;  %v6381_v23 = vld [vmem:[%s12047_s4 + $0x1a0] sm:$0xff] }
 0x334   : > { %v11145_v35 = vmax.f32 %v3182_v32, 0.0  ;;  %v3145_v2 = vmul.f32 %v8053_v62, %v11067_v33  ;;  %v3042_v3 = vpop.f32.mrb[25].mxu0  ;;  %8129 = vmatmul.mubr.f32.gmra.mrb[22].mxu1 %v11133_v26  ;;  %v11258_v32 = vld [vmem:[#allocation3 + $0x68] sm:$0xff]  ;;  %v6374_v62 = vld [vmem:[%s12047_s4 + $0x168] sm:$0xff] }
 0x335   : > { %v11149_v36 = vmax.f32 %v3181_v5, 0.0  ;;  %v3144_v8 = vmul.f32 %v11067_v33, %v3042_v3  ;;  %v6373_v5 = vld [vmem:[%s12047_s4 + $0x160] sm:$0xff] }
 0x336   : > { %3246 = vst [vmem:[#allocation3 + $0x129] sm:$0xff] %v11145_v35  ;;  %v3184_v9 = vadd.f32 %v11072_v45, %v3145_v2  ;;  %v11267_v2 = vld [vmem:[#allocation3 + $0x78] sm:$0xff]  ;;  %v9159_v3 = vpack.c.bf16 %v6374_v62, %v6373_v5  ;;  %v11381_v21 = vld [vmem:[#allocation3 + $0x4a] sm:$0xff] }
 0x337   : > { %3245 = vst [vmem:[#allocation3 + $0x121] sm:$0xff] %v11149_v36  ;;  %v3183_v37 = vadd.f32 %v11072_v45, %v3144_v8  ;;  %v8056_v18 = vpop.f32.mrb[26].mxu0  ;;  %8131 = vmatprep.mubr.f32.mxu1 %v11149_v36  ;;  %v11270_v8 = vld [vmem:[#allocation3 + $0x80] sm:$0xff] }
 0x338   : > { %v11157_v22 = vmax.f32 %v3184_v9, 0.0  ;;  %v3147_v38 = vmul.f32 %v8056_v18, %v11067_v33  ;;  %v3052_v34 = vpop.f32.mrb[27].mxu0  ;;  %8132 = vmatmul.mubr.f32.gmra.mrb[24].mxu1 %v11145_v35  ;;  %v6375_v9 = vld [vmem:[%s12047_s4 + $0x170] sm:$0xff]  ;;  %v11279_v18 = vld [vmem:[#allocation3 + $0x90] sm:$0xff] }
 0x339   : > { %v11161_v40 = vmax.f32 %v3183_v37, 0.0  ;;  %v3146_v39 = vmul.f32 %v11067_v33, %v3052_v34  ;;  %v6376_v37 = vld [vmem:[%s12047_s4 + $0x178] sm:$0xff]  ;;  %v11282_v34 = vld [vmem:[#allocation3 + $0x98] sm:$0xff] }
 0x33a   : > { %3248 = vst [vmem:[#allocation3 + $0x141] sm:$0xff] %v11157_v22  ;;  %v3186_v54 = vadd.f32 %v11072_v45, %v3147_v38  ;;  %v9163_v38 = vpack.c.bf16 %v6376_v37, %v6375_v9  ;;  %v11357_v5 = vld [vmem:[#allocation3 + $0x1a] sm:$0xff]  ;;  %v6384_v37 = vld [vmem:[%s12047_s4 + $0x1b8] sm:$0xff] }
 0x33b   : > { %3247 = vst [vmem:[#allocation3 + $0x139] sm:$0xff] %v11161_v40  ;;  %v3185_v59 = vadd.f32 %v11072_v45, %v3146_v39  ;;  %v8059_v60 = vpop.f32.mrb[28].mxu0  ;;  %8134 = vmatprep.mubr.f32.mxu1 %v11161_v40  ;;  %v6377_v39 = vld [vmem:[%s12047_s4 + $0x180] sm:$0xff]  ;;  %v6383_v9 = vld [vmem:[%s12047_s4 + $0x1b0] sm:$0xff] }
 0x33c   : > { %v11169_v61 = vmax.f32 %v3186_v54, 0.0  ;;  %v3149_v63 = vmul.f32 %v8059_v60, %v11067_v33  ;;  %v3062_v0 = vpop.f32.mrb[29].mxu0  ;;  %8135 = vmatmul.mubr.f32.gmra.mrb[26].mxu1 %v11157_v22  ;;  %v6378_v54 = vld [vmem:[%s12047_s4 + $0x188] sm:$0xff] }
 0x33d   : > { %v11173_v1 = vmax.f32 %v3185_v59, 0.0  ;;  %v3148_v4 = vmul.f32 %v11067_v33, %v3062_v0  ;;  %v11291_v59 = vld [vmem:[#allocation3 + $0xa8] sm:$0xff]  ;;  %v9167_v60 = vpack.c.bf16 %v6378_v54, %v6377_v39  ;;  %v11297_v0 = vld [vmem:[#allocation3 + $0xc0] sm:$0xff]  ;;  %v9179_v39 = vpack.c.bf16 %v6384_v37, %v6383_v9  ;;  %v6389_v37 = vld [vmem:[%s12047_s4 + $0x1e0] sm:$0xff] }
 0x33e   : > { %3250 = vst [vmem:[#allocation3 + $0x159] sm:$0xff] %v11169_v61  ;;  %v3188_v6 = vadd.f32 %v11072_v45, %v3149_v63  ;;  %v11294_v63 = vld [vmem:[#allocation3 + $0xb0] sm:$0xff]  ;;  %v11372_v54 = vld [vmem:[#allocation3 + $0x3a] sm:$0xff] }
 0x33f   : > { %3249 = vst [vmem:[#allocation3 + $0x151] sm:$0xff] %v11173_v1  ;;  %v3187_v7 = vadd.f32 %v11072_v45, %v3148_v4  ;;  %v8062_v10 = vpop.f32.mrb[30].mxu0  ;;  %8137 = vmatprep.mubr.f32.mxu1 %v11173_v1  ;;  %v11300_v4 = vld [vmem:[#allocation3 + $0xc8] sm:$0xff] }
 0x340   : > { %v11181_v11 = vmax.f32 %v3188_v6, 0.0  ;;  %v3151_v44 = vmul.f32 %v8062_v10, %v11067_v33  ;;  %v3072_v53 = vpop.f32.mrb[31].mxu0  ;;  %8138 = vmatmul.mubr.f32.gmra.mrb[28].mxu1 %v11169_v61  ;;  %v11303_v6 = vld [vmem:[#allocation3 + $0xd8] sm:$0xff]  ;;  %v11309_v10 = vld [vmem:[#allocation3 + $0xf0] sm:$0xff] }
 0x341   : > { %v11185_v46 = vmax.f32 %v3187_v7, 0.0  ;;  %v3150_v41 = vmul.f32 %v11067_v33, %v3072_v53  ;;  %v6364_v33 = vld [vmem:[%s12047_s4 + $0x118] sm:$0xff]  ;;  %v11306_v7 = vld [vmem:[#allocation3 + $0xe0] sm:$0xff] }
 0x342   : > { %3252 = vst [vmem:[#allocation3 + $0x171] sm:$0xff] %v11181_v11  ;;  %v11190_v42 = vadd.f32 %v11072_v45, %v3151_v44  ;;  %v11312_v44 = vld [vmem:[#allocation3 + $0xf8] sm:$0xff]  ;;  %v11315_v53 = vld [vmem:[#allocation3 + $0x108] sm:$0xff]  ;;  %v11330_v13 = vld [vmem:[#allocation3 + $0x140] sm:$0xff] }
 0x343   : > { %3251 = vst [vmem:[#allocation3 + $0x169] sm:$0xff] %v11185_v46  ;;  %v11194_v56 = vadd.f32 %v11072_v45, %v3150_v41  ;;  %8140 = vmatprep.mubr.f32.mxu1 %v11185_v46  ;;  %v9139_v45 = vpack.c.bf16 %v6364_v33, %v6363_v12  ;;  %v11318_v41 = vld [vmem:[#allocation3 + $0x110] sm:$0xff]  ;;  %v11321_v12 = vld [vmem:[#allocation3 + $0x120] sm:$0xff]  ;;  %v11324_v33 = vld [vmem:[#allocation3 + $0x128] sm:$0xff] }
 0x344   : > { %v12086_v49 = vmax.f32 %v11190_v42, 0.0  ;;  %8141 = vmatmul.mubr.f32.gmra.mrb[30].mxu1 %v11181_v11  ;;  %v11396_v9 = vld [vmem:[#allocation3 + $0x6a] sm:$0xff] }
 0x345   : > { %v12087_v51 = vmax.f32 %v11194_v56, 0.0  ;;  %8175 = vmatprep.mubr.f32.mxu1 %v10911_v55 }
 0x346   : > { %3254 = vst [vmem:[#allocation3 + $0x189] sm:$0xff] %v12086_v49  ;;  %v11333_v14 = vld [vmem:[#allocation3 + $0x150] sm:$0xff]  ;;  %v6392_v49 = vld [vmem:[%s12047_s4 + $0x1f8] sm:$0xff] }
 0x347   : > { %3253 = vst [vmem:[#allocation3 + $0x181] sm:$0xff] %v12087_v51  ;;  %v11417_v51 = vld [vmem:[#allocation3 + $0x92] sm:$0xff] }
 0x348   : > { %8176 = vmatmul.mubr.f32.vlgmr.msra.gmra.mrb[0].mxu1 %v10911_v55  ;;  %v11231_v55 = vld [vmem:[#allocation3 + $0x30] sm:$0xff]  ;;  %12195 = vst [vmem:[#allocation8_spill] sm:$0xff] %v11417_v51 }
 0x349   : > { %8178 = vmatprep.mubr.f32.mxu1 %v11218_v15  ;;  %9138 = vmatpush3.bf16.msra.mxu1 %v11061_v16  ;;  %v9147_v16 = vpack.c.bf16 %v6368_v19, %v6367_v52  ;;  %v3802_v19 = vld [vmem:[#allocation3 + $0x2] sm:$0xff] }
 0x34a   : > { %9140 = vmatprep.subr.bf16.mxu1 %v9139_v45  ;;  %v11339_v52 = vld [vmem:[#allocation3 + $0x168] sm:$0xff] }
 0x34b   : > { %12191 = vst [vmem:[#allocation4_spill] sm:$0xff] %v11339_v52 }
 0x34c   : > { %8179 = vmatmul.mubr.f32.gmra.mrb[2].mxu1 %v11222_v50 }
 0x34d   : > { %8181 = vmatprep.mubr.f32.mxu1 %v11231_v55  ;;  %9142 = vmatpush3.bf16.msra.mxu1 %v9139_v45  ;;  %v11327_v45 = vld [vmem:[#allocation3 + $0x138] sm:$0xff] }
 0x34e   : > { %9144 = vmatprep.subr.bf16.mxu1 %v9143_v17 }
 0x350   : > { %8182 = vmatmul.mubr.f32.gmra.mrb[4].mxu1 %v11234_v20 }
 0x351   : > { %8184 = vmatprep.mubr.f32.mxu1 %v11243_v48  ;;  %9146 = vmatpush3.bf16.msra.mxu1 %v9143_v17  ;;  %v11336_v17 = vld [vmem:[#allocation3 + $0x158] sm:$0xff] }
 0x352   : > { %9148 = vmatprep.subr.bf16.mxu1 %v9147_v16 }
 0x354   : > { %8185 = vmatmul.mubr.f32.gmra.mrb[6].mxu1 %v11246_v28 }
 0x355   : > { %8187 = vmatprep.mubr.f32.mxu1 %v11255_v30  ;;  %9150 = vmatpush3.bf16.msra.mxu1 %v9147_v16  ;;  %v11342_v16 = vld [vmem:[#allocation3 + $0x170] sm:$0xff] }
 0x356   : > { %9152 = vmatprep.subr.bf16.mxu1 %v9151_v27  ;;  %12192 = vst [vmem:[#allocation5_spill] sm:$0xff] %v11342_v16 }
 0x358   : > { %8188 = vmatmul.mubr.f32.gmra.mrb[8].mxu1 %v11258_v32 }
 0x359   : > { %8190 = vmatprep.mubr.f32.mxu1 %v11267_v2  ;;  %9154 = vmatpush3.bf16.msra.mxu1 %v9151_v27  ;;  %v3803_v27 = vld [vmem:[#allocation3 + $0xa] sm:$0xff] }
 0x35a   : > { %9156 = vmatprep.subr.bf16.mxu1 %v9155_v58 }
 0x35c   : > { %8191 = vmatmul.mubr.f32.gmra.mrb[10].mxu1 %v11270_v8 }
 0x35d   : > { %8193 = vmatprep.mubr.f32.mxu1 %v11279_v18  ;;  %9158 = vmatpush3.bf16.msra.mxu1 %v9155_v58  ;;  %v6382_v58 = vld [vmem:[%s12047_s4 + $0x1a8] sm:$0xff] }
 0x35e   : > { %9160 = vmatprep.subr.bf16.mxu1 %v9159_v3  ;;  %v9175_v62 = vpack.c.bf16 %v6382_v58, %v6381_v23  ;;  %v6388_v23 = vld [vmem:[%s12047_s4 + $0x1d8] sm:$0xff] }
 0x35f   : > { %v11393_v58 = vld [vmem:[#allocation3 + $0x62] sm:$0xff] }
 0x360   : > { %8194 = vmatmul.mubr.f32.gmra.mrb[12].mxu1 %v11282_v34 }
 0x361   : > { %8196 = vmatprep.mubr.f32.mxu1 %v11291_v59  ;;  %9162 = vmatpush3.bf16.msra.mxu1 %v9159_v3  ;;  %v11360_v3 = vld [vmem:[#allocation3 + $0x22] sm:$0xff] }
 0x362   : > { %9164 = vmatprep.subr.bf16.mxu1 %v9163_v38 }
 0x364   : > { %8197 = vmatmul.mubr.f32.gmra.mrb[14].mxu1 %v11294_v63 }
 0x365   : > { %8199 = vmatprep.mubr.f32.mxu1 %v11297_v0  ;;  %9166 = vmatpush3.bf16.msra.mxu1 %v9163_v38  ;;  %v11369_v38 = vld [vmem:[#allocation3 + $0x32] sm:$0xff] }
 0x366   : > { %9168 = vmatprep.subr.bf16.mxu1 %v9167_v60 }
 0x368   : > { %8200 = vmatmul.mubr.f32.gmra.mrb[16].mxu1 %v11300_v4 }
 0x369   : > { %8202 = vmatprep.mubr.f32.mxu1 %v11303_v6 }
 0x36c   : > { %8203 = vmatmul.mubr.f32.gmra.mrb[18].mxu1 %v11306_v7 }
 0x36d   : > { %8205 = vmatprep.mubr.f32.mxu1 %v11309_v10 }
 0x370   : > { %8206 = vmatmul.mubr.f32.gmra.mrb[20].mxu1 %v11312_v44 }
 0x371   : > { %8208 = vmatprep.mubr.f32.mxu1 %v11315_v53 }
 0x374   : > { %8209 = vmatmul.mubr.f32.gmra.mrb[22].mxu1 %v11318_v41 }
 0x375   : > { %8211 = vmatprep.mubr.f32.mxu1 %v11321_v12 }
 0x378   : > { %8212 = vmatmul.mubr.f32.gmra.mrb[24].mxu1 %v11324_v33 }
 0x379   : > { %8214 = vmatprep.mubr.f32.mxu1 %v11327_v45 }
 0x37c   : > { %8215 = vmatmul.mubr.f32.gmra.mrb[26].mxu1 %v11330_v13 }
 0x37d   : > { %8217 = vmatprep.mubr.f32.mxu1 %v11333_v14 }
 0x380   : > { %8218 = vmatmul.mubr.f32.gmra.mrb[28].mxu1 %v11336_v17 }
 0x381   : > { %8220 = vmatprep.mubr.f32.mxu1 %v11339_v52 }
 0x384   : > { %8221 = vmatmul.mubr.f32.gmra.mrb[30].mxu1 %v11342_v16 }
 0x385   : > { %8255 = vmatprep.mubr.f32.mxu1 %v3802_v19  ;;  %v6386_v19 = vld [vmem:[%s12047_s4 + $0x1c8] sm:$0xff] }
 0x388   : > { %8256 = vmatmul.mubr.f32.vlgmr.msra.gmra.mrb[0].mxu1 %v3803_v27  ;;  %v11384_v27 = vld [vmem:[#allocation3 + $0x52] sm:$0xff] }
 0x389   : > { %8258 = vmatprep.mubr.f32.mxu1 %v11357_v5  ;;  %9170 = vmatpush3.bf16.msra.mxu1 %v9167_v60  ;;  %v6385_v60 = vld [vmem:[%s12047_s4 + $0x1c0] sm:$0xff] }
 0x38a   : > { %9172 = vmatprep.subr.bf16.mxu1 %v9171_v25  ;;  %v9183_v24 = vpack.c.bf16 %v6386_v19, %v6385_v60  ;;  %v6390_v60 = vld [vmem:[%s12047_s4 + $0x1e8] sm:$0xff] }
 0x38b   : > { %v11405_v19 = vld [vmem:[#allocation3 + $0x7a] sm:$0xff] }
 0x38c   : > { %8259 = vmatmul.mubr.f32.gmra.mrb[2].mxu1 %v11360_v3  ;;  %12193 = vst [vmem:[#allocation6_spill] sm:$0xff] %v11405_v19 }
 0x38d   : > { %8261 = vmatprep.mubr.f32.mxu1 %v11369_v38  ;;  %9174 = vmatpush3.bf16.msra.mxu1 %v9171_v25  ;;  %v6387_v25 = vld [vmem:[%s12047_s4 + $0x1d0] sm:$0xff] }
 0x38e   : > { %9176 = vmatprep.subr.bf16.mxu1 %v9175_v62 }
 0x390   : > { %8262 = vmatmul.mubr.f32.gmra.mrb[4].mxu1 %v11372_v54 }
 0x391   : > { %8264 = vmatprep.mubr.f32.mxu1 %v11381_v21  ;;  %9178 = vmatpush3.bf16.msra.mxu1 %v9175_v62  ;;  %v9187_v62 = vpack.c.bf16 %v6388_v23, %v6387_v25  ;;  %v11408_v25 = vld [vmem:[#allocation3 + $0x82] sm:$0xff] }
 0x392   : > { %9180 = vmatprep.subr.bf16.mxu1 %v9179_v39  ;;  %12194 = vst [vmem:[#allocation7_spill] sm:$0xff] %v11408_v25  ;;  %v6391_v23 = vld [vmem:[%s12047_s4 + $0x1f0] sm:$0xff] }
 0x394   : > { %8265 = vmatmul.mubr.f32.gmra.mrb[6].mxu1 %v11384_v27 }
 0x395   : > { %8267 = vmatprep.mubr.f32.mxu1 %v11393_v58  ;;  %9182 = vmatpush3.bf16.msra.mxu1 %v9179_v39  ;;  %v9191_v39 = vpack.c.bf16 %v6390_v60, %v6389_v37  ;;  %v11420_v37 = vld [vmem:[#allocation3 + $0x9a] sm:$0xff]  ;;  %v6393_v60 = vld [vmem:[%s12047_s4 + $0x200] sm:$0xff] }
 0x396   : > { %9184 = vmatprep.subr.bf16.mxu1 %v9183_v24  ;;  %12196 = vst [vmem:[#allocation9_spill] sm:$0xff] %v11420_v37 }
 0x398   : > { %8268 = vmatmul.mubr.f32.gmra.mrb[8].mxu1 %v11396_v9 }
 0x399   : > { %8270 = vmatprep.mubr.f32.mxu1 %v11405_v19  ;;  %9186 = vmatpush3.bf16.msra.mxu1 %v9183_v24  ;;  %v9195_v24 = vpack.c.bf16 %v6392_v49, %v6391_v23  ;;  %v6394_v19 = vld [vmem:[%s12047_s4 + $0x208] sm:$0xff]  ;;  %v11435_v23 = vld [vmem:[#allocation3 + $0xc2] sm:$0xff] }
 0x39a   : > { %9188 = vmatprep.subr.bf16.mxu1 %v9187_v62  ;;  %v11432_v49 = vld [vmem:[#allocation3 + $0xb2] sm:$0xff]  ;;  %12197 = vst [vmem:[#allocation10_spill] sm:$0xff] %v11435_v23 }
 0x39c   : > { %8271 = vmatmul.mubr.f32.gmra.mrb[10].mxu1 %v11408_v25  ;;  %v11429_v25 = vld [vmem:[#allocation3 + $0xaa] sm:$0xff] }
 0x39d   : > { %8273 = vmatprep.mubr.f32.mxu1 %v11417_v51  ;;  %9190 = vmatpush3.bf16.msra.mxu1 %v9187_v62  ;;  %v9199_v62 = vpack.c.bf16 %v6394_v19, %v6393_v60  ;;  %v11438_v51 = vld [vmem:[#allocation3 + $0xca] sm:$0xff]  ;;  %v11447_v19 = vld [vmem:[#allocation3 + $0xf2] sm:$0xff]  ;;  %v11450_v60 = vld [vmem:[#allocation3 + $0xfa] sm:$0xff] }
 0x39e   : > { %9192 = vmatprep.subr.bf16.mxu1 %v9191_v39  ;;  %12198 = vst [vmem:[#allocation11_spill] sm:$0xff] %v11438_v51  ;;  %12201 = vst [vmem:[#allocation14_spill] sm:$0xff] %v11447_v19 }
 0x39f   : > { %12202 = vst [vmem:[#allocation15_spill] sm:$0xff] %v11450_v60 }
 0x3a0   : > { %8274 = vmatmul.mubr.f32.gmra.mrb[12].mxu1 %v11420_v37  ;;  %v11441_v37 = vld [vmem:[#allocation3 + $0xda] sm:$0xff] }
 0x3a1   : > { %8276 = vmatprep.mubr.f32.mxu1 %v11429_v25  ;;  %9194 = vmatpush3.bf16.msra.mxu1 %v9191_v39  ;;  %12199 = vst [vmem:[#allocation12_spill] sm:$0xff] %v11441_v37  ;;  %v11444_v39 = vld [vmem:[#allocation3 + $0xe2] sm:$0xff] }
 0x3a2   : > { %9196 = vmatprep.subr.bf16.mxu1 %v9195_v24  ;;  %12200 = vst [vmem:[#allocation13_spill] sm:$0xff] %v11444_v39 }
 0x3a4   : > { %8277 = vmatmul.mubr.f32.gmra.mrb[14].mxu1 %v11432_v49 }
 0x3a5   : > { %8279 = vmatprep.mubr.f32.mxu1 %v11435_v23  ;;  %9198 = vmatpush3.bf16.msra.mxu1 %v9195_v24  ;;  %v11453_v24 = vld [vmem:[#allocation3 + $0x10a] sm:$0xff] }
 0x3a6   : > { %9200 = vmatprep.subr.bf16.mxu1 %v9199_v62  ;;  %12203 = vst [vmem:[#allocation16_spill] sm:$0xff] %v11453_v24 }
 0x3a8   : > { %8280 = vmatmul.mubr.f32.gmra.mrb[16].mxu1 %v11438_v51  ;;  %v11456_v51 = vld [vmem:[#allocation3 + $0x112] sm:$0xff] }
 0x3a9   : > { %8282 = vmatprep.mubr.f32.mxu1 %v11441_v37  ;;  %12204 = vst [vmem:[#allocation17_spill] sm:$0xff] %v11456_v51  ;;  %v11459_v37 = vld [vmem:[#allocation3 + $0x122] sm:$0xff] }
 0x3aa   : > { %12205 = vst [vmem:[#allocation18_spill] sm:$0xff] %v11459_v37 }
 0x3ac   : > { %8283 = vmatmul.mubr.f32.gmra.mrb[18].mxu1 %v11444_v39  ;;  %v11462_v39 = vld [vmem:[#allocation3 + $0x12a] sm:$0xff] }
 0x3ad   : > { %8285 = vmatprep.mubr.f32.mxu1 %v11447_v19  ;;  %12206 = vst [vmem:[#allocation19_spill] sm:$0xff] %v11462_v39  ;;  %v11465_v19 = vld [vmem:[#allocation3 + $0x13a] sm:$0xff] }
 0x3ae   : > { %12207 = vst [vmem:[#allocation20_spill] sm:$0xff] %v11465_v19 }
 0x3b0   : > { %8286 = vmatmul.mubr.f32.gmra.mrb[20].mxu1 %v11450_v60  ;;  %v11468_v60 = vld [vmem:[#allocation3 + $0x142] sm:$0xff] }
 0x3b1   : > { %8288 = vmatprep.mubr.f32.mxu1 %v11453_v24  ;;  %12208 = vst [vmem:[#allocation21_spill] sm:$0xff] %v11468_v60  ;;  %v11471_v24 = vld [vmem:[#allocation3 + $0x152] sm:$0xff] }
 0x3b2   : > { %12209 = vst [vmem:[#allocation22_spill] sm:$0xff] %v11471_v24 }
 0x3b4   : > { %8289 = vmatmul.mubr.f32.gmra.mrb[22].mxu1 %v11456_v51  ;;  %v11474_v51 = vld [vmem:[#allocation3 + $0x15a] sm:$0xff] }
 0x3b5   : > { %8291 = vmatprep.mubr.f32.mxu1 %v11459_v37  ;;  %12210 = vst [vmem:[#allocation23_spill] sm:$0xff] %v11474_v51  ;;  %v11477_v37 = vld [vmem:[#allocation3 + $0x16a] sm:$0xff] }
 0x3b6   : > { %12211 = vst [vmem:[#allocation24_spill] sm:$0xff] %v11477_v37 }
 0x3b8   : > { %8292 = vmatmul.mubr.f32.gmra.mrb[24].mxu1 %v11462_v39  ;;  %v11480_v39 = vld [vmem:[#allocation3 + $0x172] sm:$0xff] }
 0x3b9   : > { %8294 = vmatprep.mubr.f32.mxu1 %v11465_v19  ;;  %v6395_v19 = vld [vmem:[%s12047_s4 + $0x210] sm:$0xff] }
 0x3bc   : > { %8295 = vmatmul.mubr.f32.gmra.mrb[26].mxu1 %v11468_v60  ;;  %v6396_v60 = vld [vmem:[%s12047_s4 + $0x218] sm:$0xff] }
 0x3bd   : > { %8297 = vmatprep.mubr.f32.mxu1 %v11471_v24  ;;  %v9203_v24 = vpack.c.bf16 %v6396_v60, %v6395_v19  ;;  %v6400_v19 = vld [vmem:[%s12047_s4 + $0x238] sm:$0xff]  ;;  %v6403_v60 = vld [vmem:[%s12047_s4 + $0x250] sm:$0xff] }
 0x3c0   : > { %8298 = vmatmul.mubr.f32.gmra.mrb[28].mxu1 %v11474_v51  ;;  %v6397_v51 = vld [vmem:[%s12047_s4 + $0x220] sm:$0xff] }
 0x3c1   : > { %8300 = vmatprep.mubr.f32.mxu1 %v11477_v37  ;;  %v6398_v37 = vld [vmem:[%s12047_s4 + $0x228] sm:$0xff] }
 0x3c2   : > { %v9207_v23 = vpack.c.bf16 %v6398_v37, %v6397_v51  ;;  %v6402_v51 = vld [vmem:[%s12047_s4 + $0x248] sm:$0xff] }
 0x3c4   : > { %8301 = vmatmul.mubr.f32.gmra.mrb[30].mxu1 %v11480_v39 }
 0x3c5   : > { %8335 = vmatprep.mubr.f32.mxu1 %v11218_v15  ;;  %v6399_v15 = vld [vmem:[%s12047_s4 + $0x230] sm:$0xff] }
 0x3c8   : > { %8336 = vmatmul.mubr.f32.vlgmr.msra.gmra.mrb[0].mxu1 %v11222_v50  ;;  %v9211_v50 = vpack.c.bf16 %v6400_v19, %v6399_v15  ;;  %v6406_v19 = vld [vmem:[%s12047_s4 + $0x268] sm:$0xff] }
 0x3c9   : > { %8338 = vmatprep.mubr.f32.mxu1 %v11231_v55  ;;  %9202 = vmatpush3.bf16.msra.mxu1 %v9199_v62  ;;  %v6401_v62 = vld [vmem:[%s12047_s4 + $0x240] sm:$0xff] }
 0x3ca   : > { %9204 = vmatprep.subr.bf16.mxu1 %v9203_v24  ;;  %v9215_v37 = vpack.c.bf16 %v6402_v51, %v6401_v62  ;;  %v6408_v51 = vld [vmem:[%s12047_s4 + $0x278] sm:$0xff] }
 0x3cc   : > { %8339 = vmatmul.mubr.f32.gmra.mrb[2].mxu1 %v11234_v20 }
 0x3cd   : > { %8341 = vmatprep.mubr.f32.mxu1 %v11243_v48  ;;  %9206 = vmatpush3.bf16.msra.mxu1 %v9203_v24  ;;  %v6404_v24 = vld [vmem:[%s12047_s4 + $0x258] sm:$0xff] }
 0x3ce   : > { %9208 = vmatprep.subr.bf16.mxu1 %v9207_v23  ;;  %v9219_v15 = vpack.c.bf16 %v6404_v24, %v6403_v60  ;;  %v6410_v24 = vld [vmem:[%s12047_s4 + $0x288] sm:$0xff] }
 0x3d0   : > { %8342 = vmatmul.mubr.f32.gmra.mrb[4].mxu1 %v11246_v28 }
 0x3d1   : > { %8344 = vmatprep.mubr.f32.mxu1 %v11255_v30  ;;  %9210 = vmatpush3.bf16.msra.mxu1 %v9207_v23  ;;  %v6405_v23 = vld [vmem:[%s12047_s4 + $0x260] sm:$0xff] }
 0x3d2   : > { %9212 = vmatprep.subr.bf16.mxu1 %v9211_v50  ;;  %v9223_v62 = vpack.c.bf16 %v6406_v19, %v6405_v23  ;;  %v11564_v19 = vld [vmem:[#allocation3 + $0x188] sm:$0xff] }
 0x3d3   : > { %12213 = vst [vmem:[#allocation26_spill] sm:$0xff] %v11564_v19 }
 0x3d4   : > { %8345 = vmatmul.mubr.f32.gmra.mrb[6].mxu1 %v11258_v32 }
 0x3d5   : > { %8347 = vmatprep.mubr.f32.mxu1 %v11267_v2  ;;  %9214 = vmatpush3.bf16.msra.mxu1 %v9211_v50  ;;  %v6407_v50 = vld [vmem:[%s12047_s4 + $0x270] sm:$0xff] }
 0x3d6   : > { %9216 = vmatprep.subr.bf16.mxu1 %v9215_v37  ;;  %v9227_v60 = vpack.c.bf16 %v6408_v51, %v6407_v50  ;;  %v6412_v50 = vld [vmem:[%s12047_s4 + $0x298] sm:$0xff]  ;;  %v4414_v51 = vld [vmem:[#allocation3 + $0x19] sm:$0xff] }
 0x3d8   : > { %8348 = vmatmul.mubr.f32.gmra.mrb[8].mxu1 %v11270_v8 }
 0x3d9   : > { %8350 = vmatprep.mubr.f32.mxu1 %v11279_v18  ;;  %9218 = vmatpush3.bf16.msra.mxu1 %v9215_v37  ;;  %v6409_v37 = vld [vmem:[%s12047_s4 + $0x280] sm:$0xff] }
 0x3da   : > { %9220 = vmatprep.subr.bf16.mxu1 %v9219_v15  ;;  %v9231_v23 = vpack.c.bf16 %v6410_v24, %v6409_v37  ;;  %v4415_v37 = vld [vmem:[#allocation3 + $0x21] sm:$0xff]  ;;  %v6413_v24 = vld [vmem:[%s12047_s4 + $0x2a0] sm:$0xff] }
 0x3dc   : > { %8351 = vmatmul.mubr.f32.gmra.mrb[10].mxu1 %v11282_v34 }
 0x3dd   : > { %8353 = vmatprep.mubr.f32.mxu1 %v11291_v59  ;;  %9222 = vmatpush3.bf16.msra.mxu1 %v9219_v15  ;;  %v11561_v15 = vld [vmem:[#allocation3 + $0x180] sm:$0xff] }
 0x3de   : > { %9224 = vmatprep.subr.bf16.mxu1 %v9223_v62  ;;  %12212 = vst [vmem:[#allocation25_spill] sm:$0xff] %v11561_v15 }
 0x3e0   : > { %8354 = vmatmul.mubr.f32.gmra.mrb[12].mxu1 %v11294_v63 }
 0x3e1   : > { %8356 = vmatprep.mubr.f32.mxu1 %v11297_v0  ;;  %9226 = vmatpush3.bf16.msra.mxu1 %v9223_v62  ;;  %v6411_v62 = vld [vmem:[%s12047_s4 + $0x290] sm:$0xff] }
 0x3e2   : > { %9228 = vmatprep.subr.bf16.mxu1 %v9227_v60 }
 0x3e4   : > { %8357 = vmatmul.mubr.f32.gmra.mrb[14].mxu1 %v11300_v4 }
 0x3e5   : > { %8359 = vmatprep.mubr.f32.mxu1 %v11303_v6  ;;  %9230 = vmatpush3.bf16.msra.mxu1 %v9227_v60  ;;  %v9235_v60 = vpack.c.bf16 %v6412_v50, %v6411_v62  ;;  %v6415_v62 = vld [vmem:[%s12047_s4 + $0x2b0] sm:$0xff]  ;;  %v6416_v50 = vld [vmem:[%s12047_s4 + $0x2b8] sm:$0xff] }
 0x3e6   : > { %9232 = vmatprep.subr.bf16.mxu1 %v9231_v23 }
 0x3e8   : > { %8360 = vmatmul.mubr.f32.gmra.mrb[16].mxu1 %v11306_v7 }
 0x3e9   : > { %8362 = vmatprep.mubr.f32.mxu1 %v11309_v10 }
 0x3ec   : > { %8363 = vmatmul.mubr.f32.gmra.mrb[18].mxu1 %v11312_v44 }
 0x3ed   : > { %8365 = vmatprep.mubr.f32.mxu1 %v11315_v53 }
 0x3f0   : > { %8366 = vmatmul.mubr.f32.gmra.mrb[20].mxu1 %v11318_v41 }
 0x3f1   : > { %8368 = vmatprep.mubr.f32.mxu1 %v11321_v12 }
 0x3f4   : > { %8369 = vmatmul.mubr.f32.gmra.mrb[22].mxu1 %v11324_v33 }
 0x3f5   : > { %8371 = vmatprep.mubr.f32.mxu1 %v11327_v45 }
 0x3f8   : > { %8372 = vmatmul.mubr.f32.gmra.mrb[24].mxu1 %v11330_v13 }
 0x3f9   : > { %8374 = vmatprep.mubr.f32.mxu1 %v11333_v14 }
 0x3fc   : > { %8375 = vmatmul.mubr.f32.gmra.mrb[26].mxu1 %v11336_v17 }
 0x3fd   : > { %8377 = vmatprep.mubr.f32.mxu1 %v11339_v52  ;;  %v11582_v52 = vld [vmem:[#allocation3 + $0x39] sm:$0xff] }
 0x3fe   : > { %12214 = vst [vmem:[#allocation27_spill] sm:$0xff] %v11582_v52 }
 0x400   : > { %8378 = vmatmul.mubr.f32.gmra.mrb[28].mxu1 %v11342_v16  ;;  %v11579_v16 = vld [vmem:[#allocation3 + $0x31] sm:$0xff] }
 0x401   : > { %8380 = vmatprep.mubr.f32.mxu1 %v11561_v15  ;;  %v6414_v15 = vld [vmem:[%s12047_s4 + $0x2a8] sm:$0xff] }
 0x404   : > { %8381 = vmatmul.mubr.f32.gmra.mrb[30].mxu1 %v11564_v19  ;;  %v9239_v19 = vpack.c.bf16 %v6414_v15, %v6413_v24  ;;  %v11594_v15 = vld [vmem:[#allocation3 + $0x51] sm:$0xff] }
 0x405   : > { %8415 = vmatprep.mubr.f32.mxu1 %v4414_v51  ;;  %v11591_v51 = vld [vmem:[#allocation3 + $0x49] sm:$0xff]  ;;  %12216 = vst [vmem:[#allocation29_spill] sm:$0xff] %v11594_v15  ;;  %v6418_v24 = vld [vmem:[%s12047_s4 + $0x2c8] sm:$0xff] }
 0x406   : > { %12215 = vst [vmem:[#allocation28_spill] sm:$0xff] %v11591_v51 }
 0x408   : > { %8416 = vmatmul.mubr.f32.vlgmr.msra.gmra.mrb[0].mxu1 %v4415_v37  ;;  %v6417_v37 = vld [vmem:[%s12047_s4 + $0x2c0] sm:$0xff] }
 0x409   : > { %8418 = vmatprep.mubr.f32.mxu1 %v11579_v16  ;;  %9234 = vmatpush3.bf16.msra.mxu1 %v9231_v23  ;;  %v9243_v23 = vpack.c.bf16 %v6416_v50, %v6415_v62  ;;  %v11606_v62 = vld [vmem:[#allocation3 + $0x69] sm:$0xff]  ;;  %v6419_v50 = vld [vmem:[%s12047_s4 + $0x2d0] sm:$0xff] }
 0x40a   : > { %9236 = vmatprep.subr.bf16.mxu1 %v9235_v60  ;;  %12218 = vst [vmem:[#allocation31_spill] sm:$0xff] %v11606_v62 }
 0x40c   : > { %8419 = vmatmul.mubr.f32.gmra.mrb[2].mxu1 %v11582_v52  ;;  %v11603_v52 = vld [vmem:[#allocation3 + $0x61] sm:$0xff] }
 0x40d   : > { %8421 = vmatprep.mubr.f32.mxu1 %v11591_v51  ;;  %9238 = vmatpush3.bf16.msra.mxu1 %v9235_v60  ;;  %12217 = vst [vmem:[#allocation30_spill] sm:$0xff] %v11603_v52  ;;  %v9247_v60 = vpack.c.bf16 %v6418_v24, %v6417_v37  ;;  %v6420_v51 = vld [vmem:[%s12047_s4 + $0x2d8] sm:$0xff]  ;;  %v6421_v24 = vld [vmem:[%s12047_s4 + $0x2e0] sm:$0xff] }
 0x40e   : > { %9240 = vmatprep.subr.bf16.mxu1 %v9239_v19  ;;  %v11618_v37 = vld [vmem:[#allocation3 + $0x81] sm:$0xff] }
 0x40f   : > { %12220 = vst [vmem:[#allocation33_spill] sm:$0xff] %v11618_v37 }
 0x410   : > { %8422 = vmatmul.mubr.f32.gmra.mrb[4].mxu1 %v11594_v15  ;;  %v11615_v15 = vld [vmem:[#allocation3 + $0x79] sm:$0xff] }
 0x411   : > { %8424 = vmatprep.mubr.f32.mxu1 %v11603_v52  ;;  %9242 = vmatpush3.bf16.msra.mxu1 %v9239_v19  ;;  %12219 = vst [vmem:[#allocation32_spill] sm:$0xff] %v11615_v15  ;;  %v9251_v19 = vpack.c.bf16 %v6420_v51, %v6419_v50  ;;  %v6422_v52 = vld [vmem:[%s12047_s4 + $0x2e8] sm:$0xff]  ;;  %v6423_v50 = vld [vmem:[%s12047_s4 + $0x2f0] sm:$0xff] }
 0x412   : > { %9244 = vmatprep.subr.bf16.mxu1 %v9243_v23  ;;  %v11630_v51 = vld [vmem:[#allocation3 + $0x99] sm:$0xff] }
 0x413   : > { %12222 = vst [vmem:[#allocation35_spill] sm:$0xff] %v11630_v51 }
 0x414   : > { %8425 = vmatmul.mubr.f32.gmra.mrb[6].mxu1 %v11606_v62  ;;  %v11627_v62 = vld [vmem:[#allocation3 + $0x91] sm:$0xff] }
 0x415   : > { %8427 = vmatprep.mubr.f32.mxu1 %v11615_v15  ;;  %9246 = vmatpush3.bf16.msra.mxu1 %v9243_v23  ;;  %12221 = vst [vmem:[#allocation34_spill] sm:$0xff] %v11627_v62  ;;  %v9255_v23 = vpack.c.bf16 %v6422_v52, %v6421_v24  ;;  %v6424_v15 = vld [vmem:[%s12047_s4 + $0x2f8] sm:$0xff]  ;;  %v11642_v52 = vld [vmem:[#allocation3 + $0xb1] sm:$0xff] }
 0x416   : > { %9248 = vmatprep.subr.bf16.mxu1 %v9247_v60  ;;  %v6425_v24 = vld [vmem:[%s12047_s4 + $0x300] sm:$0xff] }
 0x418   : > { %8428 = vmatmul.mubr.f32.gmra.mrb[8].mxu1 %v11618_v37  ;;  %v11639_v37 = vld [vmem:[#allocation3 + $0xa9] sm:$0xff] }
 0x419   : > { %8430 = vmatprep.mubr.f32.mxu1 %v11627_v62  ;;  %9250 = vmatpush3.bf16.msra.mxu1 %v9247_v60  ;;  %v9259_v60 = vpack.c.bf16 %v6424_v15, %v6423_v50  ;;  %v6426_v62 = vld [vmem:[%s12047_s4 + $0x308] sm:$0xff]  ;;  %v11654_v15 = vld [vmem:[#allocation3 + $0xc9] sm:$0xff] }
 0x41a   : > { %9252 = vmatprep.subr.bf16.mxu1 %v9251_v19 }
 0x41c   : > { %8431 = vmatmul.mubr.f32.gmra.mrb[10].mxu1 %v11630_v51  ;;  %v11651_v51 = vld [vmem:[#allocation3 + $0xc1] sm:$0xff] }
 0x41d   : > { %8433 = vmatprep.mubr.f32.mxu1 %v11639_v37  ;;  %9254 = vmatpush3.bf16.msra.mxu1 %v9251_v19  ;;  %v9263_v19 = vpack.c.bf16 %v6426_v62, %v6425_v24  ;;  %v6440_v62 = vld [vmem:[%s12047_s4 + $0x378] sm:$0xff]  ;;  %v6442_v24 = vld [vmem:[%s12047_s4 + $0x388] sm:$0xff] }
 0x41e   : > { %9256 = vmatprep.subr.bf16.mxu1 %v9255_v23 }
 0x420   : > { %8434 = vmatmul.mubr.f32.gmra.mrb[12].mxu1 %v11642_v52 }
 0x421   : > { %8436 = vmatprep.mubr.f32.mxu1 %v11651_v51  ;;  %9258 = vmatpush3.bf16.msra.mxu1 %v9255_v23  ;;  %v12228_v23 = vld [vmem:[#allocation9_spill] sm:$0xff] }
 0x422   : > { %9260 = vmatprep.subr.bf16.mxu1 %v9259_v60 }
 0x424   : > { %8437 = vmatmul.mubr.f32.gmra.mrb[14].mxu1 %v11654_v15 }
 0x425   : > { %8439 = vmatprep.mubr.f32.mxu1 %v11113_v57  ;;  %9262 = vmatpush3.bf16.msra.mxu1 %v9259_v60  ;;  %v6427_v57 = vld [vmem:[%s12047_s4 + $0x310] sm:$0xff]  ;;  %v6441_v60 = vld [vmem:[%s12047_s4 + $0x380] sm:$0xff] }
 0x426   : > { %9264 = vmatprep.subr.bf16.mxu1 %v9263_v19 }
 0x428   : > { %8440 = vmatmul.mubr.f32.gmra.mrb[16].mxu1 %v11110_v29  ;;  %v12223_v29 = vmax.f32 %v11194_v56, 0.0  ;;  %v6436_v56 = vld [vmem:[%s12047_s4 + $0x358] sm:$0xff] }
 0x429   : > { %8442 = vmatprep.mubr.f32.mxu1 %v11125_v47  ;;  %v12224_v47 = vmax.f32 %v11190_v42, 0.0  ;;  %v6435_v42 = vld [vmem:[%s12047_s4 + $0x350] sm:$0xff] }
 0x42c   : > { %8443 = vmatmul.mubr.f32.gmra.mrb[18].mxu1 %v11121_v43  ;;  %v6428_v43 = vld [vmem:[%s12047_s4 + $0x318] sm:$0xff] }
 0x42d   : > { %8445 = vmatprep.mubr.f32.mxu1 %v11137_v31  ;;  %v6429_v31 = vld [vmem:[%s12047_s4 + $0x320] sm:$0xff] }
 0x430   : > { %8446 = vmatmul.mubr.f32.gmra.mrb[20].mxu1 %v11133_v26  ;;  %v9267_v26 = vpack.c.bf16 %v6428_v43, %v6427_v57  ;;  %v12230_v57 = vld [vmem:[#allocation11_spill] sm:$0xff]  ;;  %v12232_v43 = vld [vmem:[#allocation13_spill] sm:$0xff] }
 0x431   : > { %8448 = vmatprep.mubr.f32.mxu1 %v11149_v36 }
 0x434   : > { %8449 = vmatmul.mubr.f32.gmra.mrb[22].mxu1 %v11145_v35  ;;  %v6430_v35 = vld [vmem:[%s12047_s4 + $0x328] sm:$0xff] }
 0x435   : > { %8451 = vmatprep.mubr.f32.mxu1 %v11161_v40  ;;  %v9271_v36 = vpack.c.bf16 %v6430_v35, %v6429_v31  ;;  %v6432_v40 = vld [vmem:[%s12047_s4 + $0x338] sm:$0xff]  ;;  %v12235_v31 = vld [vmem:[#allocation16_spill] sm:$0xff]  ;;  %v12237_v35 = vld [vmem:[#allocation18_spill] sm:$0xff] }
 0x438   : > { %8452 = vmatmul.mubr.f32.gmra.mrb[24].mxu1 %v11157_v22  ;;  %v6431_v22 = vld [vmem:[%s12047_s4 + $0x330] sm:$0xff] }
 0x439   : > { %8454 = vmatprep.mubr.f32.mxu1 %v11173_v1  ;;  %v6433_v1 = vld [vmem:[%s12047_s4 + $0x340] sm:$0xff] }
 0x43c   : > { %8455 = vmatmul.mubr.f32.gmra.mrb[26].mxu1 %v11169_v61  ;;  %v9275_v61 = vpack.c.bf16 %v6432_v40, %v6431_v22  ;;  %v12239_v22 = vld [vmem:[#allocation20_spill] sm:$0xff]  ;;  %v12240_v40 = vld [vmem:[#allocation21_spill] sm:$0xff] }
 0x43d   : > { %8457 = vmatprep.mubr.f32.mxu1 %v11185_v46 }
 0x440   : > { %8458 = vmatmul.mubr.f32.gmra.mrb[28].mxu1 %v11181_v11  ;;  %v6434_v11 = vld [vmem:[%s12047_s4 + $0x348] sm:$0xff] }
 0x441   : > { %8460 = vmatprep.mubr.f32.mxu1 %v12223_v29  ;;  %v9279_v46 = vpack.c.bf16 %v6434_v11, %v6433_v1  ;;  %v9295_v29 = vpack.c.bf16 %v6442_v24, %v6441_v60  ;;  %v12242_v1 = vld [vmem:[#allocation23_spill] sm:$0xff]  ;;  %v12243_v11 = vld [vmem:[#allocation24_spill] sm:$0xff]  ;;  %v12251_v60 = vld [vmem:[#allocation30_spill] sm:$0xff] }
 0x444   : > { %8461 = vmatmul.mubr.f32.gmra.mrb[30].mxu1 %v12224_v47  ;;  %v12233_v47 = vld [vmem:[#allocation14_spill] sm:$0xff] }
 0x445   : > { %8495 = vmatprep.mubr.f32.mxu1 %v11357_v5  ;;  %v12225_v5 = vld [vmem:[#allocation6_spill] sm:$0xff] }
 0x448   : > { %8496 = vmatmul.mubr.f32.vlgmr.msra.gmra.mrb[0].mxu1 %v11360_v3  ;;  %v9283_v3 = vpack.c.bf16 %v6436_v56, %v6435_v42  ;;  %v11756_v42 = vld [vmem:[#allocation3 + $0x18a] sm:$0xff]  ;;  %v6443_v56 = vld [vmem:[%s12047_s4 + $0x390] sm:$0xff] }
 0x449   : > { %8498 = vmatprep.mubr.f32.mxu1 %v11369_v38  ;;  %9266 = vmatpush3.bf16.msra.mxu1 %v9263_v19  ;;  %v6437_v38 = vld [vmem:[%s12047_s4 + $0x360] sm:$0xff]  ;;  %v12229_v19 = vld [vmem:[#allocation10_spill] sm:$0xff] }
 0x44a   : > { %9268 = vmatprep.subr.bf16.mxu1 %v9267_v26 }
 0x44c   : > { %8499 = vmatmul.mubr.f32.gmra.mrb[2].mxu1 %v11372_v54  ;;  %v6438_v54 = vld [vmem:[%s12047_s4 + $0x368] sm:$0xff] }
 0x44d   : > { %8501 = vmatprep.mubr.f32.mxu1 %v11381_v21  ;;  %9270 = vmatpush3.bf16.msra.mxu1 %v9267_v26  ;;  %v12226_v21 = vld [vmem:[#allocation7_spill] sm:$0xff] }
 0x44e   : > { %9272 = vmatprep.subr.bf16.mxu1 %v9271_v36  ;;  %v12234_v26 = vld [vmem:[#allocation15_spill] sm:$0xff] }
 0x450   : > { %8502 = vmatmul.mubr.f32.gmra.mrb[4].mxu1 %v11384_v27  ;;  %v12227_v27 = vld [vmem:[#allocation8_spill] sm:$0xff] }
 0x451   : > { %8504 = vmatprep.mubr.f32.mxu1 %v11393_v58  ;;  %9274 = vmatpush3.bf16.msra.mxu1 %v9271_v36  ;;  %v9287_v58 = vpack.c.bf16 %v6438_v54, %v6437_v38  ;;  %v12238_v36 = vld [vmem:[#allocation19_spill] sm:$0xff]  ;;  %v6446_v38 = vld [vmem:[%s12047_s4 + $0x3a8] sm:$0xff] }
 0x452   : > { %9276 = vmatprep.subr.bf16.mxu1 %v9275_v61 }
 0x454   : > { %8505 = vmatmul.mubr.f32.gmra.mrb[6].mxu1 %v11396_v9  ;;  %v6439_v9 = vld [vmem:[%s12047_s4 + $0x370] sm:$0xff] }
 0x455   : > { %8507 = vmatprep.mubr.f32.mxu1 %v12225_v5  ;;  %9278 = vmatpush3.bf16.msra.mxu1 %v9275_v61  ;;  %v9291_v50 = vpack.c.bf16 %v6440_v62, %v6439_v9  ;;  %v12241_v61 = vld [vmem:[#allocation22_spill] sm:$0xff]  ;;  %v6444_v5 = vld [vmem:[%s12047_s4 + $0x398] sm:$0xff]  ;;  %v6454_v9 = vld [vmem:[%s12047_s4 + $0x3e8] sm:$0xff] }
 0x456   : > { %9280 = vmatprep.subr.bf16.mxu1 %v9279_v46  ;;  %v6456_v62 = vld [vmem:[%s12047_s4 + $0x3f8] sm:$0xff] }
 0x458   : > { %8508 = vmatmul.mubr.f32.gmra.mrb[8].mxu1 %v12226_v21  ;;  %v6448_v21 = vld [vmem:[%s12047_s4 + $0x3b8] sm:$0xff] }
 0x459   : > { %8510 = vmatprep.mubr.f32.mxu1 %v12227_v27  ;;  %9282 = vmatpush3.bf16.msra.mxu1 %v9279_v46  ;;  %v11753_v46 = vld [vmem:[#allocation3 + $0x182] sm:$0xff]  ;;  %v6450_v27 = vld [vmem:[%s12047_s4 + $0x3c8] sm:$0xff] }
 0x45a   : > { %9284 = vmatprep.subr.bf16.mxu1 %v9283_v3 }
 0x45c   : > { %8511 = vmatmul.mubr.f32.gmra.mrb[10].mxu1 %v12228_v23  ;;  %v6458_v23 = vld [vmem:[%s12047_s4 + $0x408] sm:$0xff] }
 0x45d   : > { %8513 = vmatprep.mubr.f32.mxu1 %v11429_v25  ;;  %9286 = vmatpush3.bf16.msra.mxu1 %v9283_v3  ;;  %v12231_v25 = vld [vmem:[#allocation12_spill] sm:$0xff]  ;;  %v9299_v3 = vpack.c.bf16 %v6444_v5, %v6443_v56  ;;  %v5348_v5 = vld [vmem:[#allocation3 + $0xe1] sm:$0xff] }
 0x45e   : > { %9288 = vmatprep.subr.bf16.mxu1 %v9287_v58 }
 0x460   : > { %8514 = vmatmul.mubr.f32.gmra.mrb[12].mxu1 %v11432_v49  ;;  %v12236_v49 = vld [vmem:[#allocation17_spill] sm:$0xff] }
 0x461   : > { %8516 = vmatprep.mubr.f32.mxu1 %v12229_v19  ;;  %9290 = vmatpush3.bf16.msra.mxu1 %v9287_v58  ;;  %v6452_v58 = vld [vmem:[%s12047_s4 + $0x3d8] sm:$0xff]  ;;  %v6465_v19 = vld [vmem:[%s12047_s4 + $0x440] sm:$0xff] }
 0x462   : > { %9292 = vmatprep.subr.bf16.mxu1 %v9291_v50 }
 0x464   : > { %8517 = vmatmul.mubr.f32.gmra.mrb[14].mxu1 %v12230_v57  ;;  %v12252_v57 = vld [vmem:[#allocation31_spill] sm:$0xff] }
 0x465   : > { %8519 = vmatprep.mubr.f32.mxu1 %v12231_v25  ;;  %9294 = vmatpush3.bf16.msra.mxu1 %v9291_v50  ;;  %v12250_v50 = vld [vmem:[#allocation29_spill] sm:$0xff]  ;;  %v12253_v25 = vld [vmem:[#allocation32_spill] sm:$0xff] }
 0x466   : > { %9296 = vmatprep.subr.bf16.mxu1 %v9295_v29 }
 0x468   : > { %8520 = vmatmul.mubr.f32.gmra.mrb[16].mxu1 %v12232_v43 }
 0x469   : > { %8522 = vmatprep.mubr.f32.mxu1 %v12233_v47  ;;  %v6467_v47 = vld [vmem:[%s12047_s4 + $0x450] sm:$0xff] }
 0x46c   : > { %8523 = vmatmul.mubr.f32.gmra.mrb[18].mxu1 %v12234_v26  ;;  %v6468_v26 = vld [vmem:[%s12047_s4 + $0x458] sm:$0xff] }
 0x46d   : > { %8525 = vmatprep.mubr.f32.mxu1 %v12235_v31  ;;  %v12254_v31 = vld [vmem:[#allocation33_spill] sm:$0xff] }
 0x470   : > { %8526 = vmatmul.mubr.f32.gmra.mrb[20].mxu1 %v12236_v49  ;;  %v12255_v49 = vld [vmem:[#allocation34_spill] sm:$0xff] }
 0x471   : > { %8528 = vmatprep.mubr.f32.mxu1 %v12237_v35  ;;  %v9347_v35 = vpack.c.bf16 %v6468_v26, %v6467_v47  ;;  %v11903_v47 = vld [vmem:[%s12049_s6] ss:$0 sm:$0xff] }
 0x474   : > { %8529 = vmatmul.mubr.f32.gmra.mrb[22].mxu1 %v12238_v36  ;;  %v6469_v36 = vld [vmem:[%s12047_s4 + $0x460] sm:$0xff] }
 0x475   : > { %8531 = vmatprep.mubr.f32.mxu1 %v12239_v22  ;;  %v6470_v22 = vld [vmem:[%s12047_s4 + $0x468] sm:$0xff] }
 0x478   : > { %8532 = vmatmul.mubr.f32.gmra.mrb[24].mxu1 %v12240_v40  ;;  %v12256_v40 = vld [vmem:[#allocation35_spill] sm:$0xff] }
 0x479   : > { %8534 = vmatprep.mubr.f32.mxu1 %v12241_v61  ;;  %v9351_v61 = vpack.c.bf16 %v6470_v22, %v6469_v36 }
 0x47c   : > { %8535 = vmatmul.mubr.f32.gmra.mrb[26].mxu1 %v12242_v1  ;;  %v6471_v1 = vld [vmem:[%s12047_s4 + $0x470] sm:$0xff] }
 0x47d   : > { %8537 = vmatprep.mubr.f32.mxu1 %v12243_v11  ;;  %v6472_v11 = vld [vmem:[%s12047_s4 + $0x478] sm:$0xff] }
 0x47e   : > { %v9355_v56 = vpack.c.bf16 %v6472_v11, %v6471_v1 }
 0x480   : > { %8538 = vmatmul.mubr.f32.gmra.mrb[28].mxu1 %v11480_v39  ;;  %v6445_v39 = vld [vmem:[%s12047_s4 + $0x3a0] sm:$0xff] }
 0x481   : > { %8540 = vmatprep.mubr.f32.mxu1 %v11753_v46  ;;  %v9303_v54 = vpack.c.bf16 %v6446_v38, %v6445_v39  ;;  %v5350_v39 = vld [vmem:[#allocation3 + $0xf9] sm:$0xff]  ;;  %v5351_v38 = vld [vmem:[#allocation3 + $0x109] sm:$0xff] }
 0x484   : > { %8541 = vmatmul.mubr.f32.gmra.mrb[30].mxu1 %v11756_v42 }
 0x485   : > { %8575 = vmatprep.mubr.f32.mxu1 %v11231_v55  ;;  %v6447_v55 = vld [vmem:[%s12047_s4 + $0x3b0] sm:$0xff] }
 0x488   : > { %8576 = vmatmul.mubr.f32.vlgmr.msra.gmra.mrb[0].mxu1 %v11234_v20  ;;  %v9307_v20 = vpack.c.bf16 %v6448_v21, %v6447_v55  ;;  %v5356_v55 = vld [vmem:[#allocation3 + $0x141] sm:$0xff]  ;;  %v5357_v21 = vld [vmem:[#allocation3 + $0x151] sm:$0xff] }
 0x489   : > { %8578 = vmatprep.mubr.f32.mxu1 %v11243_v48  ;;  %9298 = vmatpush3.bf16.msra.mxu1 %v9295_v29  ;;  %v6449_v48 = vld [vmem:[%s12047_s4 + $0x3c0] sm:$0xff]  ;;  %v6466_v29 = vld [vmem:[%s12047_s4 + $0x448] sm:$0xff] }
 0x48a   : > { %9300 = vmatprep.subr.bf16.mxu1 %v9299_v3  ;;  %v9343_v43 = vpack.c.bf16 %v6466_v29, %v6465_v19  ;;  %v5666_v19 = vld [vmem:[#allocation3 + $0x172] sm:$0xff]  ;;  %v5669_v29 = vld [vmem:[#allocation3 + $0x19a] sm:$0xff] }
 0x48c   : > { %8579 = vmatmul.mubr.f32.gmra.mrb[2].mxu1 %v11246_v28  ;;  %v9311_v28 = vpack.c.bf16 %v6450_v27, %v6449_v48  ;;  %v5359_v48 = vld [vmem:[#allocation3 + $0x169] sm:$0xff]  ;;  %v5360_v27 = vld [vmem:[#allocation3 + $0x171] sm:$0xff] }
 0x48d   : > { %8581 = vmatprep.mubr.f32.mxu1 %v11255_v30  ;;  %9302 = vmatpush3.bf16.msra.mxu1 %v9299_v3  ;;  %v6451_v30 = vld [vmem:[%s12047_s4 + $0x3d0] sm:$0xff]  ;;  %v5349_v3 = vld [vmem:[#allocation3 + $0xf1] sm:$0xff] }
 0x48e   : > { %9304 = vmatprep.subr.bf16.mxu1 %v9303_v54 }
 0x490   : > { %8582 = vmatmul.mubr.f32.gmra.mrb[4].mxu1 %v11258_v32  ;;  %v9315_v32 = vpack.c.bf16 %v6452_v58, %v6451_v30  ;;  %v5363_v30 = vld [vmem:[#allocation3 + $0x199] sm:$0xff]  ;;  %v5362_v58 = vld [vmem:[#allocation3 + $0x189] sm:$0xff] }
 0x491   : > { %8584 = vmatprep.mubr.f32.mxu1 %v11267_v2  ;;  %9306 = vmatpush3.bf16.msra.mxu1 %v9303_v54  ;;  %v6453_v2 = vld [vmem:[%s12047_s4 + $0x3e0] sm:$0xff] }
 0x492   : > { %9308 = vmatprep.subr.bf16.mxu1 %v9307_v20  ;;  %v5354_v54 = vld [vmem:[#allocation3 + $0x129] sm:$0xff] }
 0x494   : > { %8585 = vmatmul.mubr.f32.gmra.mrb[6].mxu1 %v11270_v8  ;;  %v9319_v8 = vpack.c.bf16 %v6454_v9, %v6453_v2  ;;  %v5639_v2 = vld [vmem:[#allocation3 + $0x32] sm:$0xff]  ;;  %v5640_v9 = vld [vmem:[#allocation3 + $0x3a] sm:$0xff] }
 0x495   : > { %8587 = vmatprep.mubr.f32.mxu1 %v11279_v18  ;;  %9310 = vmatpush3.bf16.msra.mxu1 %v9307_v20  ;;  %v6455_v18 = vld [vmem:[%s12047_s4 + $0x3f0] sm:$0xff] }
 0x496   : > { %9312 = vmatprep.subr.bf16.mxu1 %v9311_v28  ;;  %v5358_v20 = vld [vmem:[#allocation3 + $0x159] sm:$0xff] }
 0x498   : > { %8588 = vmatmul.mubr.f32.gmra.mrb[8].mxu1 %v11282_v34  ;;  %v9323_v34 = vpack.c.bf16 %v6456_v62, %v6455_v18  ;;  %v5642_v18 = vld [vmem:[#allocation3 + $0x52] sm:$0xff]  ;;  %v5643_v62 = vld [vmem:[#allocation3 + $0x62] sm:$0xff] }
 0x499   : > { %8590 = vmatprep.mubr.f32.mxu1 %v11291_v59  ;;  %9314 = vmatpush3.bf16.msra.mxu1 %v9311_v28  ;;  %v6457_v59 = vld [vmem:[%s12047_s4 + $0x400] sm:$0xff]  ;;  %v5361_v28 = vld [vmem:[#allocation3 + $0x181] sm:$0xff] }
 0x49a   : > { %9316 = vmatprep.subr.bf16.mxu1 %v9315_v32 }
 0x49c   : > { %8591 = vmatmul.mubr.f32.gmra.mrb[10].mxu1 %v11294_v63  ;;  %v9327_v63 = vpack.c.bf16 %v6458_v23, %v6457_v59  ;;  %v5645_v59 = vld [vmem:[#allocation3 + $0x7a] sm:$0xff]  ;;  %v5646_v23 = vld [vmem:[#allocation3 + $0x82] sm:$0xff] }
 0x49d   : > { %8593 = vmatprep.mubr.f32.mxu1 %v11297_v0  ;;  %9318 = vmatpush3.bf16.msra.mxu1 %v9315_v32  ;;  %v12244_v0 = vld [vmem:[#allocation4_spill] sm:$0xff]  ;;  %v5364_v32 = vld [vmem:[#allocation3 + $0x1a1] sm:$0xff] }
 0x49e   : > { %9320 = vmatprep.subr.bf16.mxu1 %v9319_v8 }
 0x4a0   : > { %8594 = vmatmul.mubr.f32.gmra.mrb[12].mxu1 %v11300_v4  ;;  %v12245_v4 = vld [vmem:[#allocation5_spill] sm:$0xff] }
 0x4a1   : > { %8596 = vmatprep.mubr.f32.mxu1 %v11303_v6  ;;  %9322 = vmatpush3.bf16.msra.mxu1 %v9319_v8  ;;  %v12246_v6 = vld [vmem:[#allocation25_spill] sm:$0xff]  ;;  %v5641_v8 = vld [vmem:[#allocation3 + $0x4a] sm:$0xff] }
 0x4a2   : > { %9324 = vmatprep.subr.bf16.mxu1 %v9323_v34 }
 0x4a4   : > { %8597 = vmatmul.mubr.f32.gmra.mrb[14].mxu1 %v11306_v7  ;;  %v12247_v7 = vld [vmem:[#allocation26_spill] sm:$0xff] }
 0x4a5   : > { %8599 = vmatprep.mubr.f32.mxu1 %v11309_v10  ;;  %9326 = vmatpush3.bf16.msra.mxu1 %v9323_v34  ;;  %v9883_v10 = vld [vmem:[#allocation2] sm:$0xff] }
 0x4a6   : > { %9328 = vmatprep.subr.bf16.mxu1 %v9327_v63  ;;  %v5644_v34 = vld [vmem:[#allocation3 + $0x6a] sm:$0xff] }
 0x4a8   : > { %8600 = vmatmul.mubr.f32.gmra.mrb[16].mxu1 %v11312_v44  ;;  %v6459_v44 = vld [vmem:[%s12047_s4 + $0x410] sm:$0xff] }
 0x4a9   : > { %8602 = vmatprep.mubr.f32.mxu1 %v11315_v53  ;;  %v6460_v53 = vld [vmem:[%s12047_s4 + $0x418] sm:$0xff] }
 0x4ac   : > { %8603 = vmatmul.mubr.f32.gmra.mrb[18].mxu1 %v11318_v41  ;;  %v9331_v41 = vpack.c.bf16 %v6460_v53, %v6459_v44  ;;  %v5653_v44 = vld [vmem:[#allocation3 + $0xda] sm:$0xff]  ;;  %v5654_v53 = vld [vmem:[#allocation3 + $0xe2] sm:$0xff] }
 0x4ad   : > { %8605 = vmatprep.mubr.f32.mxu1 %v11321_v12  ;;  %v6461_v12 = vld [vmem:[%s12047_s4 + $0x420] sm:$0xff] }
 0x4b0   : > { %8606 = vmatmul.mubr.f32.gmra.mrb[20].mxu1 %v11324_v33  ;;  %v6462_v33 = vld [vmem:[%s12047_s4 + $0x428] sm:$0xff] }
 0x4b1   : > { %8608 = vmatprep.mubr.f32.mxu1 %v11327_v45  ;;  %v12248_v45 = vld [vmem:[#allocation27_spill] sm:$0xff] }
 0x4b4   : > { %8609 = vmatmul.mubr.f32.gmra.mrb[22].mxu1 %v11330_v13  ;;  %v12249_v13 = vld [vmem:[#allocation28_spill] sm:$0xff] }
 0x4b5   : > { %8611 = vmatprep.mubr.f32.mxu1 %v11333_v14  ;;  %v9335_v14 = vpack.c.bf16 %v6462_v33, %v6461_v12  ;;  %v5656_v12 = vld [vmem:[#allocation3 + $0xfa] sm:$0xff]  ;;  %v5657_v33 = vld [vmem:[#allocation3 + $0x10a] sm:$0xff] }
 0x4b8   : > { %8612 = vmatmul.mubr.f32.gmra.mrb[24].mxu1 %v11336_v17  ;;  %v6463_v17 = vld [vmem:[%s12047_s4 + $0x430] sm:$0xff] }
 0x4b9   : > { %8614 = vmatprep.mubr.f32.mxu1 %v12244_v0  ;;  %v5648_v0 = vld [vmem:[#allocation3 + $0x9a] sm:$0xff] }
 0x4bc   : > { %8615 = vmatmul.mubr.f32.gmra.mrb[26].mxu1 %v12245_v4  ;;  %v5649_v4 = vld [vmem:[#allocation3 + $0xaa] sm:$0xff] }
 0x4bd   : > { %8617 = vmatprep.mubr.f32.mxu1 %v12246_v6  ;;  %v5650_v6 = vld [vmem:[#allocation3 + $0xb2] sm:$0xff] }
 0x4c0   : > { %8618 = vmatmul.mubr.f32.gmra.mrb[28].mxu1 %v12247_v7  ;;  %v5651_v7 = vld [vmem:[#allocation3 + $0xc2] sm:$0xff] }
 0x4c1   : > { %8620 = vmatprep.mubr.f32.mxu1 %v9883_v10 }
 0x4c4   : > { %8621 = vmatmul.mubr.f32.gmra.mrb[30].mxu1 %v9883_v10  ;;  %v5652_v10 = vld [vmem:[#allocation3 + $0xca] sm:$0xff] }
 0x4c5   : > { %8655 = vmatprep.mubr.f32.mxu1 %v11579_v16  ;;  %v6464_v16 = vld [vmem:[%s12047_s4 + $0x438] sm:$0xff] }
 0x4c6   : > { %v9339_v24 = vpack.c.bf16 %v6464_v16, %v6463_v17  ;;  %v5661_v17 = vld [vmem:[#allocation3 + $0x13a] sm:$0xff]  ;;  %v5662_v16 = vld [vmem:[#allocation3 + $0x142] sm:$0xff] }
 0x4c8   : > { %8656 = vmatmul.mubr.f32.vlgmr.msra.gmra.mrb[0].mxu1 %v12248_v45  ;;  %v5658_v45 = vld [vmem:[#allocation3 + $0x112] sm:$0xff] }
 0x4c9   : > { %8658 = vmatprep.mubr.f32.mxu1 %v12249_v13  ;;  %9330 = vmatpush3.bf16.msra.mxu1 %v9327_v63  ;;  %v5647_v63 = vld [vmem:[#allocation3 + $0x92] sm:$0xff]  ;;  %v5659_v13 = vld [vmem:[#allocation3 + $0x122] sm:$0xff] }
 0x4ca   : > { %9332 = vmatprep.subr.bf16.mxu1 %v9331_v41 }
 0x4cc   : > { %8659 = vmatmul.mubr.f32.gmra.mrb[2].mxu1 %v12250_v50  ;;  %v5663_v50 = vld [vmem:[#allocation3 + $0x152] sm:$0xff] }
 0x4cd   : > { %8661 = vmatprep.mubr.f32.mxu1 %v12251_v60  ;;  %9334 = vmatpush3.bf16.msra.mxu1 %v9331_v41  ;;  %v5655_v41 = vld [vmem:[#allocation3 + $0xf2] sm:$0xff]  ;;  %v5664_v60 = vld [vmem:[#allocation3 + $0x15a] sm:$0xff] }
 0x4ce   : > { %9336 = vmatprep.subr.bf16.mxu1 %v9335_v14 }
 0x4d0   : > { %8662 = vmatmul.mubr.f32.gmra.mrb[4].mxu1 %v12252_v57  ;;  %v5670_v57 = vld [vmem:[#allocation3 + $0x1a2] sm:$0xff] }
 0x4d1   : > { %8664 = vmatprep.mubr.f32.mxu1 %v12253_v25  ;;  %9338 = vmatpush3.bf16.msra.mxu1 %v9335_v14  ;;  %v5660_v14 = vld [vmem:[#allocation3 + $0x12a] sm:$0xff] }
 0x4d2   : > { %9340 = vmatprep.subr.bf16.mxu1 %v9339_v24  ;;  %v11898_v25 = vld [vmem:[%s12048_s5] ss:$0 sm:$0xff] }
 0x4d4   : > { %8665 = vmatmul.mubr.f32.gmra.mrb[6].mxu1 %v12254_v31 }
 0x4d5   : > { %8667 = vmatprep.mubr.f32.mxu1 %v12255_v49  ;;  %9342 = vmatpush3.bf16.msra.mxu1 %v9339_v24  ;;  %v5665_v24 = vld [vmem:[#allocation3 + $0x16a] sm:$0xff] }
 0x4d6   : > { %9344 = vmatprep.subr.bf16.mxu1 %v9343_v43 }
 0x4d8   : > { %8668 = vmatmul.mubr.f32.gmra.mrb[8].mxu1 %v12256_v40 }
 0x4d9   : > { %8670 = vmatprep.mubr.f32.mxu1 %v11639_v37  ;;  %9346 = vmatpush3.bf16.msra.mxu1 %v9343_v43  ;;  %v5347_v37 = vld [vmem:[#allocation3 + $0xd9] sm:$0xff] }
 0x4da   : > { %9348 = vmatprep.subr.bf16.mxu1 %v9347_v35 }
 0x4dc   : > { %8671 = vmatmul.mubr.f32.gmra.mrb[10].mxu1 %v11642_v52  ;;  %v5352_v52 = vld [vmem:[#allocation3 + $0x111] sm:$0xff] }
 0x4dd   : > { %8673 = vmatprep.mubr.f32.mxu1 %v11651_v51  ;;  %9350 = vmatpush3.bf16.msra.mxu1 %v9347_v35  ;;  %v5353_v51 = vld [vmem:[#allocation3 + $0x121] sm:$0xff]  ;;  %v6023_v35 = vld [vmem:[%s10069_s23] sm:$0xff] }
 0x4de   : > { %9352 = vmatprep.subr.bf16.mxu1 %v9351_v61 }
 0x4e0   : > { %8674 = vmatmul.mubr.f32.gmra.mrb[12].mxu1 %v11654_v15  ;;  %v5355_v15 = vld [vmem:[#allocation3 + $0x139] sm:$0xff] }
 0x4e1   : > { %8676 = vmatprep.mubr.f32.mxu1 %v5347_v37  ;;  %9354 = vmatpush3.bf16.msra.mxu1 %v9351_v61 }
 0x4e2   : > { %9356 = vmatprep.subr.bf16.mxu1 %v9355_v56 }
 0x4e4   : > { %8677 = vmatmul.mubr.f32.gmra.mrb[14].mxu1 %v5348_v5 }
 0x4e5   : > { %8679 = vmatprep.mubr.f32.mxu1 %v5349_v3  ;;  %9358 = vmatpush3.bf16.msra.mxu1 %v9355_v56  ;;  %v6026_v56 = vld [vmem:[%s10069_s23 + $0x18] sm:$0xff] }
 0x4e8   : > { %8680 = vmatmul.mubr.f32.gmra.mrb[16].mxu1 %v5350_v39  ;;  %v6025_v39 = vld [vmem:[%s10069_s23 + $0x10] sm:$0xff] }
 0x4e9   : > { %8682 = vmatprep.mubr.f32.mxu1 %v5351_v38 }
 0x4ec   : > { %8683 = vmatmul.mubr.f32.gmra.mrb[18].mxu1 %v5352_v52 }
 0x4ed   : > { %8685 = vmatprep.mubr.f32.mxu1 %v5353_v51 }
 0x4f0   : > { %8686 = vmatmul.mubr.f32.gmra.mrb[20].mxu1 %v5354_v54 }
 0x4f1   : > { %8688 = vmatprep.mubr.f32.mxu1 %v5355_v15 }
 0x4f4   : > { %8689 = vmatmul.mubr.f32.gmra.mrb[22].mxu1 %v5356_v55 }
 0x4f5   : > { %8691 = vmatprep.mubr.f32.mxu1 %v5357_v21 }
 0x4f8   : > { %8692 = vmatmul.mubr.f32.gmra.mrb[24].mxu1 %v5358_v20  ;;  %v6028_v20 = vld [vmem:[%s10069_s23 + $0x28] sm:$0xff] }
 0x4f9   : > { %8694 = vmatprep.mubr.f32.mxu1 %v5359_v48 }
 0x4fc   : > { %8695 = vmatmul.mubr.f32.gmra.mrb[26].mxu1 %v5360_v27 }
 0x4fd   : > { %8697 = vmatprep.mubr.f32.mxu1 %v5361_v28 }
 0x500   : > { %8698 = vmatmul.mubr.f32.gmra.mrb[28].mxu1 %v5362_v58 }
 0x501   : > { %8700 = vmatprep.mubr.f32.mxu1 %v5363_v30  ;;  %v6027_v30 = vld [vmem:[%s10069_s23 + $0x20] sm:$0xff] }
 0x504   : > { %8701 = vmatmul.mubr.f32.gmra.mrb[30].mxu1 %v5364_v32 }
 0x505   : > { %8735 = vmatprep.mubr.f32.mxu1 %v5639_v2 }
 0x508   : > { %8736 = vmatmul.mubr.f32.vlgmr.msra.gmra.mrb[0].mxu1 %v5640_v9 }
 0x509   : > { %8738 = vmatprep.mubr.f32.mxu1 %v5641_v8 }
 0x50c   : > { %8739 = vmatmul.mubr.f32.gmra.mrb[2].mxu1 %v5642_v18 }
 0x50d   : > { %8741 = vmatprep.mubr.f32.mxu1 %v5643_v62 }
 0x510   : > { %8742 = vmatmul.mubr.f32.gmra.mrb[4].mxu1 %v5644_v34  ;;  %v6030_v34 = vld [vmem:[%s10069_s23 + $0x38] sm:$0xff] }
 0x511   : > { %8744 = vmatprep.mubr.f32.mxu1 %v5645_v59 }
 0x514   : > { %8745 = vmatmul.mubr.f32.gmra.mrb[6].mxu1 %v5646_v23 }
 0x515   : > { %8747 = vmatprep.mubr.f32.mxu1 %v5647_v63 }
 0x518   : > { %8748 = vmatmul.mubr.f32.gmra.mrb[8].mxu1 %v5648_v0  ;;  %v6029_v0 = vld [vmem:[%s10069_s23 + $0x30] sm:$0xff] }
 0x519   : > { %8750 = vmatprep.mubr.f32.mxu1 %v5649_v4 }
 0x51c   : > { %8751 = vmatmul.mubr.f32.gmra.mrb[10].mxu1 %v5650_v6 }
 0x51d   : > { %8753 = vmatprep.mubr.f32.mxu1 %v5651_v7 }
 0x520   : > { %8754 = vmatmul.mubr.f32.gmra.mrb[12].mxu1 %v5652_v10 }
 0x521   : > { %8756 = vmatprep.mubr.f32.mxu1 %v5653_v44 }
 0x524   : > { %8757 = vmatmul.mubr.f32.gmra.mrb[14].mxu1 %v5654_v53 }
 0x525   : > { %8759 = vmatprep.mubr.f32.mxu1 %v5655_v41 }
 0x528   : > { %8760 = vmatmul.mubr.f32.gmra.mrb[16].mxu1 %v5656_v12  ;;  %v6032_v12 = vld [vmem:[%s10069_s23 + $0x48] sm:$0xff] }
 0x529   : > { %8762 = vmatprep.mubr.f32.mxu1 %v5657_v33 }
 0x52c   : > { %8763 = vmatmul.mubr.f32.gmra.mrb[18].mxu1 %v5658_v45 }
 0x52d   : > { %8765 = vmatprep.mubr.f32.mxu1 %v5659_v13 }
 0x530   : > { %8766 = vmatmul.mubr.f32.gmra.mrb[20].mxu1 %v5660_v14  ;;  %v6031_v14 = vld [vmem:[%s10069_s23 + $0x40] sm:$0xff] }
 0x531   : > { %8768 = vmatprep.mubr.f32.mxu1 %v5661_v17 }
 0x534   : > { %8769 = vmatmul.mubr.f32.gmra.mrb[22].mxu1 %v5662_v16 }
 0x535   : > { %8771 = vmatprep.mubr.f32.mxu1 %v5663_v50 }
 0x538   : > { %8772 = vmatmul.mubr.f32.gmra.mrb[24].mxu1 %v5664_v60 }
 0x539   : > { %8774 = vmatprep.mubr.f32.mxu1 %v5665_v24 }
 0x53c   : > { %8775 = vmatmul.mubr.f32.gmra.mrb[26].mxu1 %v5666_v19 }
 0x53d   : > { %8777 = vmatprep.mubr.f32.mxu1 %v11753_v46 }
 0x540   : > { %8778 = vmatmul.mubr.f32.gmra.mrb[28].mxu1 %v11756_v42  ;;  %v6024_v42 = vld [vmem:[%s10069_s23 + $0x8] sm:$0xff] }
 0x541   : > { %8780 = vmatprep.mubr.f32.mxu1 %v5669_v29 }
 0x544   : > { %8781 = vmatmul.mubr.f32.gmra.mrb[30].mxu1 %v5670_v57  ;;  %v6034_v57 = vld [vmem:[%s10069_s23 + $0x58] sm:$0xff] }
 0x5db   : > { %v8737_v43 = vpop.f32.mrb[0].mxu1 }
 0x5dc   : > { %v5953_v46 = vmul.f32 %v8737_v43, %v11898_v25  ;;  %v5754_v26 = vpop.f32.mrb[1].mxu1 }
 0x5dd   : > { %v5952_v31 = vmul.f32 %v11898_v25, %v5754_v26 }
 0x5de   : > { %v5992_v49 = vadd.f32 %v11903_v47, %v5953_v46 }
 0x5df   : > { %v5991_v36 = vadd.f32 %v11903_v47, %v5952_v31  ;;  %v8740_v22 = vpop.f32.mrb[2].mxu1 }
 0x5e0   : > { %v6056_v40 = vadd.f32 %v6024_v42, %v5992_v49  ;;  %v5955_v61 = vmul.f32 %v8740_v22, %v11898_v25  ;;  %v5764_v1 = vpop.f32.mrb[3].mxu1  ;;  %v6033_v42 = vld [vmem:[%s10069_s23 + $0x50] sm:$0xff] }
 0x5e1   : > { %v6055_v11 = vadd.f32 %v6023_v35, %v5991_v36  ;;  %v5954_v37 = vmul.f32 %v11898_v25, %v5764_v1  ;;  %v6036_v1 = vld [vmem:[%s10069_s23 + $0x68] sm:$0xff] }
 0x5e2   : > { %v6088_v5 = vmax.f32 %v6056_v40, 0.0  ;;  %v5994_v3 = vadd.f32 %v11903_v47, %v5955_v61 }
 0x5e3   : > { %v6087_v38 = vmax.f32 %v6055_v11, 0.0  ;;  %v5993_v52 = vadd.f32 %v11903_v47, %v5954_v37  ;;  %v8743_v51 = vpop.f32.mrb[4].mxu1 }
 0x5e4   : > { %6120 = vst [vmem:[%s11917_s26 + $0x8] sm:$0xff] %v6088_v5  ;;  %v6058_v54 = vadd.f32 %v6026_v56, %v5994_v3  ;;  %v5957_v15 = vmul.f32 %v8743_v51, %v11898_v25  ;;  %v5774_v55 = vpop.f32.mrb[5].mxu1  ;;  %v6035_v5 = vld [vmem:[%s10069_s23 + $0x60] sm:$0xff] }
 0x5e5   : > { %6119 = vst [vmem:[%s11917_s26] sm:$0xff] %v6087_v38  ;;  %v6057_v21 = vadd.f32 %v6025_v39, %v5993_v52  ;;  %v5956_v48 = vmul.f32 %v11898_v25, %v5774_v55  ;;  %v6038_v55 = vld [vmem:[%s10069_s23 + $0x78] sm:$0xff] }
 0x5e6   : > { %v6090_v27 = vmax.f32 %v6058_v54, 0.0  ;;  %v5996_v28 = vadd.f32 %v11903_v47, %v5957_v15 }
 0x5e7   : > { %v6089_v58 = vmax.f32 %v6057_v21, 0.0  ;;  %v5995_v32 = vadd.f32 %v11903_v47, %v5956_v48  ;;  %v8746_v2 = vpop.f32.mrb[6].mxu1 }
 0x5e8   : > { %6122 = vst [vmem:[%s11917_s26 + $0x18] sm:$0xff] %v6090_v27  ;;  %v6060_v9 = vadd.f32 %v6028_v20, %v5996_v28  ;;  %v5959_v8 = vmul.f32 %v8746_v2, %v11898_v25  ;;  %v5784_v18 = vpop.f32.mrb[7].mxu1  ;;  %v6037_v27 = vld [vmem:[%s10069_s23 + $0x70] sm:$0xff] }
 0x5e9   : > { %6121 = vst [vmem:[%s11917_s26 + $0x10] sm:$0xff] %v6089_v58  ;;  %v6059_v62 = vadd.f32 %v6027_v30, %v5995_v32  ;;  %v5958_v59 = vmul.f32 %v11898_v25, %v5784_v18  ;;  %v6040_v18 = vld [vmem:[%s10069_s23 + $0x88] sm:$0xff] }
 0x5ea   : > { %v6092_v23 = vmax.f32 %v6060_v9, 0.0  ;;  %v5998_v63 = vadd.f32 %v11903_v47, %v5959_v8 }
 0x5eb   : > { %v6091_v4 = vmax.f32 %v6059_v62, 0.0  ;;  %v5997_v6 = vadd.f32 %v11903_v47, %v5958_v59  ;;  %v8749_v7 = vpop.f32.mrb[8].mxu1 }
 0x5ec   : > { %6124 = vst [vmem:[%s11917_s26 + $0x28] sm:$0xff] %v6092_v23  ;;  %v6062_v10 = vadd.f32 %v6030_v34, %v5998_v63  ;;  %v5961_v44 = vmul.f32 %v8749_v7, %v11898_v25  ;;  %v5794_v53 = vpop.f32.mrb[9].mxu1  ;;  %v6039_v23 = vld [vmem:[%s10069_s23 + $0x80] sm:$0xff] }
 0x5ed   : > { %6123 = vst [vmem:[%s11917_s26 + $0x20] sm:$0xff] %v6091_v4  ;;  %v6061_v41 = vadd.f32 %v6029_v0, %v5997_v6  ;;  %v5960_v33 = vmul.f32 %v11898_v25, %v5794_v53  ;;  %v6042_v53 = vld [vmem:[%s10069_s23 + $0x98] sm:$0xff] }
 0x5ee   : > { %v6094_v45 = vmax.f32 %v6062_v10, 0.0  ;;  %v6000_v13 = vadd.f32 %v11903_v47, %v5961_v44 }
 0x5ef   : > { %v6093_v17 = vmax.f32 %v6061_v41, 0.0  ;;  %v5999_v16 = vadd.f32 %v11903_v47, %v5960_v33  ;;  %v8752_v50 = vpop.f32.mrb[10].mxu1 }
 0x5f0   : > { %6126 = vst [vmem:[%s11917_s26 + $0x38] sm:$0xff] %v6094_v45  ;;  %v6064_v60 = vadd.f32 %v6032_v12, %v6000_v13  ;;  %v5963_v24 = vmul.f32 %v8752_v50, %v11898_v25  ;;  %v5804_v19 = vpop.f32.mrb[11].mxu1  ;;  %v6041_v45 = vld [vmem:[%s10069_s23 + $0x90] sm:$0xff] }
 0x5f1   : > { %6125 = vst [vmem:[%s11917_s26 + $0x30] sm:$0xff] %v6093_v17  ;;  %v6063_v29 = vadd.f32 %v6031_v14, %v5999_v16  ;;  %v5962_v43 = vmul.f32 %v11898_v25, %v5804_v19  ;;  %v6044_v19 = vld [vmem:[%s10069_s23 + $0xa8] sm:$0xff] }
 0x5f2   : > { %v6096_v46 = vmax.f32 %v6064_v60, 0.0  ;;  %v6002_v26 = vadd.f32 %v11903_v47, %v5963_v24 }
 0x5f3   : > { %v6095_v31 = vmax.f32 %v6063_v29, 0.0  ;;  %v6001_v49 = vadd.f32 %v11903_v47, %v5962_v43  ;;  %v8755_v35 = vpop.f32.mrb[12].mxu1 }
 0x5f4   : > { %6128 = vst [vmem:[%s11917_s26 + $0x48] sm:$0xff] %v6096_v46  ;;  %v6066_v36 = vadd.f32 %v6034_v57, %v6002_v26  ;;  %v5965_v22 = vmul.f32 %v8755_v35, %v11898_v25  ;;  %v5814_v40 = vpop.f32.mrb[13].mxu1  ;;  %v6043_v46 = vld [vmem:[%s10069_s23 + $0xa0] sm:$0xff] }
 0x5f5   : > { %6127 = vst [vmem:[%s11917_s26 + $0x40] sm:$0xff] %v6095_v31  ;;  %v6065_v61 = vadd.f32 %v6033_v42, %v6001_v49  ;;  %v5964_v11 = vmul.f32 %v11898_v25, %v5814_v40  ;;  %v6046_v40 = vld [vmem:[%s10069_s23 + $0xb8] sm:$0xff] }
 0x5f6   : > { %v6098_v56 = vmax.f32 %v6066_v36, 0.0  ;;  %v6004_v37 = vadd.f32 %v11903_v47, %v5965_v22 }
 0x5f7   : > { %v6097_v3 = vmax.f32 %v6065_v61, 0.0  ;;  %v6003_v39 = vadd.f32 %v11903_v47, %v5964_v11  ;;  %v8758_v38 = vpop.f32.mrb[14].mxu1 }
 0x5f8   : > { %6130 = vst [vmem:[%s11917_s26 + $0x58] sm:$0xff] %v6098_v56  ;;  %v6068_v52 = vadd.f32 %v6036_v1, %v6004_v37  ;;  %v5967_v51 = vmul.f32 %v8758_v38, %v11898_v25  ;;  %v5824_v54 = vpop.f32.mrb[15].mxu1  ;;  %v6045_v56 = vld [vmem:[%s10069_s23 + $0xb0] sm:$0xff] }
 0x5f9   : > { %6129 = vst [vmem:[%s11917_s26 + $0x50] sm:$0xff] %v6097_v3  ;;  %v6067_v15 = vadd.f32 %v6035_v5, %v6003_v39  ;;  %v5966_v21 = vmul.f32 %v11898_v25, %v5824_v54  ;;  %v6048_v54 = vld [vmem:[%s10069_s23 + $0xc8] sm:$0xff] }
 0x5fa   : > { %v6100_v20 = vmax.f32 %v6068_v52, 0.0  ;;  %v6006_v48 = vadd.f32 %v11903_v47, %v5967_v51 }
 0x5fb   : > { %v6099_v28 = vmax.f32 %v6067_v15, 0.0  ;;  %v6005_v30 = vadd.f32 %v11903_v47, %v5966_v21  ;;  %v8761_v58 = vpop.f32.mrb[16].mxu1 }
 0x5fc   : > { %6132 = vst [vmem:[%s11917_s26 + $0x68] sm:$0xff] %v6100_v20  ;;  %v6070_v32 = vadd.f32 %v6038_v55, %v6006_v48  ;;  %v5969_v2 = vmul.f32 %v8761_v58, %v11898_v25  ;;  %v5834_v9 = vpop.f32.mrb[17].mxu1  ;;  %v6047_v20 = vld [vmem:[%s10069_s23 + $0xc0] sm:$0xff] }
 0x5fd   : > { %6131 = vst [vmem:[%s11917_s26 + $0x60] sm:$0xff] %v6099_v28  ;;  %v6069_v8 = vadd.f32 %v6037_v27, %v6005_v30  ;;  %v5968_v62 = vmul.f32 %v11898_v25, %v5834_v9  ;;  %v6050_v9 = vld [vmem:[%s10069_s23 + $0xd8] sm:$0xff] }
 0x5fe   : > { %v6102_v34 = vmax.f32 %v6070_v32, 0.0  ;;  %v6008_v59 = vadd.f32 %v11903_v47, %v5969_v2 }
 0x5ff   : > { %v6101_v63 = vmax.f32 %v6069_v8, 0.0  ;;  %v6007_v0 = vadd.f32 %v11903_v47, %v5968_v62  ;;  %v8764_v4 = vpop.f32.mrb[18].mxu1 }
 0x600   : > { %6134 = vst [vmem:[%s11917_s26 + $0x78] sm:$0xff] %v6102_v34  ;;  %v6072_v6 = vadd.f32 %v6040_v18, %v6008_v59  ;;  %v5971_v7 = vmul.f32 %v8764_v4, %v11898_v25  ;;  %v5844_v10 = vpop.f32.mrb[19].mxu1  ;;  %v6049_v34 = vld [vmem:[%s10069_s23 + $0xd0] sm:$0xff] }
 0x601   : > { %6133 = vst [vmem:[%s11917_s26 + $0x70] sm:$0xff] %v6101_v63  ;;  %v6071_v44 = vadd.f32 %v6039_v23, %v6007_v0  ;;  %v5970_v41 = vmul.f32 %v11898_v25, %v5844_v10  ;;  %v6052_v10 = vld [vmem:[%s10069_s23 + $0xe8] sm:$0xff] }
 0x602   : > { %v6104_v12 = vmax.f32 %v6072_v6, 0.0  ;;  %v6010_v33 = vadd.f32 %v11903_v47, %v5971_v7 }
 0x603   : > { %v6103_v13 = vmax.f32 %v6071_v44, 0.0  ;;  %v6009_v14 = vadd.f32 %v11903_v47, %v5970_v41  ;;  %v8767_v17 = vpop.f32.mrb[20].mxu1 }
 0x604   : > { %6136 = vst [vmem:[%s11917_s26 + $0x88] sm:$0xff] %v6104_v12  ;;  %v6074_v16 = vadd.f32 %v6042_v53, %v6010_v33  ;;  %v5973_v50 = vmul.f32 %v8767_v17, %v11898_v25  ;;  %v5854_v60 = vpop.f32.mrb[21].mxu1  ;;  %v6051_v12 = vld [vmem:[%s10069_s23 + $0xe0] sm:$0xff] }
 0x605   : > { %6135 = vst [vmem:[%s11917_s26 + $0x80] sm:$0xff] %v6103_v13  ;;  %v6073_v24 = vadd.f32 %v6041_v45, %v6009_v14  ;;  %v5972_v29 = vmul.f32 %v11898_v25, %v5854_v60  ;;  %v6054_v60 = vld [vmem:[%s10069_s23 + $0xf8] sm:$0xff] }
 0x606   : > { %v6106_v57 = vmax.f32 %v6074_v16, 0.0  ;;  %v6012_v43 = vadd.f32 %v11903_v47, %v5973_v50 }
 0x607   : > { %v6105_v26 = vmax.f32 %v6073_v24, 0.0  ;;  %v6011_v42 = vadd.f32 %v11903_v47, %v5972_v29  ;;  %v8770_v31 = vpop.f32.mrb[22].mxu1 }
 0x608   : > { %6138 = vst [vmem:[%s11917_s26 + $0x98] sm:$0xff] %v6106_v57  ;;  %v6076_v49 = vadd.f32 %v6044_v19, %v6012_v43  ;;  %v5975_v35 = vmul.f32 %v8770_v31, %v11898_v25  ;;  %v5864_v36 = vpop.f32.mrb[23].mxu1  ;;  %v6053_v57 = vld [vmem:[%s10069_s23 + $0xf0] sm:$0xff] }
 0x609   : > { %6137 = vst [vmem:[%s11917_s26 + $0x90] sm:$0xff] %v6105_v26  ;;  %v6075_v22 = vadd.f32 %v6043_v46, %v6011_v42  ;;  %v5974_v61 = vmul.f32 %v11898_v25, %v5864_v36 }
 0x60a   : > { %v6108_v1 = vmax.f32 %v6076_v49, 0.0  ;;  %v6014_v11 = vadd.f32 %v11903_v47, %v5975_v35 }
 0x60b   : > { %v6107_v37 = vmax.f32 %v6075_v22, 0.0  ;;  %v6013_v5 = vadd.f32 %v11903_v47, %v5974_v61  ;;  %v8773_v3 = vpop.f32.mrb[24].mxu1 }
 0x60c   : > { %6140 = vst [vmem:[%s11917_s26 + $0xa8] sm:$0xff] %v6108_v1  ;;  %v6078_v39 = vadd.f32 %v6046_v40, %v6014_v11  ;;  %v5977_v38 = vmul.f32 %v8773_v3, %v11898_v25  ;;  %v5874_v52 = vpop.f32.mrb[25].mxu1 }
 0x60d   : > { %6139 = vst [vmem:[%s11917_s26 + $0xa0] sm:$0xff] %v6107_v37  ;;  %v6077_v51 = vadd.f32 %v6045_v56, %v6013_v5  ;;  %v5976_v15 = vmul.f32 %v11898_v25, %v5874_v52 }
 0x60e   : > { %v6110_v55 = vmax.f32 %v6078_v39, 0.0  ;;  %v6016_v21 = vadd.f32 %v11903_v47, %v5977_v38 }
 0x60f   : > { %v6109_v48 = vmax.f32 %v6077_v51, 0.0  ;;  %v6015_v27 = vadd.f32 %v11903_v47, %v5976_v15  ;;  %v8776_v28 = vpop.f32.mrb[26].mxu1 }
 0x610   : > { %6142 = vst [vmem:[%s11917_s26 + $0xb8] sm:$0xff] %v6110_v55  ;;  %v6080_v30 = vadd.f32 %v6048_v54, %v6016_v21  ;;  %v5979_v58 = vmul.f32 %v8776_v28, %v11898_v25  ;;  %v5884_v32 = vpop.f32.mrb[27].mxu1 }
 0x611   : > { %6141 = vst [vmem:[%s11917_s26 + $0xb0] sm:$0xff] %v6109_v48  ;;  %v6079_v2 = vadd.f32 %v6047_v20, %v6015_v27  ;;  %v5978_v8 = vmul.f32 %v11898_v25, %v5884_v32 }
 0x612   : > { %v6112_v18 = vmax.f32 %v6080_v30, 0.0  ;;  %v6018_v62 = vadd.f32 %v11903_v47, %v5979_v58 }
 0x613   : > { %v6111_v59 = vmax.f32 %v6079_v2, 0.0  ;;  %v6017_v23 = vadd.f32 %v11903_v47, %v5978_v8  ;;  %v8779_v63 = vpop.f32.mrb[28].mxu1 }
 0x614   : > { %6144 = vst [vmem:[%s11917_s26 + $0xc8] sm:$0xff] %v6112_v18  ;;  %v6082_v0 = vadd.f32 %v6050_v9, %v6018_v62  ;;  %v5981_v4 = vmul.f32 %v8779_v63, %v11898_v25  ;;  %v5894_v6 = vpop.f32.mrb[29].mxu1 }
 0x615   : > { %6143 = vst [vmem:[%s11917_s26 + $0xc0] sm:$0xff] %v6111_v59  ;;  %v6081_v7 = vadd.f32 %v6049_v34, %v6017_v23  ;;  %v5980_v44 = vmul.f32 %v11898_v25, %v5894_v6 }
 0x616   : > { %v6114_v53 = vmax.f32 %v6082_v0, 0.0  ;;  %v6020_v41 = vadd.f32 %v11903_v47, %v5981_v4 }
 0x617   : > { %v6113_v33 = vmax.f32 %v6081_v7, 0.0  ;;  %v6019_v45 = vadd.f32 %v11903_v47, %v5980_v44  ;;  %v8782_v13 = vpop.f32.mrb[30].mxu1 }
 0x618   : > { %6146 = vst [vmem:[%s11917_s26 + $0xd8] sm:$0xff] %v6114_v53  ;;  %v6084_v14 = vadd.f32 %v6052_v10, %v6020_v41  ;;  %v5983_v17 = vmul.f32 %v8782_v13, %v11898_v25  ;;  %v5904_v16 = vpop.f32.mrb[31].mxu1 }
 0x619   : > { %6145 = vst [vmem:[%s11917_s26 + $0xd0] sm:$0xff] %v6113_v33  ;;  %v6083_v50 = vadd.f32 %v6051_v12, %v6019_v45  ;;  %v5982_v24 = vmul.f32 %v11898_v25, %v5904_v16 }
 0x61a   : > { %v6116_v19 = vmax.f32 %v6084_v14, 0.0  ;;  %v6022_v29 = vadd.f32 %v11903_v47, %v5983_v17 }
 0x61b   : > { %v6115_v43 = vmax.f32 %v6083_v50, 0.0  ;;  %v6021_v46 = vadd.f32 %v11903_v47, %v5982_v24 }
 0x61c   : > { %6148 = vst [vmem:[%s11917_s26 + $0xe8] sm:$0xff] %v6116_v19  ;;  %v6086_v26 = vadd.f32 %v6054_v60, %v6022_v29 }
 0x61d   : > { %6147 = vst [vmem:[%s11917_s26 + $0xe0] sm:$0xff] %v6115_v43  ;;  %v6085_v42 = vadd.f32 %v6053_v57, %v6021_v46 }
 0x61e   : > { %v6118_v31 = vmax.f32 %v6086_v26, 0.0 }
 0x61f   : > { %v6117_v49 = vmax.f32 %v6085_v42, 0.0 }
 0x620   : > { %6150 = vst [vmem:[%s11917_s26 + $0xf8] sm:$0xff] %v6118_v31 }
 0x621   : > { %6149 = vst [vmem:[%s11917_s26 + $0xf0] sm:$0xff] %v6117_v49 }
 0x622 PF: > { %s17_s24 = sadd.s32 1, %s9890_s24  }
 0x623   : > { %p14_p4 = scmp.ge.s32.totalorder %s17_s24, 4  }
 0x625   :  { %16 = sbr.rel (!%p14_p4) target bundleno = 1 (0x1), region = 100 }

</bundles_post_ra>
